<compile_context>
chip_gen: v5e
topology: v5e:2x2
jax: 0.10.0
libtpu: 0.0.40
codegen_flags: <defaults>
</compile_context>

<pallas_src>
import functools

import jax
import jax.numpy as jnp
from jax.experimental import pallas as pl
from jax.experimental.pallas import tpu as pltpu


C0, C1, C2, C3 = 3, 64, 128, 3      # channel counts of the three conv layers


def _conv3x3_taps(load_rows, n_rows, W, cin, w_ref, bias):
    """3x3 conv over `n_rows` output rows via 3 kx-folded MXU matmuls.

    load_rows(ky) -> (n_rows, W+2, cin) bf16 rows of a zero-col-haloed source.
    w_ref: (3, 3*cin, cout) bf16 with (kx, cin) flattened kx-major.
    bias:  (1, cout) f32.  Returns (n_rows*W, cout) f32 pre-activation.
    """
    acc = None
    for ky in range(3):
        rows = load_rows(ky)                                    # (n_rows, W+2, cin)
        patch = jnp.concatenate(
            [rows[:, kx:kx + W, :] for kx in range(3)], axis=-1
        ).reshape(n_rows * W, 3 * cin)                          # K = 3*cin
        part = jnp.dot(patch, w_ref[ky], preferred_element_type=jnp.float32)
        acc = part + bias if acc is None else acc + part        # bias folded in
    return acc


def _dip_kernel(x_ref, w1_ref, b1_ref, w2_ref, b2_ref, w3_ref, b3_ref,
                o_ref, a1_ref, a2_ref, *, H, W, Ht):
    # x_ref : (Ht+6, W+2, 3)   bf16  raw input rows (3-row halo, 1-col pad)
    # w1_ref: (3,   9,  64)    bf16  conv1 weight, kx folded into K
    # w2_ref: (3, 192, 128)    bf16  conv2 weight, kx folded into K
    # w3_ref: (3, 384,   3)    bf16  conv3 weight, kx folded into K
    # b*_ref: (1, C)           f32
    # o_ref : (Ht, W, 3)       f32   output row tile
    # a1_ref: (Ht+4, W+2, 64)  bf16  conv1 activations (zero col halo)
    # a2_ref: (Ht+2, W+2, 128) bf16  conv2 activations (zero col halo)
    t = pl.program_id(0)                       # row-tile index
    r1, r2 = Ht + 4, Ht + 2

    # Zero only the two halo columns (tiny, O(Ht*C)); interior is fully
    # overwritten below and out-of-image rows are masked, so no full-buffer
    # zeroing pass is needed.
    a1_ref[:, 0:1, :] = jnp.zeros((r1, 1, C1), a1_ref.dtype)
    a1_ref[:, W + 1:W + 2, :] = jnp.zeros((r1, 1, C1), a1_ref.dtype)
    a2_ref[:, 0:1, :] = jnp.zeros((r2, 1, C2), a2_ref.dtype)
    a2_ref[:, W + 1:W + 2, :] = jnp.zeros((r2, 1, C2), a2_ref.dtype)

    # ---- conv1 (+ReLU): global rows [t*Ht-2, t*Ht+Ht+2) into a1 ----
    y1 = _conv3x3_taps(lambda ky: x_ref[ky:ky + r1, :, :], r1, W, C0,
                       w1_ref, b1_ref[...])
    y1 = jnp.maximum(y1, 0.0).reshape(r1, W, C1)
    g1 = jax.lax.broadcasted_iota(jnp.int32, (r1, 1, 1), 0) + (t * Ht - 2)
    y1 = jnp.where((g1 >= 0) & (g1 < H), y1, 0.0)   # SAME-padding rows -> 0
    a1_ref[:, 1:W + 1, :] = y1.astype(a1_ref.dtype)

    # ---- conv2 (+ReLU): global rows [t*Ht-1, t*Ht+Ht+1) into a2 ----
    y2 = _conv3x3_taps(lambda ky: a1_ref[ky:ky + r2, :, :], r2, W, C1,
                       w2_ref, b2_ref[...])
    y2 = jnp.maximum(y2, 0.0).reshape(r2, W, C2)
    g2 = jax.lax.broadcasted_iota(jnp.int32, (r2, 1, 1), 0) + (t * Ht - 1)
    y2 = jnp.where((g2 >= 0) & (g2 < H), y2, 0.0)
    a2_ref[:, 1:W + 1, :] = y2.astype(a2_ref.dtype)

    # ---- conv3: the Ht real output rows, Cout=3 (no pad -> no writeback
    # inflation and no wrapper channel-slice pass) ----
    # TODO(synk): for large W, tile M (inner fori over row chunks) to bound
    # accumulator vreg pressure.
    y3 = _conv3x3_taps(lambda ky: a2_ref[ky:ky + Ht, :, :], Ht, W, C2,
                       w3_ref, b3_ref[...])
    o_ref[...] = y3.reshape(Ht, W, C3).astype(o_ref.dtype)


def dip_pallas(x_nhwc, params, row_tile=8):
    """Fused 3-layer DIP forward. x_nhwc: (N,H,W,3) f32 -> (N,H,W,3) f32."""
    (w1, b1), (w2, b2), (w3, b3) = params
    N, H, W, _ = x_nhwc.shape
    Ht = row_tile if H % row_tile == 0 else H
    T = H // Ht

    # Raw zero-padded input windows (one per row tile): 3-row halo per side
    # for the fused 3x(3x3) receptive field, 1-col pad for conv1's SAME
    # padding.  im2col itself happens inside the kernel, in VMEM.
    xp = jnp.pad(x_nhwc, ((0, 0), (3, 3), (1, 1), (0, 0))).astype(jnp.bfloat16)
    wins = jnp.stack([xp[:, t * Ht:t * Ht + Ht + 6] for t in range(T)], axis=1)
    # wins: (N, T, Ht+6, W+2, 3)

    # kx folded into the matmul K dim: (ky, kx*cin, cout); bf16 MXU operands.
    w1k = w1.reshape(3, 3 * C0, C1).astype(jnp.bfloat16)
    w2k = w2.reshape(3, 3 * C1, C2).astype(jnp.bfloat16)
    w3k = w3.reshape(3, 3 * C2, C3).astype(jnp.bfloat16)

    kernel = functools.partial(_dip_kernel, H=H, W=W, Ht=Ht)
    const2 = lambda t, n: (0, 0)        # constant maps keep weights resident
    const3 = lambda t, n: (0, 0, 0)

    out = pl.pallas_call(
        kernel,
        out_shape=jax.ShapeDtypeStruct((N, T, Ht, W, C3), jnp.float32),
        grid_spec=pltpu.PrefetchScalarGridSpec(
            num_scalar_prefetch=0,
            grid=(T, N),   # leading "parallel" spatial axis (v7x megacore)
            in_specs=[
                pl.BlockSpec((None, None, Ht + 6, W + 2, C0),
                             lambda t, n: (n, t, 0, 0, 0)),
                pl.BlockSpec((3, 3 * C0, C1), const3),
                pl.BlockSpec((1, C1), const2),
                pl.BlockSpec((3, 3 * C1, C2), const3),
                pl.BlockSpec((1, C2), const2),
                pl.BlockSpec((3, 3 * C2, C3), const3),
                pl.BlockSpec((1, C3), const2),
            ],
            out_specs=pl.BlockSpec((None, None, Ht, W, C3),
                                   lambda t, n: (n, t, 0, 0, 0)),
            scratch_shapes=[
                pltpu.VMEM((Ht + 4, W + 2, C1), jnp.bfloat16),
                pltpu.VMEM((Ht + 2, W + 2, C2), jnp.bfloat16),
            ],
        ),
        compiler_params=pltpu.CompilerParams(
            dimension_semantics=("parallel", "parallel"),
            vmem_limit_bytes=48 * 1024 * 1024,   # above v5e/v6e defaults, < v7x 64MiB
        ),
    )(wins, w1k, b1.reshape(1, C1), w2k, b2.reshape(1, C2),
      w3k, b3.reshape(1, C3))

    return out.reshape(N, H, W, C3)


def init_params(key):
    """Deterministic synthetic weights matching nn.Conv2d shapes.

    PyTorch conv weight layout is (Cout, Cin, kH, kW); we store (kH, kW, Cin,
    Cout) for the NHWC kernel.
    """
    ks = jax.random.split(key, 6)

    def conv_init(kw, kb, cin, cout):
        fan_in = cin * 3 * 3
        bound = 1.0 / jnp.sqrt(fan_in)
        w = jax.random.uniform(kw, (3, 3, cin, cout), jnp.float32, -bound, bound)
        b = jax.random.uniform(kb, (cout,), jnp.float32, -bound, bound)
        return w, b

    w1, b1 = conv_init(ks[0], ks[1], C0, C1)
    w2, b2 = conv_init(ks[2], ks[3], C1, C2)
    w3, b3 = conv_init(ks[4], ks[5], C2, C3)
    return (w1, b1), (w2, b2), (w3, b3)


@jax.jit
def dip_forward(x_nchw, params):
    x = jnp.transpose(x_nchw, (0, 2, 3, 1))        # NCHW -> NHWC
    y = dip_pallas(x, params)
    return jnp.transpose(y, (0, 3, 1, 2))          # NHWC -> NCHW


def _ref_forward(x_nchw, params):
    # Pure-JAX reference (lax conv, f32) as the correctness guard.
    (w1, b1), (w2, b2), (w3, b3) = params
    dn = jax.lax.conv_dimension_numbers(x_nchw.shape, (3, 3, 3, 64),
                                        ("NCHW", "HWIO", "NCHW"))

    def conv(x, w, b):
        y = jax.lax.conv_general_dilated(x, w, (1, 1), "SAME",
                                         dimension_numbers=dn)
        return y + b.reshape(1, -1, 1, 1)

    x = jax.nn.relu(conv(x_nchw, w1, b1))
    x = jax.nn.relu(conv(x, w2, b2))
    return conv(x, w3, b3)


if __name__ == "__main__":
    key = jax.random.PRNGKey(0)
    k_x, k_p = jax.random.split(key)
    # Small shapes consistent with the module: N=2, C=3, H=W=16 (NCHW, PyTorch)
    x = jax.random.normal(k_x, (2, 3, 16, 16), jnp.float32)
    params = init_params(k_p)

    out = jax.block_until_ready(dip_forward(x, params))

    ref = _ref_forward(x, params)
    assert out.shape == (2, 3, 16, 16)
    # bf16 MXU operands with f32 accumulation -> loosened tolerance vs f32 ref.
    assert jnp.allclose(out, ref, rtol=2e-2, atol=2e-2), "mismatch vs lax conv"

    print("KERNEL_OK")
</pallas_src>

<mosaic_0001>
module attributes {stable_mosaic.version = 11 : i64} {
  func.func @_dip_kernel(%arg0: i32, %arg1: i32, %arg2: memref<1x1x14x18x3xbf16, #tpu.memory_space<vmem>>, %arg3: memref<3x9x64xbf16, #tpu.memory_space<vmem>>, %arg4: memref<1x64xf32, #tpu.memory_space<vmem>>, %arg5: memref<3x192x128xbf16, #tpu.memory_space<vmem>>, %arg6: memref<1x128xf32, #tpu.memory_space<vmem>>, %arg7: memref<3x384x3xbf16, #tpu.memory_space<vmem>>, %arg8: memref<1x3xf32, #tpu.memory_space<vmem>>, %arg9: memref<1x1x8x16x3xf32, #tpu.memory_space<vmem>>, %arg10: memref<12x18x64xbf16, #tpu.memory_space<vmem>>, %arg11: memref<10x18x128xbf16, #tpu.memory_space<vmem>>) attributes {dimension_semantics = [#tpu.dimension_semantics<parallel>, #tpu.dimension_semantics<parallel>], iteration_bounds = array<i64: 2, 2>, scalar_prefetch = 0 : i64, scratch_operands = 2 : i64, tpu.core_type = #tpu.core_type<tc>, window_params = [{transform_indices = @transform_0, window_bounds = array<i64: 1, 1, 14, 18, 3>}, {pipeline_mode = #tpu.pipeline_mode<synchronous>, transform_indices = @transform_1, window_bounds = array<i64: 3, 9, 64>}, {pipeline_mode = #tpu.pipeline_mode<synchronous>, transform_indices = @transform_2, window_bounds = array<i64: 1, 64>}, {pipeline_mode = #tpu.pipeline_mode<synchronous>, transform_indices = @transform_3, window_bounds = array<i64: 3, 192, 128>}, {pipeline_mode = #tpu.pipeline_mode<synchronous>, transform_indices = @transform_4, window_bounds = array<i64: 1, 128>}, {pipeline_mode = #tpu.pipeline_mode<synchronous>, transform_indices = @transform_5, window_bounds = array<i64: 3, 384, 3>}, {pipeline_mode = #tpu.pipeline_mode<synchronous>, transform_indices = @transform_6, window_bounds = array<i64: 1, 3>}, {transform_indices = @transform_7, window_bounds = array<i64: 1, 1, 8, 16, 3>}]} {
    %cst = arith.constant 0.000000e+00 : bf16
    %0 = vector.broadcast %cst : bf16 to vector<12x1x64xbf16>
    %c0 = arith.constant 0 : index
    %c0_0 = arith.constant 0 : index
    %c0_1 = arith.constant 0 : index
    %1 = vector.load %arg10[%c0, %c0_0, %c0_1] : memref<12x18x64xbf16, #tpu.memory_space<vmem>>, vector<12x1x64xbf16>
    tpu.vector_store %arg10[%c0, %c0_0, %c0_1], %0 {strides = array<i32>} : memref<12x18x64xbf16, #tpu.memory_space<vmem>>, vector<12x1x64xbf16>,
    %cst_2 = arith.constant 0.000000e+00 : bf16
    %2 = vector.broadcast %cst_2 : bf16 to vector<12x1x64xbf16>
    %c0_3 = arith.constant 0 : index
    %c17 = arith.constant 17 : index
    %c0_4 = arith.constant 0 : index
    %3 = vector.load %arg10[%c0_3, %c17, %c0_4] : memref<12x18x64xbf16, #tpu.memory_space<vmem>>, vector<12x1x64xbf16>
    tpu.vector_store %arg10[%c0_3, %c17, %c0_4], %2 {strides = array<i32>} : memref<12x18x64xbf16, #tpu.memory_space<vmem>>, vector<12x1x64xbf16>,
    %cst_5 = arith.constant 0.000000e+00 : bf16
    %4 = vector.broadcast %cst_5 : bf16 to vector<10x1x128xbf16>
    %c0_6 = arith.constant 0 : index
    %c0_7 = arith.constant 0 : index
    %c0_8 = arith.constant 0 : index
    %5 = vector.load %arg11[%c0_6, %c0_7, %c0_8] : memref<10x18x128xbf16, #tpu.memory_space<vmem>>, vector<10x1x128xbf16>
    tpu.vector_store %arg11[%c0_6, %c0_7, %c0_8], %4 {strides = array<i32>} : memref<10x18x128xbf16, #tpu.memory_space<vmem>>, vector<10x1x128xbf16>,
    %cst_9 = arith.constant 0.000000e+00 : bf16
    %6 = vector.broadcast %cst_9 : bf16 to vector<10x1x128xbf16>
    %c0_10 = arith.constant 0 : index
    %c17_11 = arith.constant 17 : index
    %c0_12 = arith.constant 0 : index
    %7 = vector.load %arg11[%c0_10, %c17_11, %c0_12] : memref<10x18x128xbf16, #tpu.memory_space<vmem>>, vector<10x1x128xbf16>
    tpu.vector_store %arg11[%c0_10, %c17_11, %c0_12], %6 {strides = array<i32>} : memref<10x18x128xbf16, #tpu.memory_space<vmem>>, vector<10x1x128xbf16>,
    %c0_13 = arith.constant 0 : index
    %c0_14 = arith.constant 0 : index
    %8 = vector.load %arg4[%c0_13, %c0_14] : memref<1x64xf32, #tpu.memory_space<vmem>>, vector<1x64xf32>
    %c0_15 = arith.constant 0 : index
    %c0_16 = arith.constant 0 : index
    %c0_17 = arith.constant 0 : index
    %c0_18 = arith.constant 0 : index
    %c0_19 = arith.constant 0 : index
    %9 = vector.load %arg2[%c0_15, %c0_16, %c0_17, %c0_18, %c0_19] : memref<1x1x14x18x3xbf16, #tpu.memory_space<vmem>>, vector<1x1x12x18x3xbf16>
    %10 = vector.shape_cast %9 : vector<1x1x12x18x3xbf16> to vector<12x18x3xbf16>
    %11 = vector.extract_strided_slice %10 {offsets = [0, 0, 0], sizes = [12, 16, 3], strides = [1, 1, 1]} : vector<12x18x3xbf16> to vector<12x16x3xbf16>
    %12 = vector.extract_strided_slice %10 {offsets = [0, 1, 0], sizes = [12, 16, 3], strides = [1, 1, 1]} : vector<12x18x3xbf16> to vector<12x16x3xbf16>
    %13 = vector.extract_strided_slice %10 {offsets = [0, 2, 0], sizes = [12, 16, 3], strides = [1, 1, 1]} : vector<12x18x3xbf16> to vector<12x16x3xbf16>
    %14 = tpu.concatenate %11, %12, %13 in 2 : vector<12x16x3xbf16>, vector<12x16x3xbf16>, vector<12x16x3xbf16> -> vector<12x16x9xbf16>
    %15 = vector.shape_cast %14 : vector<12x16x9xbf16> to vector<192x9xbf16>
    %c0_20 = arith.constant 0 : index
    %c0_21 = arith.constant 0 : index
    %c0_22 = arith.constant 0 : index
    %16 = vector.load %arg3[%c0_20, %c0_21, %c0_22] : memref<3x9x64xbf16, #tpu.memory_space<vmem>>, vector<1x9x64xbf16>
    %17 = vector.shape_cast %16 : vector<1x9x64xbf16> to vector<9x64xbf16>
    %cst_23 = arith.constant dense<0.000000e+00> : vector<192x64xf32>
    %18 = tpu.matmul %15, %17, %cst_23 {dimension_numbers = #tpu.dot_dimension_numbers<[1], [0], [0], [1], [0, 0, 1, 1], [], []>} : vector<192x9xbf16>, vector<9x64xbf16>, vector<192x64xf32> -> vector<192x64xf32>
    %19 = vector.broadcast %8 : vector<1x64xf32> to vector<192x64xf32>
    %20 = arith.addf %18, %19 : vector<192x64xf32>
    %c0_24 = arith.constant 0 : index
    %c0_25 = arith.constant 0 : index
    %c1 = arith.constant 1 : index
    %c0_26 = arith.constant 0 : index
    %c0_27 = arith.constant 0 : index
    %21 = vector.load %arg2[%c0_24, %c0_25, %c1, %c0_26, %c0_27] : memref<1x1x14x18x3xbf16, #tpu.memory_space<vmem>>, vector<1x1x12x18x3xbf16>
    %22 = vector.shape_cast %21 : vector<1x1x12x18x3xbf16> to vector<12x18x3xbf16>
    %23 = vector.extract_strided_slice %22 {offsets = [0, 0, 0], sizes = [12, 16, 3], strides = [1, 1, 1]} : vector<12x18x3xbf16> to vector<12x16x3xbf16>
    %24 = vector.extract_strided_slice %22 {offsets = [0, 1, 0], sizes = [12, 16, 3], strides = [1, 1, 1]} : vector<12x18x3xbf16> to vector<12x16x3xbf16>
    %25 = vector.extract_strided_slice %22 {offsets = [0, 2, 0], sizes = [12, 16, 3], strides = [1, 1, 1]} : vector<12x18x3xbf16> to vector<12x16x3xbf16>
    %26 = tpu.concatenate %23, %24, %25 in 2 : vector<12x16x3xbf16>, vector<12x16x3xbf16>, vector<12x16x3xbf16> -> vector<12x16x9xbf16>
    %27 = vector.shape_cast %26 : vector<12x16x9xbf16> to vector<192x9xbf16>
    %c1_28 = arith.constant 1 : index
    %c0_29 = arith.constant 0 : index
    %c0_30 = arith.constant 0 : index
    %28 = vector.load %arg3[%c1_28, %c0_29, %c0_30] : memref<3x9x64xbf16, #tpu.memory_space<vmem>>, vector<1x9x64xbf16>
    %29 = vector.shape_cast %28 : vector<1x9x64xbf16> to vector<9x64xbf16>
    %cst_31 = arith.constant dense<0.000000e+00> : vector<192x64xf32>
    %30 = tpu.matmul %27, %29, %cst_31 {dimension_numbers = #tpu.dot_dimension_numbers<[1], [0], [0], [1], [0, 0, 1, 1], [], []>} : vector<192x9xbf16>, vector<9x64xbf16>, vector<192x64xf32> -> vector<192x64xf32>
    %31 = arith.addf %20, %30 : vector<192x64xf32>
    %c0_32 = arith.constant 0 : index
    %c0_33 = arith.constant 0 : index
    %c2 = arith.constant 2 : index
    %c0_34 = arith.constant 0 : index
    %c0_35 = arith.constant 0 : index
    %32 = vector.load %arg2[%c0_32, %c0_33, %c2, %c0_34, %c0_35] : memref<1x1x14x18x3xbf16, #tpu.memory_space<vmem>>, vector<1x1x12x18x3xbf16>
    %33 = vector.shape_cast %32 : vector<1x1x12x18x3xbf16> to vector<12x18x3xbf16>
    %34 = vector.extract_strided_slice %33 {offsets = [0, 0, 0], sizes = [12, 16, 3], strides = [1, 1, 1]} : vector<12x18x3xbf16> to vector<12x16x3xbf16>
    %35 = vector.extract_strided_slice %33 {offsets = [0, 1, 0], sizes = [12, 16, 3], strides = [1, 1, 1]} : vector<12x18x3xbf16> to vector<12x16x3xbf16>
    %36 = vector.extract_strided_slice %33 {offsets = [0, 2, 0], sizes = [12, 16, 3], strides = [1, 1, 1]} : vector<12x18x3xbf16> to vector<12x16x3xbf16>
    %37 = tpu.concatenate %34, %35, %36 in 2 : vector<12x16x3xbf16>, vector<12x16x3xbf16>, vector<12x16x3xbf16> -> vector<12x16x9xbf16>
    %38 = vector.shape_cast %37 : vector<12x16x9xbf16> to vector<192x9xbf16>
    %c2_36 = arith.constant 2 : index
    %c0_37 = arith.constant 0 : index
    %c0_38 = arith.constant 0 : index
    %39 = vector.load %arg3[%c2_36, %c0_37, %c0_38] : memref<3x9x64xbf16, #tpu.memory_space<vmem>>, vector<1x9x64xbf16>
    %40 = vector.shape_cast %39 : vector<1x9x64xbf16> to vector<9x64xbf16>
    %cst_39 = arith.constant dense<0.000000e+00> : vector<192x64xf32>
    %41 = tpu.matmul %38, %40, %cst_39 {dimension_numbers = #tpu.dot_dimension_numbers<[1], [0], [0], [1], [0, 0, 1, 1], [], []>} : vector<192x9xbf16>, vector<9x64xbf16>, vector<192x64xf32> -> vector<192x64xf32>
    %42 = arith.addf %31, %41 : vector<192x64xf32>
    %cst_40 = arith.constant 0.000000e+00 : f32
    %43 = vector.broadcast %cst_40 : f32 to vector<192x64xf32>
    %44 = arith.maximumf %42, %43 : vector<192x64xf32>
    %45 = vector.shape_cast %44 : vector<192x64xf32> to vector<12x16x64xf32>
    %46 = tpu.iota {dimensions = array<i32: 0>} : vector<12x1x1xi32>
    %c8_i32 = arith.constant 8 : i32
    %47 = arith.muli %arg0, %c8_i32 : i32
    %c2_i32 = arith.constant 2 : i32
    %48 = arith.subi %47, %c2_i32 : i32
    %49 = vector.broadcast %48 : i32 to vector<12x1x1xi32>
    %50 = arith.addi %46, %49 : vector<12x1x1xi32>
    %c0_i32 = arith.constant 0 : i32
    %51 = vector.broadcast %c0_i32 : i32 to vector<12x1x1xi32>
    %52 = arith.cmpi sge, %50, %51 : vector<12x1x1xi32>
    %c16_i32 = arith.constant 16 : i32
    %53 = vector.broadcast %c16_i32 : i32 to vector<12x1x1xi32>
    %54 = arith.cmpi slt, %50, %53 : vector<12x1x1xi32>
    %55 = arith.andi %52, %54 : vector<12x1x1xi1>
    %cst_41 = arith.constant 0.000000e+00 : f32
    %56 = vector.shape_cast %55 : vector<12x1x1xi1> to vector<12x1x1xi1>
    %57 = vector.broadcast %56 : vector<12x1x1xi1> to vector<12x16x64xi1>
    %58 = vector.broadcast %cst_41 : f32 to vector<12x16x64xf32>
    %59 = arith.select %57, %45, %58 : vector<12x16x64xi1>, vector<12x16x64xf32>
    %60 = arith.truncf %59 : vector<12x16x64xf32> to vector<12x16x64xbf16>
    %c0_42 = arith.constant 0 : index
    %c1_43 = arith.constant 1 : index
    %c0_44 = arith.constant 0 : index
    %61 = vector.load %arg10[%c0_42, %c1_43, %c0_44] : memref<12x18x64xbf16, #tpu.memory_space<vmem>>, vector<12x16x64xbf16>
    tpu.vector_store %arg10[%c0_42, %c1_43, %c0_44], %60 {strides = array<i32>} : memref<12x18x64xbf16, #tpu.memory_space<vmem>>, vector<12x16x64xbf16>,
    %c0_45 = arith.constant 0 : index
    %c0_46 = arith.constant 0 : index
    %62 = vector.load %arg6[%c0_45, %c0_46] : memref<1x128xf32, #tpu.memory_space<vmem>>, vector<1x128xf32>
    %c0_47 = arith.constant 0 : index
    %c0_48 = arith.constant 0 : index
    %c0_49 = arith.constant 0 : index
    %63 = vector.load %arg10[%c0_47, %c0_48, %c0_49] : memref<12x18x64xbf16, #tpu.memory_space<vmem>>, vector<10x18x64xbf16>
    %64 = vector.extract_strided_slice %63 {offsets = [0, 0, 0], sizes = [10, 16, 64], strides = [1, 1, 1]} : vector<10x18x64xbf16> to vector<10x16x64xbf16>
    %65 = vector.extract_strided_slice %63 {offsets = [0, 1, 0], sizes = [10, 16, 64], strides = [1, 1, 1]} : vector<10x18x64xbf16> to vector<10x16x64xbf16>
    %66 = vector.extract_strided_slice %63 {offsets = [0, 2, 0], sizes = [10, 16, 64], strides = [1, 1, 1]} : vector<10x18x64xbf16> to vector<10x16x64xbf16>
    %67 = tpu.concatenate %64, %65, %66 in 2 : vector<10x16x64xbf16>, vector<10x16x64xbf16>, vector<10x16x64xbf16> -> vector<10x16x192xbf16>
    %68 = vector.shape_cast %67 : vector<10x16x192xbf16> to vector<160x192xbf16>
    %c0_50 = arith.constant 0 : index
    %c0_51 = arith.constant 0 : index
    %c0_52 = arith.constant 0 : index
    %69 = vector.load %arg5[%c0_50, %c0_51, %c0_52] : memref<3x192x128xbf16, #tpu.memory_space<vmem>>, vector<1x192x128xbf16>
    %70 = vector.shape_cast %69 : vector<1x192x128xbf16> to vector<192x128xbf16>
    %cst_53 = arith.constant dense<0.000000e+00> : vector<160x128xf32>
    %71 = tpu.matmul %68, %70, %cst_53 {dimension_numbers = #tpu.dot_dimension_numbers<[1], [0], [0], [1], [0, 0, 1, 1], [], []>} : vector<160x192xbf16>, vector<192x128xbf16>, vector<160x128xf32> -> vector<160x128xf32>
    %72 = vector.broadcast %62 : vector<1x128xf32> to vector<160x128xf32>
    %73 = arith.addf %71, %72 : vector<160x128xf32>
    %c1_54 = arith.constant 1 : index
    %c0_55 = arith.constant 0 : index
    %c0_56 = arith.constant 0 : index
    %74 = vector.load %arg10[%c1_54, %c0_55, %c0_56] : memref<12x18x64xbf16, #tpu.memory_space<vmem>>, vector<10x18x64xbf16>
    %75 = vector.extract_strided_slice %74 {offsets = [0, 0, 0], sizes = [10, 16, 64], strides = [1, 1, 1]} : vector<10x18x64xbf16> to vector<10x16x64xbf16>
    %76 = vector.extract_strided_slice %74 {offsets = [0, 1, 0], sizes = [10, 16, 64], strides = [1, 1, 1]} : vector<10x18x64xbf16> to vector<10x16x64xbf16>
    %77 = vector.extract_strided_slice %74 {offsets = [0, 2, 0], sizes = [10, 16, 64], strides = [1, 1, 1]} : vector<10x18x64xbf16> to vector<10x16x64xbf16>
    %78 = tpu.concatenate %75, %76, %77 in 2 : vector<10x16x64xbf16>, vector<10x16x64xbf16>, vector<10x16x64xbf16> -> vector<10x16x192xbf16>
    %79 = vector.shape_cast %78 : vector<10x16x192xbf16> to vector<160x192xbf16>
    %c1_57 = arith.constant 1 : index
    %c0_58 = arith.constant 0 : index
    %c0_59 = arith.constant 0 : index
    %80 = vector.load %arg5[%c1_57, %c0_58, %c0_59] : memref<3x192x128xbf16, #tpu.memory_space<vmem>>, vector<1x192x128xbf16>
    %81 = vector.shape_cast %80 : vector<1x192x128xbf16> to vector<192x128xbf16>
    %cst_60 = arith.constant dense<0.000000e+00> : vector<160x128xf32>
    %82 = tpu.matmul %79, %81, %cst_60 {dimension_numbers = #tpu.dot_dimension_numbers<[1], [0], [0], [1], [0, 0, 1, 1], [], []>} : vector<160x192xbf16>, vector<192x128xbf16>, vector<160x128xf32> -> vector<160x128xf32>
    %83 = arith.addf %73, %82 : vector<160x128xf32>
    %c2_61 = arith.constant 2 : index
    %c0_62 = arith.constant 0 : index
    %c0_63 = arith.constant 0 : index
    %84 = vector.load %arg10[%c2_61, %c0_62, %c0_63] : memref<12x18x64xbf16, #tpu.memory_space<vmem>>, vector<10x18x64xbf16>
    %85 = vector.extract_strided_slice %84 {offsets = [0, 0, 0], sizes = [10, 16, 64], strides = [1, 1, 1]} : vector<10x18x64xbf16> to vector<10x16x64xbf16>
    %86 = vector.extract_strided_slice %84 {offsets = [0, 1, 0], sizes = [10, 16, 64], strides = [1, 1, 1]} : vector<10x18x64xbf16> to vector<10x16x64xbf16>
    %87 = vector.extract_strided_slice %84 {offsets = [0, 2, 0], sizes = [10, 16, 64], strides = [1, 1, 1]} : vector<10x18x64xbf16> to vector<10x16x64xbf16>
    %88 = tpu.concatenate %85, %86, %87 in 2 : vector<10x16x64xbf16>, vector<10x16x64xbf16>, vector<10x16x64xbf16> -> vector<10x16x192xbf16>
    %89 = vector.shape_cast %88 : vector<10x16x192xbf16> to vector<160x192xbf16>
    %c2_64 = arith.constant 2 : index
    %c0_65 = arith.constant 0 : index
    %c0_66 = arith.constant 0 : index
    %90 = vector.load %arg5[%c2_64, %c0_65, %c0_66] : memref<3x192x128xbf16, #tpu.memory_space<vmem>>, vector<1x192x128xbf16>
    %91 = vector.shape_cast %90 : vector<1x192x128xbf16> to vector<192x128xbf16>
    %cst_67 = arith.constant dense<0.000000e+00> : vector<160x128xf32>
    %92 = tpu.matmul %89, %91, %cst_67 {dimension_numbers = #tpu.dot_dimension_numbers<[1], [0], [0], [1], [0, 0, 1, 1], [], []>} : vector<160x192xbf16>, vector<192x128xbf16>, vector<160x128xf32> -> vector<160x128xf32>
    %93 = arith.addf %83, %92 : vector<160x128xf32>
    %cst_68 = arith.constant 0.000000e+00 : f32
    %94 = vector.broadcast %cst_68 : f32 to vector<160x128xf32>
    %95 = arith.maximumf %93, %94 : vector<160x128xf32>
    %96 = vector.shape_cast %95 : vector<160x128xf32> to vector<10x16x128xf32>
    %97 = tpu.iota {dimensions = array<i32: 0>} : vector<10x1x1xi32>
    %c8_i32_69 = arith.constant 8 : i32
    %98 = arith.muli %arg0, %c8_i32_69 : i32
    %c1_i32 = arith.constant 1 : i32
    %99 = arith.subi %98, %c1_i32 : i32
    %100 = vector.broadcast %99 : i32 to vector<10x1x1xi32>
    %101 = arith.addi %97, %100 : vector<10x1x1xi32>
    %c0_i32_70 = arith.constant 0 : i32
    %102 = vector.broadcast %c0_i32_70 : i32 to vector<10x1x1xi32>
    %103 = arith.cmpi sge, %101, %102 : vector<10x1x1xi32>
    %c16_i32_71 = arith.constant 16 : i32
    %104 = vector.broadcast %c16_i32_71 : i32 to vector<10x1x1xi32>
    %105 = arith.cmpi slt, %101, %104 : vector<10x1x1xi32>
    %106 = arith.andi %103, %105 : vector<10x1x1xi1>
    %cst_72 = arith.constant 0.000000e+00 : f32
    %107 = vector.shape_cast %106 : vector<10x1x1xi1> to vector<10x1x1xi1>
    %108 = vector.broadcast %107 : vector<10x1x1xi1> to vector<10x16x128xi1>
    %109 = vector.broadcast %cst_72 : f32 to vector<10x16x128xf32>
    %110 = arith.select %108, %96, %109 : vector<10x16x128xi1>, vector<10x16x128xf32>
    %111 = arith.truncf %110 : vector<10x16x128xf32> to vector<10x16x128xbf16>
    %c0_73 = arith.constant 0 : index
    %c1_74 = arith.constant 1 : index
    %c0_75 = arith.constant 0 : index
    %112 = vector.load %arg11[%c0_73, %c1_74, %c0_75] : memref<10x18x128xbf16, #tpu.memory_space<vmem>>, vector<10x16x128xbf16>
    tpu.vector_store %arg11[%c0_73, %c1_74, %c0_75], %111 {strides = array<i32>} : memref<10x18x128xbf16, #tpu.memory_space<vmem>>, vector<10x16x128xbf16>,
    %c0_76 = arith.constant 0 : index
    %c0_77 = arith.constant 0 : index
    %113 = vector.load %arg8[%c0_76, %c0_77] : memref<1x3xf32, #tpu.memory_space<vmem>>, vector<1x3xf32>
    %c0_78 = arith.constant 0 : index
    %c0_79 = arith.constant 0 : index
    %c0_80 = arith.constant 0 : index
    %114 = vector.load %arg11[%c0_78, %c0_79, %c0_80] : memref<10x18x128xbf16, #tpu.memory_space<vmem>>, vector<8x18x128xbf16>
    %115 = vector.extract_strided_slice %114 {offsets = [0, 0, 0], sizes = [8, 16, 128], strides = [1, 1, 1]} : vector<8x18x128xbf16> to vector<8x16x128xbf16>
    %116 = vector.extract_strided_slice %114 {offsets = [0, 1, 0], sizes = [8, 16, 128], strides = [1, 1, 1]} : vector<8x18x128xbf16> to vector<8x16x128xbf16>
    %117 = vector.extract_strided_slice %114 {offsets = [0, 2, 0], sizes = [8, 16, 128], strides = [1, 1, 1]} : vector<8x18x128xbf16> to vector<8x16x128xbf16>
    %118 = tpu.concatenate %115, %116, %117 in 2 : vector<8x16x128xbf16>, vector<8x16x128xbf16>, vector<8x16x128xbf16> -> vector<8x16x384xbf16>
    %119 = vector.shape_cast %118 : vector<8x16x384xbf16> to vector<128x384xbf16>
    %c0_81 = arith.constant 0 : index
    %c0_82 = arith.constant 0 : index
    %c0_83 = arith.constant 0 : index
    %120 = vector.load %arg7[%c0_81, %c0_82, %c0_83] : memref<3x384x3xbf16, #tpu.memory_space<vmem>>, vector<1x384x3xbf16>
    %121 = vector.shape_cast %120 : vector<1x384x3xbf16> to vector<384x3xbf16>
    %cst_84 = arith.constant dense<0.000000e+00> : vector<128x3xf32>
    %122 = tpu.matmul %119, %121, %cst_84 {dimension_numbers = #tpu.dot_dimension_numbers<[1], [0], [0], [1], [0, 0, 1, 1], [], []>} : vector<128x384xbf16>, vector<384x3xbf16>, vector<128x3xf32> -> vector<128x3xf32>
    %123 = vector.broadcast %113 : vector<1x3xf32> to vector<128x3xf32>
    %124 = arith.addf %122, %123 : vector<128x3xf32>
    %c1_85 = arith.constant 1 : index
    %c0_86 = arith.constant 0 : index
    %c0_87 = arith.constant 0 : index
    %125 = vector.load %arg11[%c1_85, %c0_86, %c0_87] : memref<10x18x128xbf16, #tpu.memory_space<vmem>>, vector<8x18x128xbf16>
    %126 = vector.extract_strided_slice %125 {offsets = [0, 0, 0], sizes = [8, 16, 128], strides = [1, 1, 1]} : vector<8x18x128xbf16> to vector<8x16x128xbf16>
    %127 = vector.extract_strided_slice %125 {offsets = [0, 1, 0], sizes = [8, 16, 128], strides = [1, 1, 1]} : vector<8x18x128xbf16> to vector<8x16x128xbf16>
    %128 = vector.extract_strided_slice %125 {offsets = [0, 2, 0], sizes = [8, 16, 128], strides = [1, 1, 1]} : vector<8x18x128xbf16> to vector<8x16x128xbf16>
    %129 = tpu.concatenate %126, %127, %128 in 2 : vector<8x16x128xbf16>, vector<8x16x128xbf16>, vector<8x16x128xbf16> -> vector<8x16x384xbf16>
    %130 = vector.shape_cast %129 : vector<8x16x384xbf16> to vector<128x384xbf16>
    %c1_88 = arith.constant 1 : index
    %c0_89 = arith.constant 0 : index
    %c0_90 = arith.constant 0 : index
    %131 = vector.load %arg7[%c1_88, %c0_89, %c0_90] : memref<3x384x3xbf16, #tpu.memory_space<vmem>>, vector<1x384x3xbf16>
    %132 = vector.shape_cast %131 : vector<1x384x3xbf16> to vector<384x3xbf16>
    %cst_91 = arith.constant dense<0.000000e+00> : vector<128x3xf32>
    %133 = tpu.matmul %130, %132, %cst_91 {dimension_numbers = #tpu.dot_dimension_numbers<[1], [0], [0], [1], [0, 0, 1, 1], [], []>} : vector<128x384xbf16>, vector<384x3xbf16>, vector<128x3xf32> -> vector<128x3xf32>
    %134 = arith.addf %124, %133 : vector<128x3xf32>
    %c2_92 = arith.constant 2 : index
    %c0_93 = arith.constant 0 : index
    %c0_94 = arith.constant 0 : index
    %135 = vector.load %arg11[%c2_92, %c0_93, %c0_94] : memref<10x18x128xbf16, #tpu.memory_space<vmem>>, vector<8x18x128xbf16>
    %136 = vector.extract_strided_slice %135 {offsets = [0, 0, 0], sizes = [8, 16, 128], strides = [1, 1, 1]} : vector<8x18x128xbf16> to vector<8x16x128xbf16>
    %137 = vector.extract_strided_slice %135 {offsets = [0, 1, 0], sizes = [8, 16, 128], strides = [1, 1, 1]} : vector<8x18x128xbf16> to vector<8x16x128xbf16>
    %138 = vector.extract_strided_slice %135 {offsets = [0, 2, 0], sizes = [8, 16, 128], strides = [1, 1, 1]} : vector<8x18x128xbf16> to vector<8x16x128xbf16>
    %139 = tpu.concatenate %136, %137, %138 in 2 : vector<8x16x128xbf16>, vector<8x16x128xbf16>, vector<8x16x128xbf16> -> vector<8x16x384xbf16>
    %140 = vector.shape_cast %139 : vector<8x16x384xbf16> to vector<128x384xbf16>
    %c2_95 = arith.constant 2 : index
    %c0_96 = arith.constant 0 : index
    %c0_97 = arith.constant 0 : index
    %141 = vector.load %arg7[%c2_95, %c0_96, %c0_97] : memref<3x384x3xbf16, #tpu.memory_space<vmem>>, vector<1x384x3xbf16>
    %142 = vector.shape_cast %141 : vector<1x384x3xbf16> to vector<384x3xbf16>
    %cst_98 = arith.constant dense<0.000000e+00> : vector<128x3xf32>
    %143 = tpu.matmul %140, %142, %cst_98 {dimension_numbers = #tpu.dot_dimension_numbers<[1], [0], [0], [1], [0, 0, 1, 1], [], []>} : vector<128x384xbf16>, vector<384x3xbf16>, vector<128x3xf32> -> vector<128x3xf32>
    %144 = arith.addf %134, %143 : vector<128x3xf32>
    %145 = vector.shape_cast %144 : vector<128x3xf32> to vector<8x16x3xf32>
    %c0_99 = arith.constant 0 : index
    %c0_100 = arith.constant 0 : index
    %c0_101 = arith.constant 0 : index
    %c0_102 = arith.constant 0 : index
    %c0_103 = arith.constant 0 : index
    %146 = vector.load %arg9[%c0_99, %c0_100, %c0_101, %c0_102, %c0_103] : memref<1x1x8x16x3xf32, #tpu.memory_space<vmem>>, vector<1x1x8x16x3xf32>
    %147 = vector.shape_cast %146 : vector<1x1x8x16x3xf32> to vector<8x16x3xf32>
    %148 = vector.shape_cast %145 : vector<8x16x3xf32> to vector<1x1x8x16x3xf32>
    tpu.vector_store %arg9[%c0_99, %c0_100, %c0_101, %c0_102, %c0_103], %148 {strides = array<i32>} : memref<1x1x8x16x3xf32, #tpu.memory_space<vmem>>, vector<1x1x8x16x3xf32>,
    return
  }
  func.func @transform_0(%arg0: i32, %arg1: i32) -> (i32, i32, i32, i32, i32) {
    %c0_i32 = arith.constant 0 : i32
    %c0_i32_0 = arith.constant 0 : i32
    %c0_i32_1 = arith.constant 0 : i32
    %c0_i32_2 = arith.constant 0 : i32
    return %arg1, %arg0, %c0_i32, %c0_i32_0, %c0_i32_1 : i32, i32, i32, i32, i32
  }
  func.func @transform_1(%arg0: i32, %arg1: i32) -> (i32, i32, i32) {
    %c0_i32 = arith.constant 0 : i32
    %c0_i32_0 = arith.constant 0 : i32
    %c0_i32_1 = arith.constant 0 : i32
    %c0_i32_2 = arith.constant 0 : i32
    return %c0_i32, %c0_i32_0, %c0_i32_1 : i32, i32, i32
  }
  func.func @transform_2(%arg0: i32, %arg1: i32) -> (i32, i32) {
    %c0_i32 = arith.constant 0 : i32
    %c0_i32_0 = arith.constant 0 : i32
    %c0_i32_1 = arith.constant 0 : i32
    return %c0_i32, %c0_i32_0 : i32, i32
  }
  func.func @transform_3(%arg0: i32, %arg1: i32) -> (i32, i32, i32) {
    %c0_i32 = arith.constant 0 : i32
    %c0_i32_0 = arith.constant 0 : i32
    %c0_i32_1 = arith.constant 0 : i32
    %c0_i32_2 = arith.constant 0 : i32
    return %c0_i32, %c0_i32_0, %c0_i32_1 : i32, i32, i32
  }
  func.func @transform_4(%arg0: i32, %arg1: i32) -> (i32, i32) {
    %c0_i32 = arith.constant 0 : i32
    %c0_i32_0 = arith.constant 0 : i32
    %c0_i32_1 = arith.constant 0 : i32
    return %c0_i32, %c0_i32_0 : i32, i32
  }
  func.func @transform_5(%arg0: i32, %arg1: i32) -> (i32, i32, i32) {
    %c0_i32 = arith.constant 0 : i32
    %c0_i32_0 = arith.constant 0 : i32
    %c0_i32_1 = arith.constant 0 : i32
    %c0_i32_2 = arith.constant 0 : i32
    return %c0_i32, %c0_i32_0, %c0_i32_1 : i32, i32, i32
  }
  func.func @transform_6(%arg0: i32, %arg1: i32) -> (i32, i32) {
    %c0_i32 = arith.constant 0 : i32
    %c0_i32_0 = arith.constant 0 : i32
    %c0_i32_1 = arith.constant 0 : i32
    return %c0_i32, %c0_i32_0 : i32, i32
  }
  func.func @transform_7(%arg0: i32, %arg1: i32) -> (i32, i32, i32, i32, i32) {
    %c0_i32 = arith.constant 0 : i32
    %c0_i32_0 = arith.constant 0 : i32
    %c0_i32_1 = arith.constant 0 : i32
    %c0_i32_2 = arith.constant 0 : i32
    return %arg1, %arg0, %c0_i32, %c0_i32_0, %c0_i32_1 : i32, i32, i32, i32, i32
  }
}

</mosaic_0001>

<bundles_post_ra>
// kernel: dip_forward.1
= control target key start
LH: loop header
LB: loop body
LE: loop exit
PB: predicated region body
PF: predicated region fallthrough
CT: control target
= control target key end

     0   :  { %s7965_s24 = smov 0   ;;  %s7967_s25 = smov 0   ;;  %s10561_s0 = inlined_call_operand.vmem [shape: bf16[2,2,14,18,3], index: 0, kind: input, shape index: {}]   ;;  %s10562_s1 = inlined_call_operand.vmem [shape: bf16[3,9,64], index: 1, kind: input, shape index: {}]   ;;  %s10563_s2 = inlined_call_operand.vmem [shape: f32[1,64], index: 2, kind: input, shape index: {}]   ;;  %s10564_s3 = inlined_call_operand.vmem [shape: bf16[3,192,128], index: 3, kind: input, shape index: {}]   ;;  %s10565_s4 = inlined_call_operand.vmem [shape: f32[1,128], index: 4, kind: input, shape index: {}]   ;;  %s10566_s5 = inlined_call_operand.vmem [shape: bf16[3,384,3], index: 5, kind: input, shape index: {}]   ;;  %s10567_s6 = inlined_call_operand.vmem [shape: f32[1,3], index: 6, kind: input, shape index: {}]   ;;  %s10568_s7 = inlined_call_operand.vmem [shape: f32[2,2,8,16,3], index: 7, kind: output, shape index: {}]  }
   0x1   :  { %s7969_s26 = smov 0   ;;  %s7971_s27 = smov 0  }
   0x2   :  { %s7973_s28 = smov 0  }
   0x3 LB: > { %s26_s29 = sadd.s32 1, %s7911_s26  ;;  %s29_s30 = sadd.s32 1, %s7915_s27  ;;  %s7919_s28 = sphi %s7973_s28, %s17_s28   ;;  %s7915_s27 = sphi %s7971_s27, %s10672_s27   ;;  %s7911_s26 = sphi %s7969_s26, %s10671_s26   ;;  %s7907_s25 = sphi %s7967_s25, %s10670_s25   ;;  %s7903_s24 = sphi %s7965_s24, %s10669_s24  }
   0x4   : > { %p27_p0 = scmp.ge.s32.totalorder %s26_s29, 2  ;;  %p6501_p1 = scmp.ge.s32.totalorder %s7919_s28, 1 }
   0x5   : > { %p257_p2 = scmp.lt.s32.totalorder %s7919_s28, 5 }
   0x6   : > { %s10674_s29 = smov (%p27_p0, %s26_s29), 0  ;;  %s10676_s30 = smov (!%p27_p0, %s29_s30), %s7915_s27 }
   0x7   : > { %p258_p3 = pnand %p6501_p1, %p257_p2  ;;  %p31_p4 = scmp.ge.s32.totalorder %s10676_s30, 2 }
   0x9   : > { %s10678_s30 = smov (%p31_p4, %s10676_s30), 0  ;;  %261 = sbr.rel (%p258_p3) target bundleno = 1513 (0x5e9), region = 48 }
   0xe   : > { %p297_p5 = scmp.lt.s32.totalorder %s7903_s24, 1  ;;  %p299_p6 = scmp.lt.s32.totalorder %s7907_s25, 1  ;;  %vm589_vm0 = vsmask.f32 7424  ;;  %vm758_vm1 = vcmask 1046528   ;;  %vm904_vm2 = vcmask 1043456  }
   0xf   : > { %s7921_s16 = smov 3   ;;  %s7922_s17 = smov 6   ;;  %vm905_vm3 = vcmask 1044480   ;;  %vm10569_vm4 = vsmask.f32 7938  ;;  %vm819_vm6 = vcmask 23552  }
  0x10   : > { %s10680_s24 = smov (!%p297_p5, %s7903_s24), 1  ;;  %vm8252_vm5 = vmand %vm904_vm2, %vm10569_vm4  ;;  %vm844_vm7 = vcmask 48128   ;;  %vm879_vm8 = vcmask 72704   ;;  %vm316_vm9 = vcmask 516096   ;;  %vm317_vm10 = vsmask.f32 256 }
  0x11   : > { %s8001_s8 = scalar_select %p299_p6, %s7907_s25, 1  ;;  %vm8602_vm11 = vmand %vm316_vm9, %vm317_vm10 }
  0x12   : > { %s7805_s9 = smul.u32 84, %s10680_s24  ;;  %vm8623_vm12 = vmand %vm316_vm9, %vm10569_vm4  ;;  %s6774_s18 = sshll.u32 %s7907_s25, 3 }
  0x13   : > { %s7804_s10 = smul.u32 42, %s8001_s8  ;;  %s6775_s21 = sadd.s32 4294967294, %s6774_s18 }
  0x14   : > { %s7924_s19 = smov 64   ;;  %s6503_s22 = sshll.u32 %s8001_s8, 4 }
  0x15   : > { %s303_s11 = sadd.s32 %s7805_s9, %s7804_s10 }
  0x16   : > { %s6502_s12 = sshll.u32 %s303_s11, 2 }
  0x17   : > { %s8008_s15 = scalar_lea.vmem %s10561_s0, %s6502_s12 }
  0x18   : > { %v8011_v0 = vld [vmem:[%s8008_s15 + $0x60] sm:$0xff]  ;;  %v483_v1 = vld [vmem:[%s8008_s15 + $0x68] sm:$0x1]  ;;  %v8015_v2 = vld [vmem:[%s8008_s15 + $0x6c] sm:$0xff] }
  0x19   : > { %v573_v3 = vunpack.c.l.b16 %v483_v1  ;;  %v486_v4 = vld [vmem:[%s8008_s15 + $0x74] sm:$0x1]  ;;  %v687_v5 = vshrl.u32 %v8011_v0, 16  ;;  %v689_v6 = vshll.u32 %v8011_v0, 16  ;;  %v699_v9 = vshrl.u32 %v8015_v2, 16  ;;  %v7612_v20 = vld [vmem:[%s8008_s15 + $0x84] sm:$0xff] }
  0x1a   : > { %v574_v7 = vunpack.c.l.b16 %v486_v4  ;;  %v701_v10 = vshll.u32 %v8015_v2, 16  ;;  %v492_v13 = vld [vmem:[%s8008_s15 + $0x8c] sm:$0x1]  ;;  %v7611_v22 = vld [vmem:[%s8008_s15 + $0x78] sm:$0xff]  ;;  %v489_v23 = vld [vmem:[%s8008_s15 + $0x80] sm:$0x1] }
  0x1b   : > { %v585_v8 = vpack.c.b16 %v573_v3, %v573_v3  ;;  %v691_v11 = vrot.slane %v689_v6, 1  ;;  %v576_v21 = vunpack.c.l.b16 %v492_v13  ;;  %v783_v27 = vrot.slane %v8011_v0, 1  ;;  %v459_v37 = vld [vmem:[%s8008_s15 + $0x8] sm:$0x1]  ;;  %v6674_v44 = vld [vmem:[%s8008_s15 + $0x20] sm:$0x1] }
  0x1c   : > { %v586_v12 = vpack.c.b16 %v574_v7, %v574_v7  ;;  %v703_v15 = vrot.slane %v701_v10, 1  ;;  %v575_v29 = vunpack.c.l.b16 %v489_v23  ;;  %v725_v31 = vshll.u32 %v7612_v20, 16  ;;  %v8036_v46 = vld [vmem:[%s8008_s15] sm:$0xff]  ;;  %v7627_v52 = vld [vmem:[%s8008_s15 + $0x18] sm:$0xff]  ;;  %v6572_v57 = vld [vmem:[%s8008_s15 + $0x14] sm:$0x1] }
  0x1d   : > { %v694_v14 = vshll.u32 %v585_v8, 16  ;;  %v692_v16 = vor.u32 %v691_v11, %v687_v5  ;;  %v784_v28 = vrot.slane %v585_v8, 1  ;;  %v588_v30 = vpack.c.b16 %v576_v21, %v576_v21  ;;  %v8050_v3 = vld [vmem:[%s8008_s15 + $0xc] sm:$0xff]  ;;  %v462_v21 = vld [vmem:[%s8008_s15 + $0x14] sm:$0x1] }
  0x1e   : > { %v706_v17 = vshll.u32 %v586_v12, 16  ;;  %v704_v19 = vor.u32 %v703_v15, %v699_v9  ;;  %v711_v32 = vshrl.u32 %v7611_v22, 16  ;;  %v713_v33 = vshll.u32 %v7611_v22, 16 }
  0x1f   : > { %v696_v18 = vrot.slane %v694_v14, 1  ;;  %v786_v34 = vrot.slane %v8015_v2, 1  ;;  %v787_v35 = vrot.slane %v586_v12, 1  ;;  %v587_v36 = vpack.c.b16 %v575_v29, %v575_v29 }
  0x20   : > { %v708_v24 = vrot.slane %v706_v17, 1  ;;  %v715_v38 = vrot.slane %v713_v33, 1  ;;  %v785_v39 = vsel %vm758_vm1, %v783_v27, %v784_v28  ;;  %v723_v40 = vshrl.u32 %v7612_v20, 16  ;;  %v8065_v27 = vld [vmem:[%s8008_s15 + $0xc] sm:$0xff]  ;;  %v7628_v33 = vld [vmem:[%s8008_s15 + $0x24] sm:$0xff] }
  0x21   : > { %v697_v25 = vsel %vm589_vm0, %v692_v16, %v696_v18  ;;  %v718_v41 = vshll.u32 %v587_v36, 16  ;;  %v727_v42 = vrot.slane %v725_v31, 1  ;;  %v730_v43 = vshll.u32 %v588_v30, 16 }
  0x22   : > { %750 = vrot.lane.b32.xlu0 %v697_v25, %s7921_s16  ;;  %v709_v26 = vsel %vm589_vm0, %v704_v19, %v708_v24  ;;  %v716_v45 = vor.u32 %v715_v38, %v711_v32  ;;  %v565_v47 = vunpack.c.l.b16 %v459_v37  ;;  %v788_v48 = vsel %vm758_vm1, %v786_v34, %v787_v35  ;;  %v6575_v37 = vld [vmem:[%s8008_s15 + $0x20] sm:$0x1] }
  0x23   : > { %752 = vrot.lane.b32.xlu1 %v709_v26, %s7921_s16  ;;  %v720_v49 = vrot.slane %v718_v41, 1  ;;  %v792_v50 = vrot.slane %v7612_v20, 1  ;;  %v793_v51 = vrot.slane %v588_v30, 1  ;;  %v1626_v53 = vunpack.c.l.b16 %v6674_v44  ;;  %v6677_v26 = vld [vmem:[%s8008_s15 + $0x2c] sm:$0x1] }
  0x24   : > { %v728_v55 = vor.u32 %v727_v42, %v723_v40  ;;  %v732_v56 = vrot.slane %v730_v43, 1  ;;  %v8045_v58 = vpack.c.b16 %v565_v47, %v565_v47  ;;  %v593_v59 = vshll.u32 %v8036_v46, 16 }
  0x25   : > { %v721_v54 = vsel %vm589_vm0, %v716_v45, %v720_v49  ;;  %v789_v60 = vrot.slane %v7611_v22, 1  ;;  %v790_v61 = vrot.slane %v587_v36, 1  ;;  %v1653_v62 = vshll.u32 %v7627_v52, 16  ;;  %v8082_v45 = vld [vmem:[%s8008_s15 + $0x18] sm:$0xff] }
  0x26   : > { %754 = vrot.lane.b32.xlu2 %v721_v54, %s7921_s16  ;;  %v794_v63 = vsel %vm758_vm1, %v792_v50, %v793_v51  ;;  %v1638_v1 = vpack.c.b16 %v1626_v53, %v1626_v53  ;;  %v1089_v4 = vunpack.c.l.b16 %v6572_v57  ;;  %v733_v5 = vsel %vm589_vm0, %v728_v55, %v732_v56 }
  0x27   : > { %v591_v6 = vshrl.u32 %v8036_v46, 16  ;;  %v595_v7 = vrot.slane %v593_v59, 1  ;;  %v598_v8 = vshll.u32 %v8045_v58, 16  ;;  %v791_v9 = vsel %vm758_vm1, %v789_v60, %v790_v61 }
  0x28   : > { %v1651_v10 = vshrl.u32 %v7627_v52, 16  ;;  %v1655_v11 = vrot.slane %v1653_v62, 1  ;;  %v1658_v12 = vshll.u32 %v1638_v1, 16  ;;  %v1101_v13 = vpack.c.b16 %v1089_v4, %v1089_v4 }
  0x29   : > { %v1116_v14 = vshll.u32 %v8050_v3, 16  ;;  %v1818_v15 = vrot.slane %v7627_v52, 1  ;;  %v1819_v16 = vrot.slane %v1638_v1, 1  ;;  %v596_v17 = vor.u32 %v595_v7, %v591_v6  ;;  %v465_v1 = vld [vmem:[%s8008_s15 + $0x20] sm:$0x1] }
  0x2a   : > { %811 = vrot.lane.b32.xlu0 %v785_v39, %s7922_s17  ;;  %v600_v18 = vrot.slane %v598_v8, 1  ;;  %v1656_v19 = vor.u32 %v1655_v11, %v1651_v10  ;;  %v1660_v20 = vrot.slane %v1658_v12, 1  ;;  %v1114_v22 = vshrl.u32 %v8050_v3, 16  ;;  %v6680_v8 = vld [vmem:[%s8008_s15 + $0x38] sm:$0x1] }
  0x2b   : > { %813 = vrot.lane.b32.xlu1 %v788_v48, %s7922_s17  ;;  %v1118_v23 = vrot.slane %v1116_v14, 1  ;;  %v1121_v24 = vshll.u32 %v1101_v13, 16  ;;  %v1820_v25 = vsel %vm758_vm1, %v1818_v15, %v1819_v16  ;;  %v566_v28 = vunpack.c.l.b16 %v462_v21  ;;  %v8103_v15 = vld [vmem:[%s8008_s15 + $0x30] sm:$0xff] }
  0x2c   : > { %v601_v29 = vsel %vm589_vm0, %v596_v17, %v600_v18  ;;  %v1661_v30 = vsel %vm589_vm0, %v1656_v19, %v1660_v20  ;;  %v1627_v34 = vunpack.c.l.b16 %v6677_v26  ;;  %v1281_v35 = vrot.slane %v8050_v3, 1  ;;  %v6578_v19 = vld [vmem:[%s8008_s15 + $0x2c] sm:$0x1] }
  0x2d   : > { %v1119_v31 = vor.u32 %v1118_v23, %v1114_v22  ;;  %v1123_v32 = vrot.slane %v1121_v24, 1  ;;  %v1282_v36 = vrot.slane %v1101_v13, 1  ;;  %v8075_v38 = vpack.c.b16 %v566_v28, %v566_v28  ;;  %v8117_v28 = vld [vmem:[%s8008_s15 + $0x24] sm:$0xff] }
  0x2e   : > { %815 = vrot.lane.b32.xlu2 %v791_v9, %s7922_s17  ;;  %v605_v39 = vshll.u32 %v8065_v27, 16  ;;  %v759_v40 = vrot.slane %v8036_v46, 1  ;;  %v760_v41 = vrot.slane %v8045_v58, 1  ;;  %v1665_v42 = vshll.u32 %v7628_v33, 16  ;;  %v8097_v9 = vld [vmem:[%s8008_s15 + $0x18] sm:$0xff] }
  0x2f   : > { %v1124_v43 = vsel %vm589_vm0, %v1119_v31, %v1123_v32  ;;  %v1639_v44 = vpack.c.b16 %v1627_v34, %v1627_v34  ;;  %v1090_v47 = vunpack.c.l.b16 %v6575_v37  ;;  %v1283_v48 = vsel %vm758_vm1, %v1281_v35, %v1282_v36 }
  0x30   : > { %v603_v49 = vshrl.u32 %v8065_v27, 16  ;;  %v607_v50 = vrot.slane %v605_v39, 1  ;;  %v610_v51 = vshll.u32 %v8075_v38, 16  ;;  %v761_v52 = vsel %vm758_vm1, %v759_v40, %v760_v41 }
  0x31   : > { %v1663_v53 = vshrl.u32 %v7628_v33, 16  ;;  %v1667_v54 = vrot.slane %v1665_v42, 1  ;;  %v1670_v55 = vshll.u32 %v1639_v44, 16  ;;  %v1102_v56 = vpack.c.b16 %v1090_v47, %v1090_v47 }
  0x32   : > { %756 = vrot.lane.b32.xlu0 %v733_v5, %s7921_s16  ;;  %v1128_v57 = vshll.u32 %v8082_v45, 16  ;;  %v1821_v58 = vrot.slane %v7628_v33, 1  ;;  %v1822_v59 = vrot.slane %v1639_v44, 1  ;;  %v608_v60 = vor.u32 %v607_v50, %v603_v49 }
  0x33   : > { %817 = vrot.lane.b32.xlu1 %v794_v63, %s7922_s17  ;;  %v612_v61 = vrot.slane %v610_v51, 1  ;;  %v1668_v62 = vor.u32 %v1667_v54, %v1663_v53  ;;  %v1672_v63 = vrot.slane %v1670_v55, 1  ;;  %v1126_v4 = vshrl.u32 %v8082_v45, 16  ;;  %v6683_v53 = vld [vmem:[%s8008_s15 + $0x44] sm:$0x1] }
  0x34   : > { %v1130_v5 = vrot.slane %v1128_v57, 1  ;;  %v1133_v6 = vshll.u32 %v1102_v56, 16  ;;  %v1823_v7 = vsel %vm758_vm1, %v1821_v58, %v1822_v59  ;;  %v567_v10 = vunpack.c.l.b16 %v465_v1  ;;  %v8134_v54 = vld [vmem:[%s8008_s15 + $0x24] sm:$0xff]  ;;  %v6581_v1 = vld [vmem:[%s8008_s15 + $0x38] sm:$0x1] }
  0x35   : > { %v613_v11 = vsel %vm589_vm0, %v608_v60, %v612_v61  ;;  %v1673_v12 = vsel %vm589_vm0, %v1668_v62, %v1672_v63  ;;  %v1628_v16 = vunpack.c.l.b16 %v6680_v8  ;;  %v1284_v17 = vrot.slane %v8082_v45, 1  ;;  %v8140_v60 = vld [vmem:[%s8008_s15 + $0x3c] sm:$0xff] }
  0x36   : > { %1794 = vrot.lane.b32.xlu2 %v1661_v30, %s7921_s16  ;;  %v1131_v13 = vor.u32 %v1130_v5, %v1126_v4  ;;  %v1135_v14 = vrot.slane %v1133_v6, 1  ;;  %v1285_v18 = vrot.slane %v1102_v56, 1  ;;  %v8109_v20 = vpack.c.b16 %v567_v10, %v567_v10 }
  0x37   : > { %v617_v21 = vshll.u32 %v8097_v9, 16  ;;  %v762_v22 = vrot.slane %v8065_v27, 1  ;;  %v763_v23 = vrot.slane %v8075_v38, 1  ;;  %v1677_v24 = vshll.u32 %v8103_v15, 16 }
  0x38   : > { %v1640_v26 = vpack.c.b16 %v1628_v16, %v1628_v16  ;;  %v1286_v30 = vsel %vm758_vm1, %v1284_v17, %v1285_v18  ;;  %v615_v31 = vshrl.u32 %v8097_v9, 16  ;;  %v622_v33 = vshll.u32 %v8109_v20, 16 }
  0x39   : > { %v619_v32 = vrot.slane %v617_v21, 1  ;;  %v764_v34 = vsel %vm758_vm1, %v762_v22, %v763_v23  ;;  %v1675_v35 = vshrl.u32 %v8103_v15, 16  ;;  %v1679_v36 = vrot.slane %v1677_v24, 1 }
  0x3a   : > { %1854 = vrot.lane.b32.xlu0 %v1820_v25, %s7922_s17  ;;  %v1136_v25 = vsel %vm589_vm0, %v1131_v13, %v1135_v14  ;;  %v1682_v37 = vshll.u32 %v1640_v26, 16  ;;  %v1140_v39 = vshll.u32 %v8117_v28, 16  ;;  %v1824_v40 = vrot.slane %v8103_v15, 1 }
  0x3b   : > { %734 = vrot.lane.b32.xlu1 %v601_v29, %s7921_s16  ;;  %v1091_v29 = vunpack.c.l.b16 %v6578_v19  ;;  %v1825_v41 = vrot.slane %v1640_v26, 1  ;;  %v620_v42 = vor.u32 %v619_v32, %v615_v31  ;;  %v1680_v44 = vor.u32 %v1679_v36, %v1675_v35 }
  0x3c   : > { %v1684_v47 = vrot.slane %v1682_v37, 1  ;;  %v1138_v49 = vshrl.u32 %v8117_v28, 16  ;;  %v1142_v50 = vrot.slane %v1140_v39, 1  ;;  %v1629_v61 = vunpack.c.l.b16 %v6683_v53  ;;  %v8171_v39 = vld [vmem:[%s8008_s15 + $0x30] sm:$0xff] }
  0x3d   : > { %v1103_v38 = vpack.c.b16 %v1091_v29, %v1091_v29  ;;  %v1287_v62 = vrot.slane %v8117_v28, 1  ;;  %v629_v5 = vshll.u32 %v8134_v54, 16  ;;  %v765_v6 = vrot.slane %v8097_v9, 1 }
  0x3e   : > { %795 = vrot.lane.b32.xlu2 %v761_v52, %s7922_s17  ;;  %v1826_v52 = vsel %vm758_vm1, %v1824_v40, %v1825_v41  ;;  %v1685_v57 = vsel %vm589_vm0, %v1680_v44, %v1684_v47  ;;  %v1143_v58 = vor.u32 %v1142_v50, %v1138_v49  ;;  %v1689_v8 = vshll.u32 %v8140_v60, 16  ;;  %v8177_v47 = vld [vmem:[%s8008_s15 + $0x48] sm:$0xff]  ;;  %v6584_v49 = vld [vmem:[%s8008_s15 + $0x44] sm:$0x1] }
  0x3f   : > { %v1145_v51 = vshll.u32 %v1103_v38, 16  ;;  %v1288_v63 = vrot.slane %v1103_v38, 1  ;;  %v1092_v13 = vunpack.c.l.b16 %v6581_v1  ;;  %v627_v16 = vshrl.u32 %v8134_v54, 16  ;;  %v6686_v38 = vld [vmem:[%s8008_s15 + $0x50] sm:$0x1] }
  0x40   : > { %v631_v17 = vrot.slane %v629_v5, 1  ;;  %v1691_v21 = vrot.slane %v1689_v8, 1  ;;  %v641_v53 = vshll.u32 %v8171_v39, 16  ;;  %v639_v1 = vshrl.u32 %v8171_v39, 16 }
  0x41   : > { %v1147_v59 = vrot.slane %v1145_v51, 1  ;;  %v1289_v14 = vsel %vm758_vm1, %v1287_v62, %v1288_v63  ;;  %v1104_v23 = vpack.c.b16 %v1092_v13, %v1092_v13 }
  0x42   : > { %1257 = vrot.lane.b32.xlu0 %v1124_v43, %s7921_s16  ;;  %v624_v43 = vrot.slane %v622_v33, 1  ;;  %v632_v29 = vor.u32 %v631_v17, %v627_v16  ;;  %v471_v33 = vld [vmem:[%s8008_s15 + $0x38] sm:$0x1]  ;;  %v643_v5 = vrot.slane %v641_v53, 1 }
  0x43   : > { %1317 = vrot.lane.b32.xlu1 %v1283_v48, %s7922_s17  ;;  %v468_v48 = vld [vmem:[%s8008_s15 + $0x2c] sm:$0x1]  ;;  %v1148_v10 = vsel %vm589_vm0, %v1143_v58, %v1147_v59  ;;  %v1157_v36 = vshll.u32 %v1104_v23, 16  ;;  %v569_v40 = vunpack.c.l.b16 %v471_v33  ;;  %v1291_v51 = vrot.slane %v1104_v23, 1  ;;  %v8190_v58 = vld [vmem:[%s8008_s15 + $0x3c] sm:$0xff] }
  0x44   : > { %v568_v55 = vunpack.c.l.b16 %v468_v48  ;;  %v625_v56 = vsel %vm589_vm0, %v620_v42, %v624_v43  ;;  %v1630_v48 = vunpack.c.l.b16 %v6686_v38  ;;  %v1093_v59 = vunpack.c.l.b16 %v6584_v49  ;;  %v6587_v49 = vld [vmem:[%s8008_s15 + $0x50] sm:$0x1] }
  0x45   : > { %v1159_v44 = vrot.slane %v1157_v36, 1  ;;  %v1164_v13 = vshll.u32 %v8190_v58, 16  ;;  %v644_v17 = vor.u32 %v643_v5, %v639_v1  ;;  %v7923_v36 = vmov 65535  }
  0x46   : > { %1796 = vrot.lane.b32.xlu2 %v1673_v12, %s7921_s16  ;;  %v8146_v4 = vpack.c.b16 %v568_v55, %v568_v55  ;;  %v8154_v12 = vld [vmem:[%s8008_s15 + $0x30] sm:$0xff]  ;;  %v768_v55 = vrot.slane %v8134_v54, 1  ;;  %v1642_v62 = vpack.c.b16 %v1630_v48, %v1630_v48  ;;  %v1094_v1 = vunpack.c.l.b16 %v6587_v49 }
  0x47   : > { %v1152_v24 = vshll.u32 %v8154_v12, 16  ;;  %v1290_v50 = vrot.slane %v8154_v12, 1  ;;  %v1166_v23 = vrot.slane %v1164_v13, 1 }
  0x48   : > { %v634_v18 = vshll.u32 %v8146_v4, 16  ;;  %v1831_v16 = vrot.slane %v1642_v62, 1 }
  0x49   : > { %v1154_v35 = vrot.slane %v1152_v24, 1  ;;  %v1292_v63 = vsel %vm758_vm1, %v1290_v50, %v1291_v51 }
  0x4a   : > { %1856 = vrot.lane.b32.xlu0 %v1823_v7, %s7922_s17  ;;  %v766_v7 = vrot.slane %v8109_v20, 1  ;;  %v1687_v20 = vshrl.u32 %v8140_v60, 16 }
  0x4b   : > { %736 = vrot.lane.b32.xlu1 %v613_v11, %s7921_s16  ;;  %v1641_v11 = vpack.c.b16 %v1629_v61, %v1629_v61 }
  0x4c   : > { %v767_v19 = vsel %vm758_vm1, %v765_v6, %v766_v7  ;;  %v1692_v31 = vor.u32 %v1691_v21, %v1687_v20  ;;  %v474_v21 = vld [vmem:[%s8008_s15 + $0x44] sm:$0x1] }
  0x4d   : > { %v1694_v22 = vshll.u32 %v1641_v11, 16  ;;  %v1828_v26 = vrot.slane %v1641_v11, 1  ;;  %v1105_v11 = vpack.c.b16 %v1093_v59, %v1093_v59  ;;  %v570_v33 = vunpack.c.l.b16 %v474_v21 }
  0x4e   : > { %797 = vrot.lane.b32.xlu2 %v764_v34, %s7922_s17  ;;  %v1150_v34 = vshrl.u32 %v8154_v12, 16 }
  0x4f   : > { %v1696_v32 = vrot.slane %v1694_v22, 1  ;;  %v1162_v22 = vshrl.u32 %v8190_v58, 16  ;;  %v1169_v24 = vshll.u32 %v1105_v11, 16  ;;  %v1294_v48 = vrot.slane %v1105_v11, 1 }
  0x50   : > { %v1155_v43 = vor.u32 %v1154_v35, %v1150_v34  ;;  %v8229_v50 = vpack.c.b16 %v570_v33, %v570_v33  ;;  %v10582_v11 = vmov 0 }
  0x51   : > { %v1697_v42 = vsel %vm589_vm0, %v1692_v31, %v1696_v32  ;;  %v6689_v31 = vld [vmem:[%s8008_s15 + $0x5c] sm:$0x1]  ;;  %v1167_v38 = vor.u32 %v1166_v23, %v1162_v22  ;;  %v10583_v11 = vsel %vm8252_vm5, 4294967295, %v10582_v11 }
  0x52   : > { %1259 = vrot.lane.b32.xlu0 %v1136_v25, %s7921_s16  ;;  %v1827_v25 = vrot.slane %v8140_v60, 1  ;;  %v1160_v61 = vsel %vm589_vm0, %v1155_v43, %v1159_v44  ;;  %v8215_v32 = vld [vmem:[%s8008_s15 + $0x3c] sm:$0xff]  ;;  %v1631_v43 = vunpack.c.l.b16 %v6689_v31  ;;  %v1293_v44 = vrot.slane %v8190_v58, 1  ;;  %10584 = vst [vmem:[#allocation4_spill] sm:$0xff] %v10583_v11 }
  0x53   : > { %1319 = vrot.lane.b32.xlu1 %v1286_v30, %s7922_s17  ;;  %v636_v30 = vrot.slane %v634_v18, 1  ;;  %v653_v51 = vshll.u32 %v8215_v32, 16  ;;  %v651_v5 = vshrl.u32 %v8215_v32, 16 }
  0x54   : > { %v1829_v37 = vsel %vm758_vm1, %v1827_v25, %v1828_v26  ;;  %v6556_v25 = vld [vmem:[%s10562_s1] sm:$0xf]  ;;  %v7613_v26 = vld [vmem:[%s10562_s1] sm:$0x10] }
  0x55   : > { %v637_v41 = vsel %vm589_vm0, %v632_v29, %v636_v30  ;;  %v6557_v35 = vor.u32 %v7613_v26, %v6556_v25  ;;  %v477_v26 = vld [vmem:[%s8008_s15 + $0x50] sm:$0x1] }
  0x56   : > { %1798 = vrot.lane.b32.xlu2 %v1685_v57, %s7921_s16  ;;  %v1701_v57 = vshll.u32 %v8177_v47, 16 }
  0x58   : > { %v1703_v8 = vrot.slane %v1701_v57, 1 }
  0x5a   : > { %1858 = vrot.lane.b32.xlu0 %v1826_v52, %s7922_s17  ;;  %v8183_v52 = vpack.c.b16 %v569_v40, %v569_v40  ;;  %v1171_v40 = vrot.slane %v1169_v24, 1 }
  0x5b   : > { %738 = vrot.lane.b32.xlu1 %v625_v56, %s7921_s16  ;;  %v769_v56 = vrot.slane %v8146_v4, 1  ;;  %v1699_v4 = vshrl.u32 %v8177_v47, 16 }
  0x5c   : > { %v646_v6 = vshll.u32 %v8183_v52, 16  ;;  %v1172_v59 = vsel %vm589_vm0, %v1167_v38, %v1171_v40 }
  0x5d   : > { %v770_v7 = vsel %vm758_vm1, %v768_v55, %v769_v56  ;;  %v771_v55 = vrot.slane %v8171_v39, 1  ;;  %v772_v56 = vrot.slane %v8183_v52, 1  ;;  %v7639_v52 = vld [vmem:[%s10562_s1 + $0x10] sm:$0x10] }
  0x5e   : > { %799 = vrot.lane.b32.xlu2 %v767_v19, %s7922_s17  ;;  %v648_v18 = vrot.slane %v646_v6, 1  ;;  %v1704_v19 = vor.u32 %v1703_v8, %v1699_v4  ;;  %v6760_v6 = vld [vmem:[%s10562_s1 + $0x10] sm:$0xf]  ;;  %v658_v4 = vshll.u32 %v8229_v50, 16 }
  0x5f   : > { %v6761_v8 = vor.u32 %v7639_v52, %v6760_v6 }
  0x60   : > { %v649_v30 = vsel %vm589_vm0, %v644_v17, %v648_v18  ;;  %v1106_v18 = vpack.c.b16 %v1094_v1, %v1094_v1  ;;  %v660_v23 = vrot.slane %v658_v4, 1 }
  0x62   : > { %1261 = vrot.lane.b32.xlu0 %v1148_v10, %s7921_s16  ;;  %v1706_v10 = vshll.u32 %v1642_v62, 16  ;;  %v1295_v62 = vsel %vm758_vm1, %v1293_v44, %v1294_v48  ;;  %v1181_v33 = vshll.u32 %v1106_v18, 16  ;;  %v8276_v48 = vld [vmem:[%s8008_s15 + $0x60] sm:$0xff] }
  0x63   : > { %1321 = vrot.lane.b32.xlu1 %v1289_v14, %s7922_s17  ;;  %v1830_v14 = vrot.slane %v8177_v47, 1 }
  0x64   : > { %v1708_v20 = vrot.slane %v1706_v10, 1  ;;  %v773_v10 = vsel %vm758_vm1, %v771_v55, %v772_v56  ;;  %v1183_v44 = vrot.slane %v1181_v33, 1  ;;  %v1297_v55 = vrot.slane %v1106_v18, 1 }
  0x65   : > { %v1832_v29 = vsel %vm758_vm1, %v1830_v14, %v1831_v16 }
  0x66   : > { %1800 = vrot.lane.b32.xlu2 %v1697_v42, %s7921_s16  ;;  %v1709_v34 = vsel %vm589_vm0, %v1704_v19, %v1708_v20  ;;  %v8223_v42 = vld [vmem:[%s8008_s15 + $0x54] sm:$0xff] }
  0x67   : > { %v1713_v57 = vshll.u32 %v8223_v42, 16  ;;  %v1711_v13 = vshrl.u32 %v8223_v42, 16  ;;  %v1833_v20 = vrot.slane %v8223_v42, 1 }
  0x69   : > { %v1715_v14 = vrot.slane %v1713_v57, 1 }
  0x6a   : > { %1860 = vrot.lane.b32.xlu0 %v1829_v37, %s7922_s17  ;;  %v906_v37 = vsel %vm904_vm2, 4294967295, %v7923_v36  ;;  %v8270_v36 = vld [vmem:[%s8008_s15 + $0x48] sm:$0xff]  ;;  %vm2442_vm2 = vcmask 519168  }
  0x6b   : > { %740 = vrot.lane.b32.xlu1 %v637_v41, %s7921_s16  ;;  %v8219_v41 = vsel %vm905_vm3, %v906_v37, 0  ;;  %v1716_v24 = vor.u32 %v1715_v14, %v1711_v13  ;;  %v571_v37 = vunpack.c.l.b16 %v477_v26  ;;  %v665_v57 = vshll.u32 %v8270_v36, 16  ;;  %vm8695_vm3 = vmand %vm2442_vm2, %vm10569_vm4 }
  0x6c   : > { %v909_v53 = vand.u32 %v6557_v35, %v8219_v41  ;;  %v1959_v17 = vand.u32 %v6761_v8, %v8219_v41  ;;  %v6692_v35 = vld [vmem:[%s8008_s15 + $0x68] sm:$0x1]  ;;  %v663_v8 = vshrl.u32 %v8270_v36, 16 }
  0x6d   : > { %v1632_v49 = vunpack.c.l.b16 %v6692_v35  ;;  %v8282_v56 = vpack.c.b16 %v571_v37, %v571_v37 }
  0x6e   : > { %801 = vrot.lane.b32.xlu2 %v770_v7, %s7922_s17  ;;  %7802 = vmatpush.bf16.msra.mxu2 %v909_v53  ;;  %v655_v7 = vrot.slane %v653_v51, 1  ;;  %v6590_v51 = vld [vmem:[%s8008_s15 + $0x5c] sm:$0x1] }
  0x6f   : > { %918 = vmatpush.bf16.msra.mxu0 %v909_v53  ;;  %v1095_v1 = vunpack.c.l.b16 %v6590_v51  ;;  %v1644_v52 = vpack.c.b16 %v1632_v49, %v1632_v49  ;;  %v670_v13 = vshll.u32 %v8282_v56, 16 }
  0x70   : > { %v656_v22 = vor.u32 %v655_v7, %v651_v5  ;;  %v8292_v7 = vld [vmem:[%s8008_s15 + $0x54] sm:$0xff] }
  0x71   : > { %v1107_v18 = vpack.c.b16 %v1095_v1, %v1095_v1  ;;  %v1186_v35 = vshrl.u32 %v8292_v7, 16  ;;  %v6593_v1 = vld [vmem:[%s8008_s15 + $0x68] sm:$0x1] }
  0x72   : > { %1263 = vrot.lane.b32.xlu0 %v1160_v61, %s7921_s16  ;;  %v1643_v61 = vpack.c.b16 %v1631_v43, %v1631_v43  ;;  %1968 = vmatpush.bf16.msrb.mxu2 %v1959_v17  ;;  %v661_v38 = vsel %vm589_vm0, %v656_v22, %v660_v23  ;;  %v1730_v17 = vshll.u32 %v1644_v52, 16 }
  0x73   : > { %1323 = vrot.lane.b32.xlu1 %v1292_v63, %s7922_s17  ;;  %v8239_v63 = vld [vmem:[%s8008_s15 + $0x48] sm:$0xff]  ;;  %v1193_v33 = vshll.u32 %v1107_v18, 16 }
  0x74   : > { %v1718_v16 = vshll.u32 %v1643_v61, 16  ;;  %v1176_v19 = vshll.u32 %v8239_v63, 16  ;;  %v1834_v21 = vrot.slane %v1643_v61, 1  ;;  %v1296_v53 = vrot.slane %v8239_v63, 1 }
  0x75   : > { %v775_v61 = vrot.slane %v8229_v50, 1  ;;  %v1723_v50 = vshrl.u32 %v8276_v48, 16  ;;  %v1732_v26 = vrot.slane %v1730_v17, 1 }
  0x76   : > { %1802 = vrot.lane.b32.xlu2 %v1709_v34, %s7921_s16  ;;  %v1720_v25 = vrot.slane %v1718_v16, 1  ;;  %v1178_v31 = vrot.slane %v1176_v19, 1  ;;  %v1835_v34 = vsel %vm758_vm1, %v1833_v20, %v1834_v21  ;;  %v1298_v4 = vsel %vm758_vm1, %v1296_v53, %v1297_v55 }
  0x77   : > { %v1188_v19 = vshll.u32 %v8292_v7, 16  ;;  %v1836_v20 = vrot.slane %v8276_v48, 1  ;;  %v1837_v21 = vrot.slane %v1644_v52, 1  ;;  %v1195_v53 = vrot.slane %v1193_v33, 1 }
  0x78   : > { %v1721_v40 = vsel %vm589_vm0, %v1716_v24, %v1720_v25  ;;  %v672_v24 = vrot.slane %v670_v13, 1  ;;  %v777_v13 = vrot.slane %v8270_v36, 1 }
  0x79   : > { %v1190_v37 = vrot.slane %v1188_v19, 1 }
  0x7a   : > { %1862 = vrot.lane.b32.xlu0 %v1832_v29, %s7922_s17 }
  0x7b   : > { %742 = vrot.lane.b32.xlu1 %v649_v30, %s7921_s16  ;;  %v1174_v30 = vshrl.u32 %v8239_v63, 16  ;;  %v1191_v55 = vor.u32 %v1190_v37, %v1186_v35 }
  0x7d   : > { %v1179_v43 = vor.u32 %v1178_v31, %v1174_v30  ;;  %v480_v30 = vld [vmem:[%s8008_s15 + $0x5c] sm:$0x1] }
  0x7e   : > { %803 = vrot.lane.b32.xlu2 %v773_v10, %s7922_s17  ;;  %v667_v10 = vrot.slane %v665_v57, 1  ;;  %v8319_v57 = vld [vmem:[%s8008_s15 + $0x6c] sm:$0xff] }
  0x7f   : > { %v1184_v6 = vsel %vm589_vm0, %v1179_v43, %v1183_v44  ;;  %v8313_v43 = vld [vmem:[%s8008_s15 + $0x54] sm:$0xff]  ;;  %v572_v44 = vunpack.c.l.b16 %v480_v30  ;;  %v1839_v37 = vrot.slane %v8319_v57, 1 }
  0x80   : > { %v8264_v29 = vpop.permute.xlu2 %754  ;;  %v668_v23 = vor.u32 %v667_v10, %v663_v8 }
  0x81   : > { %v8328_v52 = vpack.c.b16 %v572_v44, %v572_v44 }
  0x82   : > { %1265 = vrot.lane.b32.xlu0 %v1172_v59, %s7921_s16  ;;  %v774_v59 = vrot.slane %v8215_v32, 1  ;;  %v673_v49 = vsel %vm589_vm0, %v668_v23, %v672_v24  ;;  %v675_v23 = vshrl.u32 %v8313_v43, 16 }
  0x83   : > { %1325 = vrot.lane.b32.xlu1 %v1295_v62, %s7922_s17  ;;  %v1725_v62 = vshll.u32 %v8276_v48, 16  ;;  %v682_v24 = vshll.u32 %v8328_v52, 16 }
  0x84   : > { %v776_v14 = vsel %vm758_vm1, %v774_v59, %v775_v61  ;;  %v1299_v61 = vrot.slane %v8292_v7, 1 }
  0x85   : > { %v1727_v16 = vrot.slane %v1725_v62, 1  ;;  %v1300_v62 = vrot.slane %v1107_v18, 1  ;;  %v1096_v18 = vunpack.c.l.b16 %v6593_v1 }
  0x86   : > { %1804 = vrot.lane.b32.xlu2 %v1721_v40, %s7921_s16  ;;  %v6695_v40 = vld [vmem:[%s8008_s15 + $0x74] sm:$0x1] }
  0x87   : > { %v1728_v25 = vor.u32 %v1727_v16, %v1723_v50  ;;  %v1633_v59 = vunpack.c.l.b16 %v6695_v40  ;;  %v1737_v50 = vshll.u32 %v8319_v57, 16  ;;  %v1108_v35 = vpack.c.b16 %v1096_v18, %v1096_v18 }
  0x88   : > { %v8288_v5 = vpop.permute.xlu2 %815 }
  0x89   : > { %v1733_v51 = vsel %vm589_vm0, %v1728_v25, %v1732_v26  ;;  %v1735_v26 = vshrl.u32 %v8319_v57, 16  ;;  %v1739_v30 = vrot.slane %v1737_v50, 1  ;;  %v1205_v1 = vshll.u32 %v1108_v35, 16 }
  0x8a   : > { %1864 = vrot.lane.b32.xlu0 %v1835_v34, %s7922_s17 }
  0x8b   : > { %744 = vrot.lane.b32.xlu1 %v661_v38, %s7921_s16  ;;  %v1838_v38 = vsel %vm758_vm1, %v1836_v20, %v1837_v21  ;;  %v1196_v20 = vsel %vm589_vm0, %v1191_v55, %v1195_v53  ;;  %v1645_v21 = vpack.c.b16 %v1633_v59, %v1633_v59  ;;  %v684_v53 = vrot.slane %v682_v24, 1 }
  0x8c   : > { %v1740_v55 = vor.u32 %v1739_v30, %v1735_v26  ;;  %v780_v26 = vrot.slane %v8313_v43, 1  ;;  %v781_v30 = vrot.slane %v8328_v52, 1  ;;  %v6658_v52 = vld [vmem:[%s10562_s1 + $0x8] sm:$0xf] }
  0x8d   : > { %v1742_v33 = vshll.u32 %v1645_v21, 16 }
  0x8e   : > { %805 = vrot.lane.b32.xlu2 %v776_v14, %s7922_s17  ;;  %v778_v14 = vrot.slane %v8282_v56, 1 }
  0x8f   : > { %v1744_v59 = vrot.slane %v1742_v33, 1 }
  0x90   : > { %v8307_v34 = vpop.permute.xlu2 %1794  ;;  %v779_v25 = vsel %vm758_vm1, %v777_v13, %v778_v14 }
  0x91   : > { %v1745_v18 = vsel %vm589_vm0, %v1740_v55, %v1744_v59 }
  0x92   : > { %1267 = vrot.lane.b32.xlu0 %v1184_v6, %s7921_s16  ;;  %v8326_v6 = vld [vmem:[%s8008_s15 + $0x60] sm:$0xff] }
  0x93   : > { %1327 = vrot.lane.b32.xlu1 %v1298_v4, %s7922_s17  ;;  %v677_v4 = vshll.u32 %v8313_v43, 16  ;;  %v1198_v40 = vshrl.u32 %v8326_v6, 16 }
  0x94   : > { %v751_v22 = vpop.permute.xlu0 %750 }
  0x95   : > { %v8305_v31 = vpop.permute.xlu1 %752  ;;  %v837_v8 = vsel %vm819_vm6, %v8011_v0, %v751_v22  ;;  %v1301_v0 = vsel %vm758_vm1, %v1299_v61, %v1300_v62  ;;  %v1200_v22 = vshll.u32 %v8326_v6, 16  ;;  %v679_v56 = vrot.slane %v677_v4, 1  ;;  %v6698_v61 = vld [vmem:[%s8008_s15 + $0x80] sm:$0x1] }
  0x96   : > { %1806 = vrot.lane.b32.xlu2 %v1733_v51, %s7921_s16  ;;  %v1634_v14 = vunpack.c.l.b16 %v6698_v61 }
  0x97   : > { %v1202_v44 = vrot.slane %v1200_v22, 1  ;;  %v680_v51 = vor.u32 %v679_v56, %v675_v23  ;;  %v1303_v22 = vrot.slane %v1108_v35, 1  ;;  %v839_v23 = vsel %vm819_vm6, %v8015_v2, %v8305_v31  ;;  %v8372_v56 = vld [vmem:[%s8008_s15 + $0x6c] sm:$0xff]  ;;  %v6599_v35 = vld [vmem:[%s8008_s15 + $0x80] sm:$0x1] }
  0x98   : > { %v8337_v19 = vpop.permute.xlu2 %795  ;;  %v1212_v2 = vshll.u32 %v8372_v56, 16 }
  0x99   : > { %v1203_v50 = vor.u32 %v1202_v44, %v1198_v40 }
  0x9a   : > { %1866 = vrot.lane.b32.xlu0 %v1838_v38, %s7922_s17  ;;  %v1840_v38 = vrot.slane %v1645_v21, 1 }
  0x9b   : > { %746 = vrot.lane.b32.xlu1 %v673_v49, %s7921_s16 }
  0x9c   : > { %v812_v10 = vpop.permute.xlu0 %811  ;;  %v1841_v13 = vsel %vm758_vm1, %v1839_v37, %v1840_v38 }
  0x9d   : > { %v862_v16 = vsel %vm844_vm7, %v837_v8, %v812_v10  ;;  %v814_v17 = vpop.permute.xlu1 %813  ;;  %v6596_v8 = vld [vmem:[%s8008_s15 + $0x74] sm:$0x1]  ;;  %v8361_v10 = vld [vmem:[%s8008_s15 + $0x78] sm:$0xff] }
  0x9e   : > { %6566 = vmatmul.msk.bf16.vlgmr.msra.gmra.mxu2 %vm879_vm8, %v862_v16  ;;  %807 = vrot.lane.b32.xlu2 %v779_v25, %s7922_s17  ;;  %v685_v16 = vsel %vm589_vm0, %v680_v51, %v684_v53  ;;  %v1097_v21 = vunpack.c.l.b16 %v6596_v8  ;;  %v1749_v24 = vshll.u32 %v8361_v10, 16  ;;  %v8377_v25 = vpack.c.b16 %v1634_v14, %v1634_v14  ;;  %v7626_v53 = vld [vmem:[%s10562_s1 + $0x8] sm:$0x10]  ;;  %v8402_v8 = vld [vmem:[%s8008_s15 + $0x78] sm:$0xff] }
  0x9f   : > { %v864_v31 = vsel %vm844_vm7, %v839_v23, %v814_v17  ;;  %v1747_v55 = vshrl.u32 %v8361_v10, 16  ;;  %v6659_v61 = vor.u32 %v7626_v53, %v6658_v52  ;;  %v782_v14 = vsel %vm758_vm1, %v780_v26, %v781_v30 }
  0xa0   : > { %v8357_v4 = vpop.permute.xlu2 %1796  ;;  %v1109_v40 = vpack.c.b16 %v1097_v21, %v1097_v21  ;;  %v1751_v59 = vrot.slane %v1749_v24, 1  ;;  %v1305_v21 = vrot.slane %v8372_v56, 1 }
  0xa2   : > { %1269 = vrot.lane.b32.xlu0 %v1196_v20, %s7921_s16  ;;  %v1207_v20 = vrot.slane %v1205_v1, 1  ;;  %v1754_v1 = vshll.u32 %v8377_v25, 16  ;;  %v1752_v24 = vor.u32 %v1751_v59, %v1747_v55  ;;  %v8427_v59 = vld [vmem:[%s8008_s15 + $0x84] sm:$0xff] }
  0xa3   : > { %1329 = vrot.lane.b32.xlu1 %v1301_v0, %s7922_s17  ;;  %v1302_v0 = vrot.slane %v8326_v6, 1 }
  0xa4   : > { %v8352_v49 = vpop.permute.xlu0 %756  ;;  %v1208_v37 = vsel %vm589_vm0, %v1203_v50, %v1207_v20  ;;  %v1217_v20 = vshll.u32 %v1109_v40, 16  ;;  %v1756_v26 = vrot.slane %v1754_v1, 1  ;;  %v7853_v1 = vld [vmem:[%s8008_s15 + $0x78] sm:$0xff] }
  0xa5   : > { %v8355_v62 = vpop.permute.xlu1 %817  ;;  %v1304_v44 = vsel %vm758_vm1, %v1302_v0, %v1303_v22  ;;  %v1306_v0 = vrot.slane %v1109_v40, 1 }
  0xa6   : > { %1808 = vrot.lane.b32.xlu2 %v1745_v18, %s7921_s16  ;;  %v1214_v18 = vrot.slane %v1212_v2, 1  ;;  %v1219_v30 = vrot.slane %v1217_v20, 1 }
  0xa7   : > { %v1307_v40 = vsel %vm758_vm1, %v1305_v21, %v1306_v0 }
  0xa8   : > { %v8388_v51 = vpop.permute.xlu2 %797 }
  0xaa   : > { %1868 = vrot.lane.b32.xlu0 %v1841_v13, %s7922_s17  ;;  %v1098_v13 = vunpack.c.l.b16 %v6599_v35 }
  0xab   : > { %748 = vrot.lane.b32.xlu1 %v685_v16, %s7921_s16  ;;  %v1210_v16 = vshrl.u32 %v8372_v56, 16 }
  0xac   : > { %v8381_v33 = vpop.permute.xlu0 %1854  ;;  %v1110_v22 = vpack.c.b16 %v1098_v13, %v1098_v13  ;;  %v841_v13 = vsel %vm819_vm6, %v7853_v1, %v8264_v29  ;;  %v1236_v29 = vshll.u32 %v8427_v59, 16 }
  0xad   : > { %v735_v38 = vpop.permute.xlu1 %734  ;;  %v866_v0 = vsel %vm844_vm7, %v841_v13, %v8288_v5  ;;  %v1843_v5 = vrot.slane %v8377_v25, 1 }
  0xae   : > { %6567 = vmatmul.msk.bf16.gmra.mxu2 %vm879_vm8, %v864_v31  ;;  %v821_v17 = vsel %vm819_vm6, %v8036_v46, %v735_v38  ;;  %v1422_v46 = vand.u32 %v6659_v61, %v8219_v41  ;;  %809 = vrot.lane.b32.xlu2 %v782_v14, %s7922_s17  ;;  %v1215_v41 = vor.u32 %v1214_v18, %v1210_v16  ;;  %v1229_v53 = vshll.u32 %v1110_v22, 16  ;;  %v6701_v61 = vld [vmem:[%s8008_s15 + $0x8c] sm:$0x1] }
  0xaf   : > { %v846_v50 = vsel %vm844_vm7, %v821_v17, %v8337_v19  ;;  %v1224_v19 = vshll.u32 %v8402_v8, 16  ;;  %v1757_v17 = vsel %vm589_vm0, %v1752_v24, %v1756_v26  ;;  %v1635_v14 = vunpack.c.l.b16 %v6701_v61  ;;  %v8450_v24 = vld [vmem:[%s8008_s15 + $0x84] sm:$0xff] }
  0xb0   : > { %6558 = vmatmul.msk.bf16.vlgmr.msra.gmra.mxu0 %vm879_vm8, %v846_v50  ;;  %1431 = vmatpush.bf16.msra.mxu1 %v1422_v46  ;;  %v8417_v31 = vpop.permute.xlu2 %1798  ;;  %v1220_v55 = vsel %vm589_vm0, %v1215_v41, %v1219_v30  ;;  %v1231_v16 = vrot.slane %v1229_v53, 1  ;;  %v1308_v18 = vrot.slane %v8402_v8, 1  ;;  %v1309_v20 = vrot.slane %v1110_v22, 1 }
  0xb1   : > { %7803 = vmatpush.bf16.msra.mxu3 %v1422_v46  ;;  %v1226_v52 = vrot.slane %v1224_v19, 1  ;;  %v1647_v26 = vpack.c.b16 %v1635_v14, %v1635_v14  ;;  %v1842_v41 = vrot.slane %v8361_v10, 1  ;;  %v1845_v25 = vrot.slane %v8450_v24, 1 }
  0xb2   : > { %1271 = vrot.lane.b32.xlu0 %v1208_v37, %s7921_s16  ;;  %v6602_v37 = vld [vmem:[%s8008_s15 + $0x8c] sm:$0x1] }
  0xb3   : > { %1331 = vrot.lane.b32.xlu1 %v1304_v44, %s7922_s17  ;;  %v1222_v44 = vshrl.u32 %v8402_v8, 16  ;;  %v1844_v53 = vsel %vm758_vm1, %v1842_v41, %v1843_v5 }
  0xb4   : > { %v1258_v23 = vpop.permute.xlu0 %1257 }
  0xb5   : > { %v1342_v35 = vsel %vm819_vm6, %v8050_v3, %v1258_v23  ;;  %v1318_v2 = vpop.permute.xlu1 %1317  ;;  %v1099_v3 = vunpack.c.l.b16 %v6602_v37  ;;  %v1227_v50 = vor.u32 %v1226_v52, %v1222_v44  ;;  %v6605_v37 = vld [vmem:[%s8008_s15 + $0x98] sm:$0x1]  ;;  %v8463_v44 = vld [vmem:[%s8008_s15 + $0x90] sm:$0xff] }
  0xb6   : > { %v1366_v38 = vsel %vm844_vm7, %v1342_v35, %v1318_v2  ;;  %1273 = vrot.lane.b32.xlu2 %v1220_v55, %s7921_s16  ;;  %v1310_v35 = vsel %vm758_vm1, %v1308_v18, %v1309_v20  ;;  %v1100_v52 = vunpack.c.l.b16 %v6605_v37  ;;  %v1248_v55 = vshll.u32 %v8463_v44, 16 }
  0xb7   : > { %6660 = vmatmul.msk.bf16.vlgmr.msra.gmra.mxu1 %vm879_vm8, %v1366_v38  ;;  %v8439_v21 = vpack.c.b16 %v1099_v3, %v1099_v3  ;;  %v1232_v30 = vsel %vm589_vm0, %v1227_v50, %v1231_v16  ;;  %v1234_v38 = vshrl.u32 %v8427_v59, 16  ;;  %v1761_v3 = vshll.u32 %v8450_v24, 16 }
  0xb8   : > { %v8444_v23 = vpop.permute.xlu2 %799  ;;  %v1759_v18 = vshrl.u32 %v8450_v24, 16  ;;  %v1250_v41 = vrot.slane %v1248_v55, 1 }
  0xb9   : > { %v1763_v20 = vrot.slane %v1761_v3, 1  ;;  %v1311_v3 = vrot.slane %v8427_v59, 1 }
  0xba   : > { %1333 = vrot.lane.b32.xlu0 %v1307_v40, %s7922_s17  ;;  %v1238_v40 = vrot.slane %v1236_v29, 1  ;;  %v1766_v29 = vshll.u32 %v1647_v26, 16 }
  0xbb   : > { %1810 = vrot.lane.b32.xlu1 %v1757_v17, %s7921_s16  ;;  %v1846_v17 = vrot.slane %v1647_v26, 1 }
  0xbc   : > { %v8437_v46 = vpop.permute.xlu0 %1856  ;;  %v1239_v1 = vor.u32 %v1238_v40, %v1234_v38  ;;  %v1768_v5 = vrot.slane %v1766_v29, 1 }
  0xbd   : > { %v737_v19 = vpop.permute.xlu1 %736 }
  0xbe   : > { %6568 = vmatmul.msk.bf16.gmra.mxu2 %vm879_vm8, %v866_v0  ;;  %v823_v22 = vsel %vm819_vm6, %v8065_v27, %v737_v19  ;;  %v1241_v27 = vshll.u32 %v8439_v21, 16  ;;  %1870 = vrot.lane.b32.xlu2 %v1844_v53, %s7922_s17  ;;  %v1847_v0 = vsel %vm758_vm1, %v1845_v25, %v1846_v17  ;;  %v1314_v53 = vrot.slane %v8463_v44, 1 }
  0xbf   : > { %v848_v2 = vsel %vm844_vm7, %v823_v22, %v8388_v51  ;;  %v1112_v51 = vpack.c.b16 %v1100_v52, %v1100_v52  ;;  %v1246_v22 = vshrl.u32 %v8463_v44, 16 }
  0xc0   : > { %6559 = vmatmul.msk.bf16.gmra.mxu0 %vm879_vm8, %v848_v2  ;;  %v1243_v13 = vrot.slane %v1241_v27, 1  ;;  %v8474_v16 = vpop.permute.xlu2 %1800 }
  0xc1   : > { %v1251_v40 = vor.u32 %v1250_v41, %v1246_v22  ;;  %v1315_v25 = vrot.slane %v1112_v51, 1 }
  0xc2   : > { %1275 = vrot.lane.b32.xlu0 %v1232_v30, %s7921_s16  ;;  %v1253_v30 = vshll.u32 %v1112_v51, 16  ;;  %v1244_v37 = vsel %vm589_vm0, %v1239_v1, %v1243_v13 }
  0xc3   : > { %1335 = vrot.lane.b32.xlu1 %v1310_v35, %s7922_s17  ;;  %v1764_v35 = vor.u32 %v1763_v20, %v1759_v18  ;;  %v1316_v13 = vsel %vm758_vm1, %v1314_v53, %v1315_v25  ;;  %v7855_v18 = vld [vmem:[%s8008_s15 + $0x18] sm:$0xff] }
  0xc4   : > { %v1260_v61 = vpop.permute.xlu0 %1259  ;;  %v1255_v27 = vrot.slane %v1253_v30, 1  ;;  %v1879_v20 = vsel %vm819_vm6, %v7855_v18, %v8307_v34 }
  0xc5   : > { %v1344_v14 = vsel %vm819_vm6, %v8082_v45, %v1260_v61  ;;  %v1320_v50 = vpop.permute.xlu1 %1319  ;;  %v7854_v45 = vld [vmem:[%s8008_s15 + $0x84] sm:$0xff]  ;;  %v1769_v26 = vsel %vm589_vm0, %v1764_v35, %v1768_v5 }
  0xc6   : > { %v1368_v19 = vsel %vm844_vm7, %v1344_v14, %v1320_v50  ;;  %v843_v2 = vsel %vm819_vm6, %v7854_v45, %v8352_v49  ;;  %1812 = vrot.lane.b32.xlu2 %v1769_v26, %s7921_s16  ;;  %v1256_v61 = vsel %vm589_vm0, %v1251_v40, %v1255_v27 }
  0xc7   : > { %6661 = vmatmul.msk.bf16.gmra.mxu1 %vm879_vm8, %v1368_v19  ;;  %v868_v38 = vsel %vm844_vm7, %v843_v2, %v8355_v62  ;;  %v1312_v62 = vrot.slane %v8439_v21, 1 }
  0xc8   : > { %v802_v17 = vpop.permute.xlu2 %801 }
  0xc9   : > { %v1313_v51 = vsel %vm758_vm1, %v1311_v3, %v1312_v62 }
  0xca   : > { %1872 = vrot.lane.b32.xlu0 %v1847_v0, %s7922_s17  ;;  %v1903_v0 = vsel %vm844_vm7, %v1879_v20, %v8381_v33  ;;  %v7856_v33 = vld [vmem:[%s8008_s15 + $0x24] sm:$0xff] }
  0xcb   : > { %1277 = vrot.lane.b32.xlu1 %v1244_v37, %s7921_s16  ;;  %v1881_v45 = vsel %vm819_vm6, %v7856_v33, %v8357_v4 }
  0xcc   : > { %v1859_v52 = vpop.permute.xlu0 %1858  ;;  %v1905_v37 = vsel %vm844_vm7, %v1881_v45, %v8437_v46  ;;  %v1883_v46 = vsel %vm819_vm6, %v8103_v15, %v8417_v31 }
  0xcd   : > { %v739_v49 = vpop.permute.xlu1 %738 }
  0xce   : > { %6569 = vmatmul.msk.bf16.gmra.mxu2 %vm879_vm8, %v868_v38  ;;  %v825_v55 = vsel %vm819_vm6, %v8097_v9, %v739_v49  ;;  %1337 = vrot.lane.b32.xlu2 %v1313_v51, %s7922_s17 }
  0xcf   : > { %v850_v1 = vsel %vm844_vm7, %v825_v55, %v8444_v23 }
  0xd0   : > { %6560 = vmatmul.msk.bf16.gmra.mxu0 %vm879_vm8, %v850_v1  ;;  %v8509_v23 = vpop.permute.xlu2 %1802 }
  0xd2   : > { %1279 = vrot.lane.b32.xlu0 %v1256_v61, %s7921_s16 }
  0xd3   : > { %1339 = vrot.lane.b32.xlu1 %v1316_v13, %s7922_s17 }
  0xd4   : > { %v1262_v9 = vpop.permute.xlu0 %1261 }
  0xd5   : > { %v1346_v21 = vsel %vm819_vm6, %v8117_v28, %v1262_v9  ;;  %v1322_v14 = vpop.permute.xlu1 %1321 }
  0xd6   : > { %v1370_v50 = vsel %vm844_vm7, %v1346_v21, %v1322_v14 }
  0xd7   : > { %6662 = vmatmul.msk.bf16.gmra.mxu1 %vm879_vm8, %v1370_v50 }
  0xd8   : > { %v804_v41 = vpop.permute.xlu2 %803 }
  0xdc   : > { %v1861_v29 = vpop.permute.xlu0 %1860 }
  0xdd   : > { %v741_v19 = vpop.permute.xlu1 %740 }
  0xde   : > { %6762 = vmatmul.msk.bf16.vlgmr.msrb.gmra.mxu2 %vm879_vm8, %v1903_v0  ;;  %v827_v28 = vsel %vm819_vm6, %v8134_v54, %v741_v19 }
  0xdf   : > { %v852_v22 = vsel %vm844_vm7, %v827_v28, %v802_v17 }
  0xe0   : > { %6561 = vmatmul.msk.bf16.gmra.mxu0 %vm879_vm8, %v852_v22  ;;  %v1805_v2 = vpop.permute.xlu2 %1804 }
  0xe4   : > { %v1264_v30 = vpop.permute.xlu0 %1263 }
  0xe5   : > { %v1348_v35 = vsel %vm819_vm6, %v8154_v12, %v1264_v30  ;;  %v1324_v34 = vpop.permute.xlu1 %1323 }
  0xe6   : > { %v1372_v5 = vsel %vm844_vm7, %v1348_v35, %v1324_v34 }
  0xe7   : > { %6663 = vmatmul.msk.bf16.gmra.mxu1 %vm879_vm8, %v1372_v5 }
  0xe8   : > { %v806_v53 = vpop.permute.xlu2 %805 }
  0xec   : > { %v1863_v54 = vpop.permute.xlu0 %1862 }
  0xed   : > { %v743_v26 = vpop.permute.xlu1 %742 }
  0xee   : > { %6763 = vmatmul.msk.bf16.gmra.mxu2 %vm879_vm8, %v1905_v37  ;;  %v829_v12 = vsel %vm819_vm6, %v8171_v39, %v743_v26  ;;  %v1907_v39 = vsel %vm844_vm7, %v1883_v46, %v1859_v52  ;;  %v1885_v52 = vsel %vm819_vm6, %v8140_v60, %v8474_v16  ;;  %v1887_v16 = vsel %vm819_vm6, %v8177_v47, %v8509_v23 }
  0xef   : > { %v854_v38 = vsel %vm844_vm7, %v829_v12, %v804_v41  ;;  %v1909_v13 = vsel %vm844_vm7, %v1885_v52, %v1861_v29  ;;  %v357_v52 = vld [vmem:[#allocation2 + $0x8] sm:$0x1] }
  0xf0   : > { %6562 = vmatmul.msk.bf16.gmra.mxu0 %vm879_vm8, %v854_v38 }
  0xf4   : > { %v1266_v40 = vpop.permute.xlu0 %1265 }
  0xf5   : > { %v1350_v27 = vsel %vm819_vm6, %v8190_v58, %v1266_v40  ;;  %v1326_v4 = vpop.permute.xlu1 %1325  ;;  %v1807_v58 = vpop.permute.xlu2 %1806 }
  0xf6   : > { %v1374_v25 = vsel %vm844_vm7, %v1350_v27, %v1326_v4  ;;  %v1891_v38 = vsel %vm819_vm6, %v8276_v48, %v1807_v58 }
  0xf7   : > { %6664 = vmatmul.msk.bf16.gmra.mxu1 %vm879_vm8, %v1374_v25  ;;  %v319_v25 = vld [vmem:[#allocation2] sm:$0x1] }
  0xf8   : > { %v320_v48 = vsel %vm8602_vm11, 0, %v319_v25 }
  0xf9   : > { %321 = vst [vmem:[#allocation2] sm:$0x1] %v320_v48  ;;  %v7682_v48 = vld [vmem:[%s10564_s3 + $0xb0] sm:$0xff] }
  0xfc   : > { %v1865_v49 = vpop.permute.xlu0 %1864 }
  0xfd   : > { %v745_v17 = vpop.permute.xlu1 %744  ;;  %v808_v31 = vpop.permute.xlu2 %807 }
  0xfe   : > { %6764 = vmatmul.msk.bf16.gmra.mxu2 %vm879_vm8, %v1907_v39  ;;  %v831_v55 = vsel %vm819_vm6, %v8215_v32, %v745_v17 }
  0xff   : > { %v856_v3 = vsel %vm844_vm7, %v831_v55, %v806_v53 }
 0x100   : > { %6563 = vmatmul.msk.bf16.gmra.mxu0 %vm879_vm8, %v856_v3 }
 0x104   : > { %v1268_v62 = vpop.permute.xlu0 %1267 }
 0x105   : > { %v1352_v61 = vsel %vm819_vm6, %v8239_v63, %v1268_v62  ;;  %v1328_v1 = vpop.permute.xlu1 %1327  ;;  %v1809_v21 = vpop.permute.xlu2 %1808 }
 0x106   : > { %v1376_v15 = vsel %vm844_vm7, %v1352_v61, %v1328_v1  ;;  %v1893_v62 = vsel %vm819_vm6, %v8319_v57, %v1809_v21  ;;  %v358_v57 = vsel %vm8623_vm12, 0, %v357_v52 }
 0x107   : > { %6665 = vmatmul.msk.bf16.gmra.mxu1 %vm879_vm8, %v1376_v15  ;;  %359 = vst [vmem:[#allocation2 + $0x8] sm:$0x1] %v358_v57 }
 0x10c   : > { %v1867_v32 = vpop.permute.xlu0 %1866 }
 0x10d   : > { %v747_v51 = vpop.permute.xlu1 %746  ;;  %v810_v29 = vpop.permute.xlu2 %809  ;;  %v1915_v4 = vsel %vm844_vm7, %v1891_v38, %v1867_v32 }
 0x10e   : > { %6765 = vmatmul.msk.bf16.gmra.mxu2 %vm879_vm8, %v1909_v13  ;;  %v833_v9 = vsel %vm819_vm6, %v8270_v36, %v747_v51  ;;  %v1911_v36 = vsel %vm844_vm7, %v1887_v16, %v1863_v54  ;;  %v8651_v16 = vld [vmem:[%s10563_s2] ss:$0 sm:$0xff] }
 0x10f   : > { %v858_v63 = vsel %vm844_vm7, %v833_v9, %v808_v31 }
 0x110   : > { %6564 = vmatmul.msk.bf16.gmra.mxu0 %vm879_vm8, %v858_v63  ;;  %v322_v63 = vld [vmem:[#allocation2 + $0xc] sm:$0x1] }
 0x111   : > { %v323_v21 = vsel %vm8602_vm11, 0, %v322_v63 }
 0x112   : > { %324 = vst [vmem:[#allocation2 + $0xc] sm:$0x1] %v323_v21 }
 0x114   : > { %v1270_v14 = vpop.permute.xlu0 %1269 }
 0x115   : > { %v1354_v50 = vsel %vm819_vm6, %v8292_v7, %v1270_v14  ;;  %v1330_v18 = vpop.permute.xlu1 %1329  ;;  %v1274_v30 = vpop.permute.xlu2 %1273 }
 0x116   : > { %v1378_v60 = vsel %vm844_vm7, %v1354_v50, %v1330_v18  ;;  %v1358_v34 = vsel %vm819_vm6, %v8372_v56, %v1274_v30 }
 0x117   : > { %6666 = vmatmul.msk.bf16.gmra.mxu1 %vm879_vm8, %v1378_v60 }
 0x11c   : > { %v1869_v20 = vpop.permute.xlu0 %1868 }
 0x11d   : > { %v749_v0 = vpop.permute.xlu1 %748  ;;  %v1871_v37 = vpop.permute.xlu2 %1870 }
 0x11e   : > { %6766 = vmatmul.msk.bf16.gmra.mxu2 %vm879_vm8, %v1911_v36  ;;  %v835_v19 = vsel %vm819_vm6, %v8313_v43, %v749_v0  ;;  %v1889_v43 = vsel %vm819_vm6, %v8223_v42, %v1805_v2  ;;  %v360_v0 = vld [vmem:[#allocation2 + $0x14] sm:$0x1] }
 0x11f   : > { %v860_v28 = vsel %vm844_vm7, %v835_v19, %v810_v29  ;;  %v1913_v45 = vsel %vm844_vm7, %v1889_v43, %v1865_v49  ;;  %v361_v19 = vsel %vm8623_vm12, 0, %v360_v0 }
 0x120   : > { %6565 = vmatmul.msk.bf16.gmra.mxu0 %vm879_vm8, %v860_v28  ;;  %362 = vst [vmem:[#allocation2 + $0x14] sm:$0x1] %v361_v19 }
 0x121   : > { %v8573_v7 = vpop.f32.mrf.mxu2 }
 0x124   : > { %v1272_v22 = vpop.permute.xlu0 %1271 }
 0x125   : > { %v1356_v47 = vsel %vm819_vm6, %v8326_v6, %v1272_v22  ;;  %v1332_v23 = vpop.permute.xlu1 %1331 }
 0x126   : > { %v1380_v41 = vsel %vm844_vm7, %v1356_v47, %v1332_v23 }
 0x127   : > { %6667 = vmatmul.msk.bf16.gmra.mxu1 %vm879_vm8, %v1380_v41 }
 0x129   : > { %v8581_v35 = vpop.f32.mrf.mxu2 }
 0x12c   : > { %v1334_v5 = vpop.permute.xlu0 %1333 }
 0x12d   : > { %v1382_v33 = vsel %vm844_vm7, %v1358_v34, %v1334_v5  ;;  %v1811_v6 = vpop.permute.xlu1 %1810  ;;  %v920_v12 = vpop.f32.mrf.mxu0 }
 0x12e   : > { %6668 = vmatmul.msk.bf16.vlgmr.msra.gmra.mxu3 %vm879_vm8, %v1382_v33  ;;  %6767 = vmatmul.msk.bf16.gmra.mxu2 %vm879_vm8, %v1913_v45  ;;  %v1895_v14 = vsel %vm819_vm6, %v8361_v10, %v1811_v6  ;;  %v921_v10 = vadd.f32 %v8651_v16, %v920_v12  ;;  %v325_v33 = vld [vmem:[#allocation2 + $0x18] sm:$0x1] }
 0x12f   : > { %v326_v6 = vsel %vm8602_vm11, 0, %v325_v33 }
 0x130   : > { %327 = vst [vmem:[#allocation2 + $0x18] sm:$0x1] %v326_v6 }
 0x131   : > { %v8591_v54 = vpop.f32.mrf.mxu2 }
 0x134   : > { %v1276_v26 = vpop.permute.xlu0 %1275  ;;  %v1433_v53 = vpop.f32.mrf.mxu1 }
 0x135   : > { %v1360_v42 = vsel %vm819_vm6, %v8402_v8, %v1276_v26  ;;  %v1336_v2 = vpop.permute.xlu1 %1335  ;;  %v8609_v8 = vpop.permute.xlu2 %1812  ;;  %v1493_v28 = vadd.f32 %v1433_v53, %v921_v10  ;;  %v2449_v10 = vld [vmem:[#allocation2 + $0x8] sm:$0x1] }
 0x136   : > { %v1384_v40 = vsel %vm844_vm7, %v1360_v42, %v1336_v2  ;;  %v922_v49 = vpop.f32.mrf.mxu0  ;;  %v1897_v26 = vsel %vm819_vm6, %v8450_v24, %v8609_v8  ;;  %v10593_v24 = vmov 0 }
 0x137   : > { %v923_v30 = vadd.f32 %v8651_v16, %v922_v49  ;;  %v10594_v24 = vsel %vm8695_vm3, 4294967295, %v10593_v24  ;;  %v2444_v49 = vld [vmem:[#allocation2] sm:$0xf] }
 0x138   : > { %10595 = vst [vmem:[#allocation7_spill] sm:$0xff] %v10594_v24 }
 0x139   : > { %v8595_v56 = vpop.f32.mrf.mxu2 }
 0x13c   : > { %v1435_v58 = vpop.f32.mrf.mxu1  ;;  %v1873_v15 = vpop.permute.xlu0 %1872 }
 0x13d   : > { %v1278_v39 = vpop.permute.xlu1 %1277  ;;  %v1338_v55 = vpop.permute.xlu2 %1337  ;;  %v1494_v42 = vadd.f32 %v1435_v58, %v923_v30  ;;  %v328_v30 = vld [vmem:[#allocation2 + $0x24] sm:$0x1] }
 0x13e   : > { %6669 = vmatmul.msk.bf16.gmra.mxu3 %vm879_vm8, %v1384_v40  ;;  %6768 = vmatmul.msk.bf16.gmra.mxu2 %vm879_vm8, %v1915_v4  ;;  %v1362_v17 = vsel %vm819_vm6, %v8427_v59, %v1278_v39  ;;  %v925_v31 = vpop.f32.mrf.mxu0  ;;  %v1917_v59 = vsel %vm844_vm7, %v1893_v62, %v1869_v20  ;;  %v1919_v20 = vsel %vm844_vm7, %v1895_v14, %v1871_v37  ;;  %v7683_v37 = vld [vmem:[%s10564_s3 + $0xb8] sm:$0xff]  ;;  %v363_v62 = vld [vmem:[#allocation2 + $0x20] sm:$0x1]  ;;  %v329_v33 = vsel %vm8602_vm11, 0, %v328_v30 }
 0x13f   : > { %v1386_v1 = vsel %vm844_vm7, %v1362_v17, %v1338_v55  ;;  %3589 = vmatpush.bf16.msrb.mxu1 %v7683_v37  ;;  %v1921_v4 = vsel %vm844_vm7, %v1897_v26, %v1873_v15  ;;  %v926_v8 = vadd.f32 %v8651_v16, %v925_v31  ;;  %v7681_v31 = vld [vmem:[%s10564_s3 + $0xa8] sm:$0xff]  ;;  %330 = vst [vmem:[#allocation2 + $0x24] sm:$0x1] %v329_v33  ;;  %v331_v33 = vld [vmem:[#allocation2 + $0x30] sm:$0x1] }
 0x141   : > { %v8613_v46 = vpop.f32.mrf.mxu2 }
 0x143   : > { %3590 = vmatpush.bf16.msrb.mxu1 %v7682_v48 }
 0x144   : > { %v8635_v13 = vpop.f32.mrf.mxu1  ;;  %v1280_v51 = vpop.permute.xlu0 %1279 }
 0x145   : > { %v1364_v50 = vsel %vm819_vm6, %v8463_v44, %v1280_v51  ;;  %v1340_v18 = vpop.permute.xlu1 %1339  ;;  %v8660_v44 = vstv %s6775_s21  ;;  %v1495_v52 = vadd.f32 %v8635_v13, %v926_v8  ;;  %v7680_v13 = vld [vmem:[%s10564_s3 + $0xa0] sm:$0xff] }
 0x146   : > { %v8637_v9 = vpop.f32.mrf.mxu0  ;;  %v1388_v36 = vsel %vm844_vm7, %v1364_v50, %v1340_v18  ;;  %vm2092_vm13 = vcmp.ge.s32.totalorder %v8660_v44, 0  ;;  %vm2104_vm14 = vcmp.lt.s32.totalorder %v8660_v44, 16  ;;  %v2081_v17 = vadd.s32 1, %v8660_v44 }
 0x147   : > { %vm8670_vm15 = vmand %vm2092_vm13, %vm2104_vm14  ;;  %vm2200_vm14 = vsmask.f32 4368  ;;  %3591 = vmatpush.bf16.msrb.mxu1 %v7681_v31 }
 0x148   : > { %vm2093_vm9 = vcmp.ge.s32.totalorder %v2081_v17, 0  ;;  %vm2105_vm13 = vcmp.lt.s32.totalorder %v2081_v17, 16  ;;  %vm8724_vm4 = vmor %vm317_vm10, %vm2200_vm14 }
 0x149   : > { %v8617_v3 = vpop.f32.mrf.mxu2 }
 0x14a   : > { %10587 = vst [vmem:[#allocation5_spill] sm:$0xff] %v8617_v3 }
 0x14b   : > { %3592 = vmatpush.bf16.msrb.mxu1 %v7680_v13 }
 0x14c   : > { %v8658_v29 = vpop.f32.mrf.mxu1 }
 0x14e   : > { %6670 = vmatmul.msk.bf16.gmra.mxu3 %vm879_vm8, %v1386_v1  ;;  %6769 = vmatmul.msk.bf16.gmra.mxu2 %vm879_vm8, %v1917_v59  ;;  %v8668_v22 = vpop.f32.mrf.mxu0  ;;  %v364_v59 = vsel %vm8623_vm12, 0, %v363_v62 }
 0x14f   : > { %365 = vst [vmem:[#allocation2 + $0x20] sm:$0x1] %v364_v59 }
 0x151   : > { %v8633_v32 = vpop.f32.mrf.mxu2 }
 0x154   : > { %v8677_v5 = vpop.f32.mrf.mxu1 }
 0x156   : > { %v8687_v40 = vpop.f32.mrf.mxu0 }
 0x159   : > { %v8646_v60 = vpop.f32.mrf.mxu2 }
 0x15a   : > { %10590 = vst [vmem:[#allocation6_spill] sm:$0xff] %v8646_v60 }
 0x15c   : > { %v8712_v57 = vpop.f32.mrf.mxu1 }
 0x15e   : > { %6671 = vmatmul.msk.bf16.gmra.mxu3 %vm879_vm8, %v1388_v36  ;;  %6770 = vmatmul.msk.bf16.gmra.mxu2 %vm879_vm8, %v1919_v20  ;;  %v928_v20 = vadd.f32 %v8651_v16, %v8637_v9  ;;  %v10598_v36 = vmov 0  ;;  %v8728_v19 = vpop.f32.mrf.mxu0 }
 0x15f   : > { %v10599_v36 = vsel %vm8724_vm4, 4294967295, %v10598_v36 }
 0x160   : > { %10600 = vst [vmem:[#allocation8_spill] sm:$0xff] %v10599_v36 }
 0x161   : > { %v1970_v47 = vpop.f32.mrf.mxu2 }
 0x162   : > { %v2030_v23 = vadd.f32 %v1970_v47, %v1493_v28 }
 0x164   : > { %v2054_v43 = vmax.f32 %v2030_v23, 0.0 }
 0x166   : > { %v2152_v34 = vsel %vm8670_vm15, %v2054_v43, 0.0  ;;  %v8747_v8 = vpop.f32.mrf.mxu0 }
 0x167   : > { %v2176_v45 = vpack.c.bf16 %v2152_v34, %v2152_v34 }
 0x169   : > { %v2203_v2 = vshrl.u32 %v2176_v45, 16  ;;  %v1972_v12 = vpop.f32.mrf.mxu2  ;;  %v2206_v25 = vshll.u32 %v2176_v45, 16  ;;  %v1496_v45 = vadd.f32 %v8658_v29, %v928_v20 }
 0x16a   : > { %v2031_v38 = vadd.f32 %v1972_v12, %v1494_v42  ;;  %v8740_v42 = vpop.f32.mrf.mxu1 }
 0x16b   : > { %v2205_v53 = vrot.slane %v2203_v2, 7 }
 0x16c   : > { %v2055_v39 = vmax.f32 %v2031_v38, 0.0  ;;  %v931_v38 = vadd.f32 %v8651_v16, %v8668_v22 }
 0x16d   : > { %v2208_v55 = vor.u32 %v2206_v25, %v2205_v53  ;;  %v2209_v28 = vrot.slane %v2205_v53, 4  ;;  %v2082_v25 = vadd.s32 2, %v8660_v44 }
 0x16e   : > { %v2153_v58 = vsel %vm8670_vm15, %v2055_v39, 0.0  ;;  %6771 = vmatmul.msk.bf16.gmra.mxu2 %vm879_vm8, %v1921_v4  ;;  %vm8714_vm15 = vmand %vm2093_vm9, %vm2105_vm13  ;;  %v2452_v4 = vld [vmem:[#allocation2 + $0xc] sm:$0xf] }
 0x16f   : > { %v2445_v1 = vsel %vm8695_vm3, %v2208_v55, %v2444_v49  ;;  %v2177_v15 = vpack.c.bf16 %v2153_v58, %v2153_v58  ;;  %v366_v49 = vld [vmem:[#allocation2 + $0x2c] sm:$0x1]  ;;  %v1497_v58 = vadd.f32 %v8677_v5, %v931_v38  ;;  %vm2094_vm9 = vcmp.ge.s32.totalorder %v2082_v25, 0 }
 0x170   : > { %2446 = vst [vmem:[#allocation2] sm:$0xf] %v2445_v1  ;;  %v367_v22 = vsel %vm8623_vm12, 0, %v366_v49  ;;  %vm2106_vm13 = vcmp.lt.s32.totalorder %v2082_v25, 16  ;;  %v933_v5 = vadd.f32 %v8651_v16, %v8687_v40  ;;  %v2083_v25 = vadd.s32 3, %v8660_v44 }
 0x171   : > { %v2211_v51 = vshrl.u32 %v2177_v15, 16  ;;  %v1975_v63 = vpop.f32.mrf.mxu2  ;;  %v2214_v50 = vshll.u32 %v2177_v15, 16  ;;  %368 = vst [vmem:[#allocation2 + $0x2c] sm:$0x1] %v367_v22  ;;  %vm8757_vm14 = vmand %vm2094_vm9, %vm2106_vm13  ;;  %vm2810_vm13 = vcmask 523264  }
 0x172   : > { %v2032_v21 = vadd.f32 %v1975_v63, %v1495_v52  ;;  %vm2107_vm9 = vcmp.lt.s32.totalorder %v2083_v25, 16 }
 0x173   : > { %v2213_v14 = vrot.slane %v2211_v51, 7 }
 0x174   : > { %v2056_v0 = vmax.f32 %v2032_v21, 0.0 }
 0x175   : > { %v2216_v47 = vor.u32 %v2214_v50, %v2213_v14  ;;  %v2218_v23 = vrot.slane %v2213_v14, 4  ;;  %v2456_v50 = vld [vmem:[#allocation2 + $0x14] sm:$0x1] }
 0x176   : > { %v2154_v41 = vsel %vm8714_vm15, %v2056_v0, 0.0 }
 0x177   : > { %v2217_v9 = vsel %vm8724_vm4, %v2209_v28, %v2216_v47  ;;  %v2450_v43 = vsel %vm8602_vm11, %v2218_v23, %v2449_v10  ;;  %v2178_v34 = vpack.c.bf16 %v2154_v41, %v2154_v41  ;;  %v8766_v10 = vpop.f32.mrf.mxu1 }
 0x178   : > { %2448 = vst.msk [vmem:[#allocation2 + $0x4] sm:$0xf] %vm2442_vm2, %v2217_v9 }
 0x179   : > { %2451 = vst [vmem:[#allocation2 + $0x8] sm:$0x1] %v2450_v43  ;;  %v2220_v6 = vshrl.u32 %v2178_v34, 16  ;;  %v1977_v37 = vpop.f32.mrf.mxu2  ;;  %v2223_v12 = vshll.u32 %v2178_v34, 16 }
 0x17a   : > { %v2033_v26 = vadd.f32 %v1977_v37, %v1496_v45  ;;  %v1498_v45 = vadd.f32 %v8712_v57, %v933_v5  ;;  %v332_v37 = vsel %vm8602_vm11, 0, %v331_v33  ;;  %v936_v57 = vadd.f32 %v8651_v16, %v8728_v19 }
 0x17b   : > { %v2222_v2 = vrot.slane %v2220_v6, 7  ;;  %v8777_v6 = vpop.f32.mrf.mxu0  ;;  %333 = vst [vmem:[#allocation2 + $0x30] sm:$0x1] %v332_v37 }
 0x17c   : > { %v2057_v53 = vmax.f32 %v2033_v26, 0.0 }
 0x17d   : > { %v2225_v48 = vor.u32 %v2223_v12, %v2222_v2  ;;  %v2226_v0 = vrot.slane %v2222_v2, 4 }
 0x17e   : > { %v2155_v29 = vsel %vm8714_vm15, %v2057_v53, 0.0  ;;  %vm2095_vm15 = vcmp.ge.s32.totalorder %v2083_v25, 0  ;;  %v334_v25 = vld [vmem:[#allocation2 + $0x3c] sm:$0x1] }
 0x17f   : > { %v2453_v39 = vsel %vm8695_vm3, %v2225_v48, %v2452_v4  ;;  %v2179_v17 = vpack.c.bf16 %v2155_v29, %v2155_v29  ;;  %v8751_v55 = vld [vmem:[#allocation2] sm:$0xff]  ;;  %v2459_v48 = vld [vmem:[#allocation2 + $0x18] sm:$0xf] }
 0x180   : > { %2454 = vst [vmem:[#allocation2 + $0xc] sm:$0xf] %v2453_v39  ;;  %v2532_v62 = vld [vmem:[#allocation2 + $0x8] sm:$0x1]  ;;  %v2643_v52 = vshll.u32 %v8751_v55, 16  ;;  %v2641_v13 = vshrl.u32 %v8751_v55, 16 }
 0x181   : > { %v2228_v1 = vshrl.u32 %v2179_v17, 16  ;;  %v1980_v15 = vpop.f32.mrf.mxu2  ;;  %v2620_v59 = vunpack.c.l.b16 %v2532_v62  ;;  %v2231_v63 = vshll.u32 %v2179_v17, 16  ;;  %v8788_v17 = vpop.f32.mrf.mxu1 }
 0x182   : > { %v2034_v31 = vadd.f32 %v1980_v15, %v1497_v58  ;;  %v2645_v20 = vrot.slane %v2643_v52, 1  ;;  %v1499_v15 = vadd.f32 %v8740_v42, %v936_v57 }
 0x183   : > { %v2230_v51 = vrot.slane %v2228_v1, 7  ;;  %v8761_v14 = vpack.c.b16 %v2620_v59, %v2620_v59  ;;  %v369_v1 = vld [vmem:[#allocation2 + $0x38] sm:$0x1] }
 0x184   : > { %v2058_v18 = vmax.f32 %v2034_v31, 0.0  ;;  %v2646_v30 = vor.u32 %v2645_v20, %v2641_v13  ;;  %v938_v31 = vadd.f32 %v8651_v16, %v8747_v8 }
 0x185   : > { %v2233_v28 = vor.u32 %v2231_v63, %v2230_v51  ;;  %v2235_v47 = vrot.slane %v2230_v51, 4  ;;  %v2648_v23 = vshll.u32 %v8761_v14, 16 }
 0x186   : > { %v2156_v41 = vsel %vm8757_vm14, %v2058_v18, 0.0  ;;  %v942_v18 = vpop.f32.mrf.mxu0  ;;  %v1500_v57 = vadd.f32 %v8766_v10, %v938_v31  ;;  %v2084_v10 = vadd.s32 4, %v8660_v44 }
 0x187   : > { %v2234_v9 = vsel %vm8724_vm4, %v2226_v0, %v2233_v28  ;;  %v2457_v40 = vsel %vm8602_vm11, %v2235_v47, %v2456_v50  ;;  %v2180_v43 = vpack.c.bf16 %v2156_v41, %v2156_v41  ;;  %v2650_v34 = vrot.slane %v2648_v23, 1  ;;  %v2463_v47 = vld [vmem:[#allocation2 + $0x20] sm:$0x1] }
 0x188   : > { %2455 = vst.msk [vmem:[#allocation2 + $0x10] sm:$0xf] %vm2442_vm2, %v2234_v9  ;;  %v370_v23 = vsel %vm8623_vm12, 0, %v369_v1 }
 0x189   : > { %2458 = vst [vmem:[#allocation2 + $0x14] sm:$0x1] %v2457_v40  ;;  %v2237_v26 = vshrl.u32 %v2180_v43, 16  ;;  %v1982_v2 = vpop.f32.mrf.mxu2  ;;  %v2651_v12 = vsel %vm589_vm0, %v2646_v30, %v2650_v34  ;;  %v2240_v53 = vshll.u32 %v2180_v43, 16 }
 0x18a   : > { %v2035_v38 = vadd.f32 %v1982_v2, %v1498_v45  ;;  %2760 = vrot.lane.b32.xlu2 %v2651_v12, %s7924_s19  ;;  %371 = vst [vmem:[#allocation2 + $0x38] sm:$0x1] %v370_v23 }
 0x18b   : > { %v2239_v4 = vrot.slane %v2237_v26, 7 }
 0x18c   : > { %v2059_v29 = vmax.f32 %v2035_v38, 0.0 }
 0x18d   : > { %v2242_v49 = vor.u32 %v2240_v53, %v2239_v4  ;;  %v2243_v5 = vrot.slane %v2239_v4, 4 }
 0x18e   : > { %v2157_v39 = vsel %vm8757_vm14, %v2059_v29, 0.0  ;;  %vm8797_vm14 = vmand %vm2095_vm15, %vm2107_vm9  ;;  %v8819_v29 = vpop.f32.mrf.mxu1  ;;  %vm2096_vm15 = vcmp.ge.s32.totalorder %v2084_v10, 0  ;;  %vm2108_vm9 = vcmp.lt.s32.totalorder %v2084_v10, 16 }
 0x18f   : > { %v2460_v22 = vsel %vm8695_vm3, %v2242_v49, %v2459_v48  ;;  %v2181_v58 = vpack.c.bf16 %v2157_v39, %v2157_v39  ;;  %v7641_v62 = vld [vmem:[#allocation2 + $0xc] sm:$0xff]  ;;  %v335_v49 = vsel %vm8602_vm11, 0, %v334_v25 }
 0x190   : > { %2461 = vst [vmem:[#allocation2 + $0x18] sm:$0xf] %v2460_v22  ;;  %v3091_v19 = vld [vmem:[#allocation2 + $0x14] sm:$0x1]  ;;  %v7662_v63 = vld [vmem:[#allocation2 + $0xc] sm:$0xff]  ;;  %v2655_v20 = vshll.u32 %v7641_v62, 16 }
 0x191   : > { %v2535_v59 = vld [vmem:[#allocation2 + $0x14] sm:$0x1]  ;;  %v2245_v52 = vshrl.u32 %v2181_v58, 16  ;;  %v1985_v51 = vpop.f32.mrf.mxu2  ;;  %v3179_v21 = vunpack.c.l.b16 %v3091_v19  ;;  %v2248_v28 = vshll.u32 %v2181_v58, 16  ;;  %v2653_v9 = vshrl.u32 %v7641_v62, 16 }
 0x192   : > { %v2036_v50 = vadd.f32 %v1985_v51, %v1499_v15  ;;  %v2621_v13 = vunpack.c.l.b16 %v2535_v59  ;;  %v2657_v40 = vrot.slane %v2655_v20, 1  ;;  %v3339_v33 = vrot.slane %v7662_v63, 1  ;;  %336 = vst [vmem:[#allocation2 + $0x3c] sm:$0x1] %v335_v49  ;;  %v2466_v59 = vld [vmem:[#allocation2 + $0x24] sm:$0xf] }
 0x193   : > { %v2247_v0 = vrot.slane %v2245_v52, 7  ;;  %v8801_v8 = vpack.c.b16 %v3179_v21, %v3179_v21  ;;  %v941_v19 = vadd.f32 %v8651_v16, %v8777_v6  ;;  %v8828_v52 = vpop.f32.mrf.mxu0 }
 0x194   : > { %v2060_v41 = vmax.f32 %v2036_v50, 0.0  ;;  %v8805_v30 = vpack.c.b16 %v2621_v13, %v2621_v13  ;;  %v2658_v26 = vor.u32 %v2657_v40, %v2653_v9  ;;  %v372_v13 = vld [vmem:[#allocation2 + $0x44] sm:$0x1] }
 0x195   : > { %v2250_v43 = vor.u32 %v2248_v28, %v2247_v0  ;;  %v2252_v34 = vrot.slane %v2247_v0, 4  ;;  %v3340_v45 = vrot.slane %v8801_v8, 1  ;;  %v1501_v20 = vadd.f32 %v8788_v17, %v941_v19 }
 0x196   : > { %v2158_v37 = vsel %vm8797_vm14, %v2060_v41, 0.0  ;;  %v2660_v2 = vshll.u32 %v8805_v30, 16  ;;  %v943_v28 = vadd.f32 %v8651_v16, %v942_v18 }
 0x197   : > { %v2251_v12 = vsel %vm8724_vm4, %v2243_v5, %v2250_v43  ;;  %v2464_v38 = vsel %vm8602_vm11, %v2252_v34, %v2463_v47  ;;  %v2182_v4 = vpack.c.bf16 %v2158_v37, %v2158_v37  ;;  %v3341_v53 = vsel %vm758_vm1, %v3339_v33, %v3340_v45  ;;  %v1458_v43 = vpop.f32.mrf.mxu1 }
 0x198   : > { %2462 = vst.msk [vmem:[#allocation2 + $0x1c] sm:$0xf] %vm2442_vm2, %v2251_v12  ;;  %6986 = vmatmul.msk.bf16.vlgmr.msrb.gmra.mxu1 %vm2810_vm13, %v3341_v53  ;;  %v2662_v48 = vrot.slane %v2660_v2, 1  ;;  %v373_v2 = vsel %vm8623_vm12, 0, %v372_v13 }
 0x199   : > { %2465 = vst [vmem:[#allocation2 + $0x20] sm:$0x1] %v2464_v38  ;;  %v2254_v39 = vshrl.u32 %v2182_v4, 16  ;;  %v1987_v22 = vpop.f32.mrf.mxu2  ;;  %v2257_v15 = vshll.u32 %v2182_v4, 16 }
 0x19a   : > { %v2037_v58 = vadd.f32 %v1987_v22, %v1500_v57  ;;  %v2663_v62 = vsel %vm589_vm0, %v2658_v26, %v2662_v48  ;;  %v2470_v26 = vld [vmem:[#allocation2 + $0x2c] sm:$0x1]  ;;  %374 = vst [vmem:[#allocation2 + $0x44] sm:$0x1] %v373_v2 }
 0x19b   : > { %v2256_v1 = vrot.slane %v2254_v39, 7  ;;  %2762 = vrot.lane.b32.xlu0 %v2663_v62, %s7924_s19  ;;  %v947_v22 = vpop.f32.mrf.mxu0 }
 0x19c   : > { %v2061_v31 = vmax.f32 %v2037_v58, 0.0 }
 0x19d   : > { %v2259_v51 = vor.u32 %v2257_v15, %v2256_v1  ;;  %v2260_v9 = vrot.slane %v2256_v1, 4 }
 0x19e   : > { %v2159_v63 = vsel %vm8797_vm14, %v2061_v31, 0.0  ;;  %vm8840_vm14 = vmand %vm2096_vm15, %vm2108_vm9  ;;  %v1502_v31 = vadd.f32 %v8819_v29, %v943_v28  ;;  %v2085_v29 = vadd.s32 5, %v8660_v44  ;;  %v7656_v28 = vld [vmem:[%s10564_s3 + $0x30] sm:$0xff] }
 0x19f   : > { %v2467_v21 = vsel %vm8695_vm3, %v2259_v51, %v2466_v59  ;;  %v2183_v5 = vpack.c.bf16 %v2159_v63, %v2159_v63  ;;  %v7642_v50 = vld [vmem:[#allocation2 + $0x18] sm:$0xff]  ;;  %v337_v63 = vld [vmem:[#allocation2 + $0x48] sm:$0x1] }
 0x1a0   : > { %2468 = vst [vmem:[#allocation2 + $0x24] sm:$0xf] %v2467_v21  ;;  %v3094_v6 = vld [vmem:[#allocation2 + $0x20] sm:$0x1]  ;;  %v8836_v41 = vld [vmem:[#allocation2 + $0x18] sm:$0xff]  ;;  %v2667_v33 = vshll.u32 %v7642_v50, 16 }
 0x1a1   : > { %v2538_v0 = vld [vmem:[#allocation2 + $0x20] sm:$0x1]  ;;  %v2262_v47 = vshrl.u32 %v2183_v5, 16  ;;  %v1990_v23 = vpop.f32.mrf.mxu2  ;;  %v3180_v42 = vunpack.c.l.b16 %v3094_v6  ;;  %v2265_v37 = vshll.u32 %v2183_v5, 16  ;;  %v2665_v4 = vshrl.u32 %v7642_v50, 16  ;;  %v7657_v59 = vld [vmem:[%s10564_s3 + $0x38] sm:$0xff] }
 0x1a2   : > { %v2038_v40 = vadd.f32 %v1990_v23, %v1501_v20  ;;  %v2622_v34 = vunpack.c.l.b16 %v2538_v0  ;;  %v2669_v53 = vrot.slane %v2667_v33, 1  ;;  %v3342_v48 = vrot.slane %v8836_v41, 1  ;;  %2970 = vmatpush.bf16.msrb.mxu3 %v7657_v59  ;;  %v2473_v23 = vld [vmem:[#allocation2 + $0x30] sm:$0xf] }
 0x1a3   : > { %v2264_v45 = vrot.slane %v2262_v47, 7  ;;  %v8844_v18 = vpack.c.b16 %v3180_v42, %v3180_v42  ;;  %v338_v50 = vsel %vm8602_vm11, 0, %v337_v63  ;;  %v946_v47 = vadd.f32 %v8651_v16, %v8828_v52  ;;  %v7655_v52 = vld [vmem:[%s10564_s3 + $0x28] sm:$0xff] }
 0x1a4   : > { %v2062_v12 = vmax.f32 %v2038_v40, 0.0  ;;  %v8848_v38 = vpack.c.b16 %v2622_v34, %v2622_v34  ;;  %v2670_v58 = vor.u32 %v2669_v53, %v2665_v4  ;;  %339 = vst [vmem:[#allocation2 + $0x48] sm:$0x1] %v338_v50  ;;  %vm2097_vm15 = vcmp.ge.s32.totalorder %v2085_v29, 0 }
 0x1a5   : > { %v2267_v25 = vor.u32 %v2265_v37, %v2264_v45  ;;  %v2269_v57 = vrot.slane %v2264_v45, 4  ;;  %v3343_v49 = vrot.slane %v8844_v18, 1  ;;  %vm2109_vm9 = vcmp.lt.s32.totalorder %v2085_v29, 16 }
 0x1a6   : > { %v2160_v39 = vsel %vm8840_vm14, %v2062_v12, 0.0  ;;  %v2672_v62 = vshll.u32 %v8848_v38, 16  ;;  %2971 = vmatpush.bf16.msrb.mxu3 %v7656_v28  ;;  %v1503_v2 = vadd.f32 %v1458_v43, %v946_v47  ;;  %v950_v12 = vpop.f32.mrf.mxu0 }
 0x1a7   : > { %v2268_v1 = vsel %vm8724_vm4, %v2260_v9, %v2267_v25  ;;  %v2471_v15 = vsel %vm8602_vm11, %v2269_v57, %v2470_v26  ;;  %v2184_v10 = vpack.c.bf16 %v2160_v39, %v2160_v39  ;;  %v3344_v19 = vsel %vm758_vm1, %v3342_v48, %v3343_v49  ;;  %v1460_v9 = vpop.f32.mrf.mxu1 }
 0x1a8   : > { %2469 = vst.msk [vmem:[#allocation2 + $0x28] sm:$0xf] %vm2442_vm2, %v2268_v1  ;;  %6987 = vmatmul.msk.bf16.gmra.mxu1 %vm2810_vm13, %v3344_v19  ;;  %v2674_v51 = vrot.slane %v2672_v62, 1  ;;  %v948_v49 = vadd.f32 %v8651_v16, %v947_v22  ;;  %v375_v1 = vld [vmem:[#allocation2 + $0x50] sm:$0x1]  ;;  %v7654_v22 = vld [vmem:[%s10564_s3 + $0x20] sm:$0xff] }
 0x1a9   : > { %2472 = vst [vmem:[#allocation2 + $0x2c] sm:$0x1] %v2471_v15  ;;  %v2271_v21 = vshrl.u32 %v2184_v10, 16  ;;  %v1992_v5 = vpop.f32.mrf.mxu2  ;;  %v2274_v0 = vshll.u32 %v2184_v10, 16  ;;  %v2477_v10 = vld [vmem:[#allocation2 + $0x38] sm:$0x1] }
 0x1aa   : > { %v2039_v13 = vadd.f32 %v1992_v5, %v1502_v31  ;;  %v2675_v20 = vsel %vm589_vm0, %v2670_v58, %v2674_v51  ;;  %2972 = vmatpush.bf16.msrb.mxu3 %v7655_v52  ;;  %v376_v31 = vsel %vm8623_vm12, 0, %v375_v1  ;;  %v7652_v1 = vld [vmem:[%s10564_s3 + $0x10] sm:$0xff] }
 0x1ab   : > { %v2273_v6 = vrot.slane %v2271_v21, 7  ;;  %2764 = vrot.lane.b32.xlu1 %v2675_v20, %s7924_s19  ;;  %377 = vst [vmem:[#allocation2 + $0x50] sm:$0x1] %v376_v31 }
 0x1ac   : > { %v2063_v42 = vmax.f32 %v2039_v13, 0.0 }
 0x1ad   : > { %v2276_v40 = vor.u32 %v2274_v0, %v2273_v6  ;;  %v2277_v51 = vrot.slane %v2273_v6, 4 }
 0x1ae   : > { %v2161_v34 = vsel %vm8840_vm14, %v2063_v42, 0.0  ;;  %vm8890_vm14 = vmand %vm2097_vm15, %vm2109_vm9  ;;  %2973 = vmatpush.bf16.msrb.mxu3 %v7654_v22 }
 0x1af   : > { %v2474_v33 = vsel %vm8695_vm3, %v2276_v40, %v2473_v23  ;;  %v2185_v45 = vpack.c.bf16 %v2161_v34, %v2161_v34  ;;  %v8880_v37 = vld [vmem:[#allocation2 + $0x24] sm:$0xff]  ;;  %v1463_v28 = vpop.f32.mrf.mxu1 }
 0x1b0   : > { %v7643_v26 = vld [vmem:[#allocation2 + $0x24] sm:$0xff]  ;;  %2475 = vst [vmem:[#allocation2 + $0x30] sm:$0xf] %v2474_v33  ;;  %v3097_v4 = vld [vmem:[#allocation2 + $0x2c] sm:$0x1]  ;;  %v3345_v21 = vrot.slane %v8880_v37, 1 }
 0x1b1   : > { %v2541_v53 = vld [vmem:[#allocation2 + $0x2c] sm:$0x1]  ;;  %v2279_v17 = vshrl.u32 %v2185_v45, 16  ;;  %v8885_v25 = vpop.f32.mrf.mxu3  ;;  %v1995_v57 = vpop.f32.mrf.mxu2  ;;  %v3181_v48 = vunpack.c.l.b16 %v3097_v4  ;;  %v2282_v39 = vshll.u32 %v2185_v45, 16  ;;  %v2679_v59 = vshll.u32 %v7643_v26, 16  ;;  %v7653_v33 = vld [vmem:[%s10564_s3 + $0x18] sm:$0xff] }
 0x1b2   : > { %v2040_v58 = vadd.f32 %v1995_v57, %v1503_v2  ;;  %v2623_v62 = vunpack.c.l.b16 %v2541_v53  ;;  %v2677_v47 = vshrl.u32 %v7643_v26, 16  ;;  %v1504_v45 = vadd.f32 %v1460_v9, %v948_v49  ;;  %v340_v2 = vld [vmem:[#allocation2 + $0x54] sm:$0x1]  ;;  %2974 = vmatpush.bf16.msrb.mxu3 %v7653_v33 }
 0x1b3   : > { %v2281_v15 = vrot.slane %v2279_v17, 7  ;;  %v8894_v19 = vpack.c.b16 %v3181_v48, %v3181_v48  ;;  %v2681_v0 = vrot.slane %v2679_v59, 1  ;;  %v341_v57 = vsel %vm8602_vm11, 0, %v340_v2  ;;  %v952_v48 = vpop.f32.mrf.mxu0 }
 0x1b4   : > { %v2064_v63 = vmax.f32 %v2040_v58, 0.0  ;;  %v8902_v5 = vpack.c.b16 %v2623_v62, %v2623_v62  ;;  %342 = vst [vmem:[#allocation2 + $0x54] sm:$0x1] %v341_v57  ;;  %v2086_v62 = vadd.s32 6, %v8660_v44  ;;  %v7650_v57 = vld [vmem:[%s10564_s3] sm:$0xff] }
 0x1b5   : > { %v2284_v50 = vor.u32 %v2282_v39, %v2281_v15  ;;  %v2286_v13 = vrot.slane %v2281_v15, 4  ;;  %v3346_v20 = vrot.slane %v8894_v19, 1  ;;  %v2682_v26 = vor.u32 %v2681_v0, %v2677_v47 }
 0x1b6   : > { %v2162_v29 = vsel %vm8890_vm14, %v2064_v63, 0.0  ;;  %v2684_v23 = vshll.u32 %v8902_v5, 16  ;;  %v951_v15 = vadd.f32 %v8651_v16, %v950_v12  ;;  %2975 = vmatpush.bf16.msrb.mxu3 %v7652_v1  ;;  %vm2098_vm15 = vcmp.ge.s32.totalorder %v2086_v62, 0  ;;  %v7651_v12 = vld [vmem:[%s10564_s3 + $0x8] sm:$0xff] }
 0x1b7   : > { %v2285_v6 = vsel %vm8724_vm4, %v2277_v51, %v2284_v50  ;;  %v2478_v42 = vsel %vm8602_vm11, %v2286_v13, %v2477_v10  ;;  %v2186_v40 = vpack.c.bf16 %v2162_v29, %v2162_v29  ;;  %v3347_v34 = vsel %vm758_vm1, %v3345_v21, %v3346_v20  ;;  %v2480_v10 = vld [vmem:[#allocation2 + $0x3c] sm:$0xf]  ;;  %v1465_v20 = vpop.f32.mrf.mxu1 }
 0x1b8   : > { %2476 = vst.msk [vmem:[#allocation2 + $0x34] sm:$0xf] %vm2442_vm2, %v2285_v6  ;;  %6988 = vmatmul.msk.bf16.gmra.mxu1 %vm2810_vm13, %v3347_v34  ;;  %v2686_v52 = vrot.slane %v2684_v23, 1  ;;  %vm2110_vm9 = vcmp.lt.s32.totalorder %v2086_v62, 16  ;;  %v1505_v13 = vadd.f32 %v1463_v28, %v951_v15 }
 0x1b9   : > { %2479 = vst [vmem:[#allocation2 + $0x38] sm:$0x1] %v2478_v42  ;;  %v2288_v4 = vshrl.u32 %v2186_v40, 16  ;;  %v8918_v53 = vpop.f32.mrf.mxu3  ;;  %v1997_v17 = vpop.f32.mrf.mxu2  ;;  %v2291_v49 = vshll.u32 %v2186_v40, 16  ;;  %v953_v42 = vadd.f32 %v8651_v16, %v952_v48 }
 0x1ba   : > { %v2041_v39 = vadd.f32 %v1997_v17, %v1504_v45  ;;  %v2687_v58 = vsel %vm589_vm0, %v2682_v26, %v2686_v52  ;;  %2976 = vmatpush.bf16.msrb.mxu3 %v7651_v12  ;;  %v378_v45 = vld [vmem:[#allocation2 + $0x5c] sm:$0x1]  ;;  %v2484_v52 = vld [vmem:[#allocation2 + $0x44] sm:$0x1] }
 0x1bb   : > { %v2290_v9 = vrot.slane %v2288_v4, 7  ;;  %2766 = vrot.lane.b32.xlu2 %v2687_v58, %s7924_s19  ;;  %v379_v17 = vsel %vm8623_vm12, 0, %v378_v45 }
 0x1bc   : > { %v2065_v59 = vmax.f32 %v2041_v39, 0.0  ;;  %v955_v39 = vpop.f32.mrf.mxu0  ;;  %380 = vst [vmem:[#allocation2 + $0x5c] sm:$0x1] %v379_v17 }
 0x1bd   : > { %v2293_v31 = vor.u32 %v2291_v49, %v2290_v9  ;;  %v2294_v48 = vrot.slane %v2290_v9, 4  ;;  %v956_v17 = vadd.f32 %v8651_v16, %v955_v39  ;;  %v971_v39 = vadd.f32 %v8651_v16, %v8613_v46 }
 0x1be   : > { %v2163_v22 = vsel %vm8890_vm14, %v2065_v59, 0.0  ;;  %vm8945_vm14 = vmand %vm2098_vm15, %vm2110_vm9  ;;  %2977 = vmatpush.bf16.msrb.mxu3 %v7650_v57  ;;  %v2487_v57 = vld [vmem:[#allocation2 + $0x48] sm:$0xf] }
 0x1bf   : > { %v2481_v51 = vsel %vm8695_vm3, %v2293_v31, %v2480_v10  ;;  %v2187_v63 = vpack.c.bf16 %v2163_v22, %v2163_v22  ;;  %v8933_v21 = vld [vmem:[#allocation2 + $0x30] sm:$0xff] }
 0x1c0   : > { %v8935_v50 = vld [vmem:[#allocation2 + $0x30] sm:$0xff]  ;;  %2482 = vst [vmem:[#allocation2 + $0x3c] sm:$0xf] %v2481_v51  ;;  %v3100_v0 = vld [vmem:[#allocation2 + $0x38] sm:$0x1]  ;;  %v3348_v49 = vrot.slane %v8933_v21, 1 }
 0x1c1   : > { %v2544_v43 = vld [vmem:[#allocation2 + $0x38] sm:$0x1]  ;;  %v2296_v29 = vshrl.u32 %v2187_v63, 16  ;;  %v8940_v47 = vpop.f32.mrf.mxu3  ;;  %v2000_v23 = vpop.f32.mrf.mxu2  ;;  %v3182_v6 = vunpack.c.l.b16 %v3100_v0  ;;  %v2299_v40 = vshll.u32 %v2187_v63, 16  ;;  %v2691_v4 = vshll.u32 %v8935_v50, 16 }
 0x1c2   : > { %v2042_v34 = vadd.f32 %v2000_v23, %v1505_v13  ;;  %v2624_v33 = vunpack.c.l.b16 %v2544_v43  ;;  %v2689_v22 = vshrl.u32 %v8935_v50, 16  ;;  %v1506_v0 = vadd.f32 %v1465_v20, %v953_v42  ;;  %v343_v23 = vld [vmem:[#allocation2 + $0x60] sm:$0x1]  ;;  %v1468_v20 = vpop.f32.mrf.mxu1 }
 0x1c3   : > { %v2298_v26 = vrot.slane %v2296_v29, 7  ;;  %v8949_v2 = vpack.c.b16 %v3182_v6, %v3182_v6  ;;  %v2693_v59 = vrot.slane %v2691_v4, 1  ;;  %v2087_v42 = vadd.s32 7, %v8660_v44 }
 0x1c4   : > { %v2066_v58 = vmax.f32 %v2042_v34, 0.0  ;;  %v8958_v62 = vpack.c.b16 %v2624_v33, %v2624_v33  ;;  %v344_v33 = vsel %vm8602_vm11, 0, %v343_v23 }
 0x1c5   : > { %v2301_v1 = vor.u32 %v2299_v40, %v2298_v26  ;;  %v2303_v15 = vrot.slane %v2298_v26, 4  ;;  %v3349_v10 = vrot.slane %v8949_v2, 1  ;;  %v2694_v43 = vor.u32 %v2693_v59, %v2689_v22  ;;  %345 = vst [vmem:[#allocation2 + $0x60] sm:$0x1] %v344_v33 }
 0x1c6   : > { %v2164_v31 = vsel %vm8945_vm14, %v2066_v58, 0.0  ;;  %v2696_v9 = vshll.u32 %v8958_v62, 16  ;;  %vm2099_vm15 = vcmp.ge.s32.totalorder %v2087_v42, 0  ;;  %vm2111_vm9 = vcmp.lt.s32.totalorder %v2087_v42, 16 }
 0x1c7   : > { %v2302_v51 = vsel %vm8724_vm4, %v2294_v48, %v2301_v1  ;;  %v2485_v63 = vsel %vm8602_vm11, %v2303_v15, %v2484_v52  ;;  %v2188_v12 = vpack.c.bf16 %v2164_v31, %v2164_v31  ;;  %v3350_v13 = vsel %vm758_vm1, %v3348_v49, %v3349_v10  ;;  %v957_v49 = vpop.f32.mrf.mxu0 }
 0x1c8   : > { %2483 = vst.msk [vmem:[#allocation2 + $0x40] sm:$0xf] %vm2442_vm2, %v2302_v51  ;;  %6989 = vmatmul.msk.bf16.gmra.mxu1 %vm2810_vm13, %v3350_v13  ;;  %v2698_v29 = vrot.slane %v2696_v9, 1  ;;  %v1507_v22 = vadd.f32 %v1468_v20, %v956_v17  ;;  %v958_v28 = vadd.f32 %v8651_v16, %v957_v49 }
 0x1c9   : > { %2486 = vst [vmem:[#allocation2 + $0x44] sm:$0x1] %v2485_v63  ;;  %v2305_v6 = vshrl.u32 %v2188_v12, 16  ;;  %v2002_v40 = vpop.f32.mrf.mxu2  ;;  %v8972_v34 = vpop.f32.mrf.mxu3  ;;  %v2308_v4 = vshll.u32 %v2188_v12, 16 }
 0x1ca   : > { %v2043_v45 = vadd.f32 %v2002_v40, %v1506_v0  ;;  %v2699_v26 = vsel %vm589_vm0, %v2694_v43, %v2698_v29  ;;  %v381_v40 = vld [vmem:[#allocation2 + $0x68] sm:$0x1] }
 0x1cb   : > { %v2307_v52 = vrot.slane %v2305_v6, 7  ;;  %2768 = vrot.lane.b32.xlu0 %v2699_v26, %s7924_s19  ;;  %v382_v20 = vsel %vm8623_vm12, 0, %v381_v40 }
 0x1cc   : > { %v2067_v48 = vmax.f32 %v2043_v45, 0.0  ;;  %v2491_v45 = vld [vmem:[#allocation2 + $0x50] sm:$0x1]  ;;  %383 = vst [vmem:[#allocation2 + $0x68] sm:$0x1] %v382_v20 }
 0x1cd   : > { %v2310_v58 = vor.u32 %v2308_v4, %v2307_v52  ;;  %v2311_v17 = vrot.slane %v2307_v52, 4 }
 0x1ce   : > { %v2165_v1 = vsel %vm8945_vm14, %v2067_v48, 0.0  ;;  %vm8995_vm14 = vmand %vm2099_vm15, %vm2111_vm9 }
 0x1cf   : > { %v2488_v15 = vsel %vm8695_vm3, %v2310_v58, %v2487_v57  ;;  %v2189_v10 = vpack.c.bf16 %v2165_v1, %v2165_v1  ;;  %v8984_v59 = vld [vmem:[#allocation2 + $0x3c] sm:$0xff]  ;;  %v1470_v1 = vpop.f32.mrf.mxu1 }
 0x1d0   : > { %v8986_v31 = vld [vmem:[#allocation2 + $0x3c] sm:$0xff]  ;;  %2489 = vst [vmem:[#allocation2 + $0x48] sm:$0xf] %v2488_v15  ;;  %v3103_v9 = vld [vmem:[#allocation2 + $0x44] sm:$0x1]  ;;  %v3351_v48 = vrot.slane %v8984_v59, 1 }
 0x1d1   : > { %v2547_v51 = vld [vmem:[#allocation2 + $0x44] sm:$0x1]  ;;  %v2313_v63 = vshrl.u32 %v2189_v10, 16  ;;  %v1483_v12 = vpop.f32.mrf.mxu3  ;;  %v2005_v13 = vpop.f32.mrf.mxu2  ;;  %v3183_v0 = vunpack.c.l.b16 %v3103_v9  ;;  %v2316_v43 = vshll.u32 %v2189_v10, 16  ;;  %v2703_v4 = vshll.u32 %v8986_v31, 16 }
 0x1d2   : > { %v8991_v29 = vadd.f32 %v1483_v12, %v971_v39  ;;  %v2044_v23 = vadd.f32 %v2005_v13, %v1507_v22  ;;  %v2625_v6 = vunpack.c.l.b16 %v2547_v51  ;;  %v2701_v22 = vshrl.u32 %v8986_v31, 16 }
 0x1d3   : > { %v2315_v33 = vrot.slane %v2313_v63, 7  ;;  %v8999_v26 = vpack.c.b16 %v3183_v0, %v3183_v0  ;;  %v2705_v10 = vrot.slane %v2703_v4, 1  ;;  %v1508_v13 = vadd.f32 %v1470_v1, %v958_v28 }
 0x1d4   : > { %10611 = vst [vmem:[#allocation9_spill] sm:$0xff] %v8991_v29  ;;  %v2068_v57 = vmax.f32 %v2044_v23, 0.0  ;;  %v9005_v58 = vpack.c.b16 %v2625_v6, %v2625_v6  ;;  %v346_v23 = vld [vmem:[#allocation2 + $0x6c] sm:$0x1]  ;;  %v2088_v28 = vadd.s32 8, %v8660_v44  ;;  %v961_v1 = vadd.f32 %v8651_v16, %v8573_v7 }
 0x1d5   : > { %v2318_v49 = vor.u32 %v2316_v43, %v2315_v33  ;;  %v2320_v42 = vrot.slane %v2315_v33, 4  ;;  %v3352_v15 = vrot.slane %v8999_v26, 1  ;;  %v2706_v0 = vor.u32 %v2705_v10, %v2701_v22 }
 0x1d6   : > { %v2166_v39 = vsel %vm8995_vm14, %v2068_v57, 0.0  ;;  %v2708_v9 = vshll.u32 %v9005_v58, 16  ;;  %v347_v4 = vsel %vm8602_vm11, 0, %v346_v23  ;;  %vm2100_vm15 = vcmp.ge.s32.totalorder %v2088_v28, 0 }
 0x1d7   : > { %v2319_v52 = vsel %vm8724_vm4, %v2311_v17, %v2318_v49  ;;  %v2492_v51 = vsel %vm8602_vm11, %v2320_v42, %v2491_v45  ;;  %v2190_v63 = vpack.c.bf16 %v2166_v39, %v2166_v39  ;;  %v3353_v12 = vsel %vm758_vm1, %v3351_v48, %v3352_v15  ;;  %348 = vst [vmem:[#allocation2 + $0x6c] sm:$0x1] %v347_v4  ;;  %v2494_v48 = vld [vmem:[#allocation2 + $0x54] sm:$0xf] }
 0x1d8   : > { %2490 = vst.msk [vmem:[#allocation2 + $0x4c] sm:$0xf] %vm2442_vm2, %v2319_v52  ;;  %6990 = vmatmul.msk.bf16.gmra.mxu1 %vm2810_vm13, %v3353_v12  ;;  %v2710_v43 = vrot.slane %v2708_v9, 1  ;;  %vm2112_vm9 = vcmp.lt.s32.totalorder %v2088_v28, 16  ;;  %v9039_v52 = vld [vmem:[%s10563_s2] ss:$0 sm:$0xff]  ;;  %v1509_v16 = vadd.f32 %v8885_v25, %v961_v1 }
 0x1d9   : > { %2493 = vst [vmem:[#allocation2 + $0x50] sm:$0x1] %v2492_v51  ;;  %v2322_v6 = vshrl.u32 %v2190_v63, 16  ;;  %v2007_v40 = vpop.f32.mrf.mxu2  ;;  %v9019_v33 = vpop.f32.mrf.mxu3  ;;  %v2325_v57 = vshll.u32 %v2190_v63, 16  ;;  %v976_v7 = vadd.f32 %v9039_v52, %v8633_v32  ;;  %v963_v63 = vadd.f32 %v9039_v52, %v8581_v35  ;;  %v2498_v32 = vld [vmem:[#allocation2 + $0x5c] sm:$0x1] }
 0x1da   : > { %10614 = vst [vmem:[#allocation10_spill] sm:$0xff] %v9019_v33  ;;  %v2045_v45 = vadd.f32 %v2007_v40, %v1508_v13  ;;  %v2711_v20 = vsel %vm589_vm0, %v2706_v0, %v2710_v43  ;;  %v3676_v33 = vld [vmem:[#allocation2 + $0x44] sm:$0x1] }
 0x1db   : > { %v2324_v17 = vrot.slane %v2322_v6, 7  ;;  %2770 = vrot.lane.b32.xlu1 %v2711_v20, %s7924_s19 }
 0x1dc   : > { %v2069_v49 = vmax.f32 %v2045_v45, 0.0  ;;  %v384_v45 = vld [vmem:[#allocation2 + $0x74] sm:$0x1] }
 0x1dd   : > { %v2327_v42 = vor.u32 %v2325_v57, %v2324_v17 }
 0x1de   : > { %v2167_v15 = vsel %vm8995_vm14, %v2069_v49, 0.0  ;;  %vm9050_vm14 = vmand %vm2100_vm15, %vm2112_vm9  ;;  %v2328_v49 = vrot.slane %v2324_v17, 4 }
 0x1df   : > { %v2495_v10 = vsel %vm8695_vm3, %v2327_v42, %v2494_v48  ;;  %v2191_v39 = vpack.c.bf16 %v2167_v15, %v2167_v15  ;;  %v9032_v22 = vld [vmem:[#allocation2 + $0x48] sm:$0xff]  ;;  %v385_v48 = vsel %vm8623_vm12, 0, %v384_v45 }
 0x1e0   : > { %v9034_v9 = vld [vmem:[#allocation2 + $0x48] sm:$0xff]  ;;  %2496 = vst [vmem:[#allocation2 + $0x54] sm:$0xf] %v2495_v10  ;;  %v3106_v46 = vld [vmem:[#allocation2 + $0x50] sm:$0x1]  ;;  %v3354_v15 = vrot.slane %v9032_v22, 1 }
 0x1e1   : > { %v2550_v51 = vld [vmem:[#allocation2 + $0x50] sm:$0x1]  ;;  %v2330_v12 = vshrl.u32 %v2191_v39, 16  ;;  %v1488_v13 = vpop.f32.mrf.mxu3  ;;  %v2010_v0 = vpop.f32.mrf.mxu2  ;;  %v3184_v43 = vunpack.c.l.b16 %v3106_v46  ;;  %v2333_v23 = vshll.u32 %v2191_v39, 16  ;;  %v2715_v35 = vshll.u32 %v9034_v9, 16 }
 0x1e2   : > { %v9046_v6 = vadd.f32 %v1488_v13, %v976_v7  ;;  %v2046_v40 = vadd.f32 %v2010_v0, %v1509_v16  ;;  %v2626_v4 = vunpack.c.l.b16 %v2550_v51  ;;  %386 = vst [vmem:[#allocation2 + $0x74] sm:$0x1] %v385_v48  ;;  %v2713_v17 = vshrl.u32 %v9034_v9, 16 }
 0x1e3   : > { %v2332_v20 = vrot.slane %v2330_v12, 7  ;;  %v9054_v57 = vpack.c.b16 %v3184_v43, %v3184_v43  ;;  %v2717_v51 = vrot.slane %v2715_v35, 1  ;;  %v7661_v35 = vld [vmem:[%s10564_s3 + $0x58] sm:$0xff] }
 0x1e4   : > { %10615 = vst [vmem:[#allocation11_spill] sm:$0xff] %v9046_v6  ;;  %v2070_v42 = vmax.f32 %v2046_v40, 0.0  ;;  %v2761_v1 = vpop.permute.xlu2 %2760  ;;  %v9060_v10 = vpack.c.b16 %v2626_v4, %v2626_v4  ;;  %3033 = vmatpush.bf16.msra.mxu3 %v7661_v35 }
 0x1e5   : > { %v2335_v28 = vor.u32 %v2333_v23, %v2332_v20  ;;  %v2337_v39 = vrot.slane %v2332_v20, 4  ;;  %v2812_v7 = vsel %vm2810_vm13, %v8751_v55, %v2761_v1  ;;  %v3355_v16 = vrot.slane %v9054_v57, 1  ;;  %v2501_v1 = vld [vmem:[#allocation2 + $0x60] sm:$0xf] }
 0x1e6   : > { %v2168_v46 = vsel %vm9050_vm14, %v2070_v42, 0.0  ;;  %2978 = vmatmul.bf16.vlgmr.msrb.gmra.mxu3 %v2812_v7  ;;  %v2720_v12 = vshll.u32 %v9060_v10, 16  ;;  %v1510_v23 = vadd.f32 %v8918_v53, %v963_v63  ;;  %v2718_v40 = vor.u32 %v2717_v51, %v2713_v17 }
 0x1e7   : > { %v2336_v13 = vsel %vm8724_vm4, %v2328_v49, %v2335_v28  ;;  %v2499_v0 = vsel %vm8602_vm11, %v2337_v39, %v2498_v32  ;;  %v2192_v43 = vpack.c.bf16 %v2168_v46, %v2168_v46  ;;  %v3356_v55 = vsel %vm758_vm1, %v3354_v15, %v3355_v16  ;;  %v6704_v49 = vld [vmem:[%s8008_s15 + $0x98] sm:$0x1]  ;;  %v9085_v39 = vld [vmem:[%s8008_s15 + $0x90] sm:$0xff] }
 0x1e8   : > { %2497 = vst.msk [vmem:[#allocation2 + $0x58] sm:$0xf] %vm2442_vm2, %v2336_v13  ;;  %6991 = vmatmul.msk.bf16.gmra.mxu1 %vm2810_vm13, %v3356_v55  ;;  %v2722_v4 = vrot.slane %v2720_v12, 1  ;;  %v2089_v63 = vadd.s32 9, %v8660_v44  ;;  %v1636_v7 = vunpack.c.l.b16 %v6704_v49  ;;  %v966_v16 = vadd.f32 %v9039_v52, %v8591_v54 }
 0x1e9   : > { %2500 = vst [vmem:[#allocation2 + $0x5c] sm:$0x1] %v2499_v0  ;;  %v2339_v45 = vshrl.u32 %v2192_v43, 16  ;;  %v2012_v20 = vpop.f32.mrf.mxu2  ;;  %v2342_v53 = vshll.u32 %v2192_v43, 16  ;;  %v968_v13 = vadd.f32 %v9039_v52, %v8595_v56  ;;  %v1771_v56 = vshrl.u32 %v9085_v39, 16 }
 0x1ea   : > { %v2723_v32 = vsel %vm589_vm0, %v2718_v40, %v2722_v4  ;;  %v2047_v48 = vadd.f32 %v2012_v20, %v1510_v23  ;;  %vm2101_vm15 = vcmp.ge.s32.totalorder %v2089_v63, 0  ;;  %vm2113_vm9 = vcmp.lt.s32.totalorder %v2089_v63, 16 }
 0x1eb   : > { %v2341_v42 = vrot.slane %v2339_v45, 7  ;;  %2772 = vrot.lane.b32.xlu2 %v2723_v32, %s7924_s19  ;;  %v1511_v0 = vadd.f32 %v8940_v47, %v966_v16  ;;  %v9100_v4 = vpack.c.b16 %v1636_v7, %v1636_v7  ;;  %v1773_v45 = vshll.u32 %v9085_v39, 16 }
 0x1ec   : > { %v2071_v15 = vmax.f32 %v2047_v48, 0.0 }
 0x1ed   : > { %v2344_v28 = vor.u32 %v2342_v53, %v2341_v42  ;;  %v2345_v52 = vrot.slane %v2341_v42, 4 }
 0x1ee   : > { %v2169_v46 = vsel %vm9050_vm14, %v2071_v15, 0.0  ;;  %vm9107_vm14 = vmand %vm2101_vm15, %vm2113_vm9 }
 0x1ef   : > { %v2502_v17 = vsel %vm8695_vm3, %v2344_v28, %v2501_v1  ;;  %v2193_v51 = vpack.c.bf16 %v2169_v46, %v2169_v46  ;;  %v9093_v12 = vld [vmem:[#allocation2 + $0x54] sm:$0xff]  ;;  %v2505_v1 = vld [vmem:[#allocation2 + $0x68] sm:$0x1] }
 0x1f0   : > { %2503 = vst [vmem:[#allocation2 + $0x60] sm:$0xf] %v2502_v17  ;;  %v3109_v43 = vld [vmem:[#allocation2 + $0x5c] sm:$0x1]  ;;  %v9098_v25 = vld [vmem:[#allocation2 + $0x54] sm:$0xff]  ;;  %v2727_v32 = vshll.u32 %v9093_v12, 16 }
 0x1f1   : > { %v2553_v55 = vld [vmem:[#allocation2 + $0x5c] sm:$0x1]  ;;  %v2347_v54 = vshrl.u32 %v2193_v51, 16  ;;  %v2015_v23 = vpop.f32.mrf.mxu2  ;;  %v3185_v40 = vunpack.c.l.b16 %v3109_v43  ;;  %v2350_v48 = vshll.u32 %v2193_v51, 16  ;;  %v2725_v7 = vshrl.u32 %v9093_v12, 16 }
 0x1f2   : > { %v2048_v20 = vadd.f32 %v2015_v23, %v1511_v0  ;;  %v2627_v35 = vunpack.c.l.b16 %v2553_v55  ;;  %v2729_v16 = vrot.slane %v2727_v32, 1  ;;  %v3357_v42 = vrot.slane %v9098_v25, 1 }
 0x1f3   : > { %v2349_v47 = vrot.slane %v2347_v54, 7  ;;  %v9111_v53 = vpack.c.b16 %v3185_v40, %v3185_v40  ;;  %v1775_v55 = vrot.slane %v1773_v45, 1 }
 0x1f4   : > { %v2072_v15 = vmax.f32 %v2048_v20, 0.0  ;;  %v9113_v28 = vpack.c.b16 %v2627_v35, %v2627_v35  ;;  %v2730_v0 = vor.u32 %v2729_v16, %v2725_v7  ;;  %v1512_v35 = vadd.f32 %v8972_v34, %v968_v13  ;;  %v2508_v13 = vld [vmem:[#allocation2 + $0x6c] sm:$0xf] }
 0x1f5   : > { %v2352_v46 = vor.u32 %v2350_v48, %v2349_v47  ;;  %v2354_v17 = vrot.slane %v2349_v47, 4  ;;  %v3358_v63 = vrot.slane %v9111_v53, 1  ;;  %v1778_v47 = vshll.u32 %v9100_v4, 16  ;;  %v6707_v48 = vld [vmem:[%s8008_s15 + $0xa4] sm:$0x1] }
 0x1f6   : > { %10620 = vst [vmem:[#allocation12_spill] sm:$0xff] %v9113_v28  ;;  %v2170_v51 = vsel %vm9107_vm14, %v2072_v15, 0.0  ;;  %v2732_v43 = vshll.u32 %v9113_v28, 16  ;;  %v1637_v34 = vunpack.c.l.b16 %v6707_v48 }
 0x1f7   : > { %v2353_v54 = vsel %vm8724_vm4, %v2345_v52, %v2352_v46  ;;  %v2506_v23 = vsel %vm8602_vm11, %v2354_v17, %v2505_v1  ;;  %v2194_v40 = vpack.c.bf16 %v2170_v51, %v2170_v51  ;;  %v3359_v20 = vsel %vm758_vm1, %v3357_v42, %v3358_v63 }
 0x1f8   : > { %2504 = vst.msk [vmem:[#allocation2 + $0x64] sm:$0xf] %vm2442_vm2, %v2353_v54  ;;  %6992 = vmatmul.msk.bf16.gmra.mxu1 %vm2810_vm13, %v3359_v20  ;;  %v2734_v32 = vrot.slane %v2732_v43, 1  ;;  %v1776_v17 = vor.u32 %v1775_v55, %v1771_v56  ;;  %v1780_v42 = vrot.slane %v1778_v47, 1  ;;  %v9136_v43 = vld [vmem:[%s8008_s15 + $0x9c] sm:$0xff]  ;;  %v9140_v20 = vpack.c.b16 %v1637_v34, %v1637_v34 }
 0x1f9   : > { %2507 = vst [vmem:[#allocation2 + $0x68] sm:$0x1] %v2506_v23  ;;  %v2356_v45 = vshrl.u32 %v2194_v40, 16  ;;  %v2017_v52 = vpop.f32.mrf.mxu2  ;;  %v2359_v16 = vshll.u32 %v2194_v40, 16  ;;  %v3667_v54 = vld [vmem:[#allocation2 + $0x20] sm:$0x1] }
 0x1fa   : > { %v2735_v15 = vsel %vm589_vm0, %v2730_v0, %v2734_v32  ;;  %v2049_v1 = vadd.f32 %v2017_v52, %v1512_v35  ;;  %v3670_v35 = vld [vmem:[#allocation2 + $0x2c] sm:$0x1]  ;;  %v1781_v56 = vsel %vm589_vm0, %v1776_v17, %v1780_v42  ;;  %v1851_v52 = vrot.slane %v9136_v43, 1 }
 0x1fb   : > { %v2358_v7 = vrot.slane %v2356_v45, 7  ;;  %2774 = vrot.lane.b32.xlu0 %v2735_v15, %s7924_s19  ;;  %v3755_v45 = vunpack.c.l.b16 %v3667_v54  ;;  %v3756_v34 = vunpack.c.l.b16 %v3670_v35  ;;  %v1852_v42 = vrot.slane %v9140_v20, 1 }
 0x1fc   : > { %v2073_v46 = vmax.f32 %v2049_v1, 0.0 }
 0x1fd   : > { %v2361_v63 = vor.u32 %v2359_v16, %v2358_v7  ;;  %v9149_v16 = vld [vmem:[#allocation2 + $0x24] sm:$0xff] }
 0x1fe   : > { %v2171_v51 = vsel %vm9107_vm14, %v2073_v46, 0.0 }
 0x1ff   : > { %v2509_v0 = vsel %vm8695_vm3, %v2361_v63, %v2508_v13  ;;  %v2195_v23 = vpack.c.bf16 %v2171_v51, %v2171_v51  ;;  %v9142_v40 = vld [vmem:[#allocation2 + $0x60] sm:$0xff]  ;;  %v2362_v63 = vrot.slane %v2358_v7, 4  ;;  %v2512_v51 = vld [vmem:[#allocation2 + $0x74] sm:$0x1]  ;;  %v9164_v7 = vpack.c.b16 %v3756_v34, %v3756_v34  ;;  %v9175_v34 = vld [vmem:[#allocation2 + $0x18] sm:$0xff] }
 0x200   : > { %2510 = vst [vmem:[#allocation2 + $0x6c] sm:$0xf] %v2509_v0  ;;  %v3112_v55 = vld [vmem:[#allocation2 + $0x68] sm:$0x1]  ;;  %v9145_v49 = vld [vmem:[#allocation2 + $0x60] sm:$0xff]  ;;  %v2739_v1 = vshll.u32 %v9142_v40, 16 }
 0x201   : > { %v2556_v32 = vld [vmem:[#allocation2 + $0x68] sm:$0x1]  ;;  %v2364_v47 = vshrl.u32 %v2195_v23, 16  ;;  %v3186_v48 = vunpack.c.l.b16 %v3112_v55  ;;  %v2367_v46 = vshll.u32 %v2195_v23, 16  ;;  %v2737_v54 = vshrl.u32 %v9142_v40, 16  ;;  %v7660_v23 = vld [vmem:[%s10564_s3 + $0x50] sm:$0xff] }
 0x202   : > { %v2628_v15 = vunpack.c.l.b16 %v2556_v32  ;;  %v2741_v55 = vrot.slane %v2739_v1, 1  ;;  %v3360_v60 = vrot.slane %v9145_v49, 1  ;;  %10622 = vst [vmem:[#allocation14_spill] sm:$0xff] %v9164_v7  ;;  %3034 = vmatpush.bf16.msra.mxu3 %v7660_v23 }
 0x203   : > { %v2366_v13 = vrot.slane %v2364_v47, 7  ;;  %1814 = vrot.lane.b32.xlu0 %v1781_v56, %s7921_s16  ;;  %v9152_v17 = vpack.c.b16 %v3186_v48, %v3186_v48  ;;  %v3790_v48 = vshll.u32 %v9149_v16, 16 }
 0x204   : > { %v9155_v0 = vpack.c.b16 %v2628_v15, %v2628_v15  ;;  %v2742_v56 = vor.u32 %v2741_v55, %v2737_v54  ;;  %v9177_v55 = vpack.c.b16 %v3755_v45, %v3755_v45  ;;  %v3226_v45 = vshll.u32 %v8880_v37, 16 }
 0x205   : > { %v2369_v32 = vor.u32 %v2367_v46, %v2366_v13  ;;  %v2371_v11 = vrot.slane %v2366_v13, 4  ;;  %v3361_v35 = vrot.slane %v9152_v17, 1  ;;  %v1853_v46 = vsel %vm758_vm1, %v1851_v52, %v1852_v42 }
 0x206   : > { %10621 = vst [vmem:[#allocation13_spill] sm:$0xff] %v9155_v0  ;;  %v2744_v47 = vshll.u32 %v9155_v0, 16  ;;  %v1849_v52 = vrot.slane %v9100_v4, 1  ;;  %v3778_v42 = vshll.u32 %v9175_v34, 16  ;;  %v3783_v23 = vshll.u32 %v9177_v55, 16 }
 0x207   : > { %v2370_v15 = vsel %vm8724_vm4, %v2362_v63, %v2369_v32  ;;  %v2513_v1 = vsel %vm8602_vm11, %v2371_v11, %v2512_v51  ;;  %v3362_v13 = vsel %vm758_vm1, %v3360_v60, %v3361_v35  ;;  %10623 = vst [vmem:[#allocation15_spill] sm:$0xff] %v9177_v55  ;;  %v3792_v32 = vrot.slane %v3790_v48, 1  ;;  %v3679_v4 = vld [vmem:[#allocation2 + $0x50] sm:$0x1] }
 0x208   : > { %2511 = vst.msk [vmem:[#allocation2 + $0x70] sm:$0xf] %vm2442_vm2, %v2370_v15  ;;  %6993 = vmatmul.msk.bf16.gmra.mxu1 %vm2810_vm13, %v3362_v13  ;;  %v2746_v54 = vrot.slane %v2744_v47, 1  ;;  %v3795_v11 = vshll.u32 %v9164_v7, 16  ;;  %v3788_v60 = vshrl.u32 %v9149_v16, 16  ;;  %v1848_v51 = vrot.slane %v9085_v39, 1 }
 0x209   : > { %2514 = vst [vmem:[#allocation2 + $0x74] sm:$0x1] %v2513_v1  ;;  %v3776_v1 = vshrl.u32 %v9175_v34, 16  ;;  %v3780_v7 = vrot.slane %v3778_v42, 1  ;;  %v3228_v0 = vrot.slane %v3226_v45, 1  ;;  %v3759_v24 = vunpack.c.l.b16 %v3679_v4 }
 0x20a   : > { %v2747_v63 = vsel %vm589_vm0, %v2742_v56, %v2746_v54  ;;  %v9189_v56 = vld [vmem:[#allocation2 + $0xc] sm:$0xff]  ;;  %v3793_v48 = vor.u32 %v3792_v32, %v3788_v60  ;;  %v3797_v15 = vrot.slane %v3795_v11, 1 }
 0x20b   : > { %1876 = vrot.lane.b32.xlu0 %v1853_v46, %s7922_s17  ;;  %2776 = vrot.lane.b32.xlu1 %v2747_v63, %s7924_s19  ;;  %v1850_v46 = vsel %vm758_vm1, %v1848_v51, %v1849_v52  ;;  %v3231_v63 = vshll.u32 %v8894_v19, 16  ;;  %v3214_v51 = vshll.u32 %v8836_v41, 16  ;;  %v3224_v52 = vshrl.u32 %v8880_v37, 16 }
 0x20c   : > { %v3798_v11 = vsel %vm589_vm0, %v3793_v48, %v3797_v15 }
 0x20d   : > { %v2763_v35 = vpop.permute.xlu0 %2762  ;;  %v3233_v45 = vrot.slane %v3231_v63, 1 }
 0x20e   : > { %v2815_v47 = vsel %vm2810_vm13, %v9189_v56, %v2763_v35  ;;  %v3785_v35 = vrot.slane %v3783_v23, 1  ;;  %v3781_v23 = vor.u32 %v3780_v7, %v3776_v1 }
 0x20f   : > { %2983 = vmatmul.bf16.gmra.mxu3 %v2815_v47  ;;  %v9194_v13 = vld [vmem:[#allocation2 + $0x6c] sm:$0xff] }
 0x210   : > { %v3115_v54 = vld [vmem:[#allocation2 + $0x74] sm:$0x1]  ;;  %v9198_v36 = vld [vmem:[#allocation2 + $0x6c] sm:$0xff]  ;;  %v2751_v60 = vshll.u32 %v9194_v13, 16  ;;  %v2749_v48 = vshrl.u32 %v9194_v13, 16  ;;  %v3786_v3 = vsel %vm589_vm0, %v3781_v23, %v3785_v35 }
 0x211   : > { %v2559_v55 = vld [vmem:[#allocation2 + $0x74] sm:$0x1]  ;;  %v3187_v6 = vunpack.c.l.b16 %v3115_v54  ;;  %v9202_v47 = vld [vmem:[#allocation2 + $0x48] sm:$0xff]  ;;  %v3363_v4 = vrot.slane %v9198_v36, 1  ;;  %v3229_v54 = vor.u32 %v3228_v0, %v3224_v52  ;;  %v3216_v52 = vrot.slane %v3214_v51, 1 }
 0x212   : > { %v2629_v32 = vunpack.c.l.b16 %v2559_v55  ;;  %v1785_v55 = vshll.u32 %v9136_v43, 16  ;;  %v2753_v15 = vrot.slane %v2751_v60, 1  ;;  %v3826_v37 = vshll.u32 %v9202_v47, 16 }
 0x213   : > { %3897 = vrot.lane.b32.xlu0 %v3798_v11, %s7924_s19  ;;  %1874 = vrot.lane.b32.xlu1 %v1850_v46, %s7922_s17  ;;  %v9207_v19 = vpack.c.b16 %v3187_v6, %v3187_v6  ;;  %v9217_v11 = vpack.c.b16 %v3759_v24, %v3759_v24  ;;  %v1790_v60 = vshll.u32 %v9140_v20, 16  ;;  %v9226_v24 = vld [vmem:[#allocation2 + $0x3c] sm:$0xff] }
 0x214   : > { %v9210_v42 = vpack.c.b16 %v2629_v32, %v2629_v32  ;;  %v2754_v6 = vor.u32 %v2753_v15, %v2749_v48  ;;  %v1783_v32 = vshrl.u32 %v9136_v43, 16  ;;  %v1787_v63 = vrot.slane %v1785_v55, 1  ;;  %v9234_v20 = vld [vmem:[#allocation2 + $0x18] sm:$0xff] }
 0x215   : > { %v3364_v41 = vrot.slane %v9207_v19, 1  ;;  %10625 = vst [vmem:[#allocation17_spill] sm:$0xff] %v9217_v11  ;;  %v3219_v48 = vshll.u32 %v8844_v18, 16  ;;  %v3758_v15 = vunpack.c.l.b16 %v3676_v33  ;;  %v3831_v55 = vshll.u32 %v9217_v11, 16 }
 0x216   : > { %10624 = vst [vmem:[#allocation16_spill] sm:$0xff] %v9210_v42  ;;  %v2756_v46 = vshll.u32 %v9210_v42, 16  ;;  %v3234_v42 = vsel %vm589_vm0, %v3229_v54, %v3233_v45  ;;  %v3212_v18 = vshrl.u32 %v9234_v20, 16  ;;  %v1788_v51 = vor.u32 %v1787_v63, %v1783_v32  ;;  %v9238_v45 = vld [vmem:[#allocation2 + $0xc] sm:$0xff] }
 0x217   : > { %v3365_v7 = vsel %vm758_vm1, %v3363_v4, %v3364_v41  ;;  %v3828_v4 = vrot.slane %v3826_v37, 1  ;;  %v1792_v41 = vrot.slane %v1790_v60, 1  ;;  %v3824_v33 = vshrl.u32 %v9202_v47, 16  ;;  %v9244_v37 = vld [vmem:[#allocation2 + $0x18] sm:$0xff] }
 0x218   : > { %v2758_v1 = vrot.slane %v2756_v46, 1  ;;  %6994 = vmatmul.msk.bf16.gmra.mxu1 %vm2810_vm13, %v3365_v7  ;;  %v3202_v35 = vshll.u32 %v9238_v45, 16  ;;  %v3217_v54 = vor.u32 %v3216_v52, %v3212_v18  ;;  %v3221_v46 = vrot.slane %v3219_v48, 1 }
 0x219   : > { %v3829_v7 = vor.u32 %v3828_v4, %v3824_v33  ;;  %v3262_v63 = vshll.u32 %v9032_v22, 16  ;;  %v1793_v60 = vsel %vm589_vm0, %v1788_v51, %v1792_v41  ;;  %v3207_v48 = vshll.u32 %v8801_v8, 16  ;;  %v9259_v41 = vld [vmem:[#allocation2 + $0x6c] sm:$0xff] }
 0x21a   : > { %v2759_v0 = vsel %vm589_vm0, %v2754_v6, %v2758_v1  ;;  %v9241_v6 = vpack.c.b16 %v3758_v15, %v3758_v15  ;;  %v3833_v1 = vrot.slane %v3831_v55, 1  ;;  %v3204_v52 = vrot.slane %v3202_v35, 1 }
 0x21b   : > { %2778 = vrot.lane.b32.xlu2 %v2759_v0, %s7924_s19  ;;  %3323 = vrot.lane.b32.xlu0 %v3234_v42, %s7924_s19  ;;  %v3814_v42 = vshll.u32 %v9226_v24, 16  ;;  %v3688_v0 = vld [vmem:[#allocation2 + $0x74] sm:$0x1]  ;;  %v3222_v18 = vsel %vm589_vm0, %v3217_v54, %v3221_v46  ;;  %v3200_v28 = vshrl.u32 %v9238_v45, 16  ;;  %v3264_v55 = vrot.slane %v3262_v63, 1 }
 0x21c   : > { %3895 = vrot.lane.b32.xlu1 %v3786_v3, %s7924_s19  ;;  %v3673_v3 = vld [vmem:[#allocation2 + $0x38] sm:$0x1]  ;;  %v3819_v29 = vshll.u32 %v9241_v6, 16  ;;  %v3834_v4 = vsel %vm589_vm0, %v3829_v7, %v3833_v1  ;;  %v3267_v51 = vshll.u32 %v9054_v57, 16  ;;  %v3762_v8 = vunpack.c.l.b16 %v3688_v0 }
 0x21d   : > { %v2765_v23 = vpop.permute.xlu1 %2764  ;;  %v3757_v15 = vunpack.c.l.b16 %v3673_v3  ;;  %v3816_v11 = vrot.slane %v3814_v42, 1  ;;  %v3812_v33 = vshrl.u32 %v9226_v24, 16  ;;  %v3260_v35 = vshrl.u32 %v9032_v22, 16 }
 0x21e   : > { %v2818_v32 = vsel %vm2810_vm13, %v9244_v37, %v2765_v23  ;;  %v9254_v23 = vld [vmem:[#allocation2 + $0x30] sm:$0xff]  ;;  %v3205_v54 = vor.u32 %v3204_v52, %v3200_v28  ;;  %v3209_v46 = vrot.slane %v3207_v48, 1  ;;  %v3250_v7 = vshll.u32 %v8984_v59, 16 }
 0x21f   : > { %2988 = vmatmul.bf16.gmra.mxu3 %v2818_v32  ;;  %v9265_v42 = vpack.c.b16 %v3757_v15, %v3757_v15  ;;  %v3817_v3 = vor.u32 %v3816_v11, %v3812_v33  ;;  %v3821_v32 = vrot.slane %v3819_v29, 1  ;;  %v3802_v57 = vshll.u32 %v9254_v23, 16 }
 0x220   : > { %v3265_v1 = vor.u32 %v3264_v55, %v3260_v35  ;;  %v3269_v63 = vrot.slane %v3267_v51, 1  ;;  %v3862_v0 = vshll.u32 %v9259_v41, 16  ;;  %v3252_v52 = vrot.slane %v3250_v7, 1  ;;  %v2767_v35 = vpop.permute.xlu2 %2766 }
 0x221   : > { %v3807_v28 = vshll.u32 %v9265_v42, 16  ;;  %v3255_v48 = vshll.u32 %v8999_v26, 16  ;;  %v3804_v11 = vrot.slane %v3802_v57, 1  ;;  %v3822_v33 = vsel %vm589_vm0, %v3817_v3, %v3821_v32 }
 0x222   : > { %v3270_v15 = vsel %vm589_vm0, %v3265_v1, %v3269_v63  ;;  %v3864_v55 = vrot.slane %v3862_v0, 1  ;;  %v3248_v26 = vshrl.u32 %v8984_v59, 16  ;;  %v3238_v3 = vshll.u32 %v8933_v21, 16  ;;  %v9289_v0 = vld [vmem:[#allocation2 + $0x24] sm:$0xff] }
 0x223   : > { %1816 = vrot.lane.b32.xlu2 %v1793_v60, %s7921_s16  ;;  %3903 = vrot.lane.b32.xlu0 %v3834_v4, %s7924_s19  ;;  %v9269_v60 = vpack.c.b16 %v3762_v8, %v3762_v8  ;;  %v3210_v4 = vsel %vm589_vm0, %v3205_v54, %v3209_v46  ;;  %v9279_v8 = vld [vmem:[#allocation2 + $0x60] sm:$0xff]  ;;  %v3800_v54 = vshrl.u32 %v9254_v23, 16  ;;  %v3860_v46 = vshrl.u32 %v9259_v41, 16  ;;  %s7118_s16 = sadd.s32 4294967295, %s6774_s18 }
 0x224   : > { %3321 = vrot.lane.b32.xlu1 %v3222_v18, %s7924_s19  ;;  %v3685_v18 = vld [vmem:[#allocation2 + $0x68] sm:$0x1]  ;;  %v3809_v7 = vrot.slane %v3807_v28, 1  ;;  %v3253_v32 = vor.u32 %v3252_v52, %v3248_v26  ;;  %v3257_v57 = vrot.slane %v3255_v48, 1  ;;  %v3850_v59 = vshll.u32 %v9279_v8, 16 }
 0x225   : > { %v3761_v29 = vunpack.c.l.b16 %v3685_v18  ;;  %v3867_v51 = vshll.u32 %v9269_v60, 16  ;;  %v3805_v1 = vor.u32 %v3804_v11, %v3800_v54  ;;  %v2821_v18 = vsel %vm2810_vm13, %v9289_v0, %v2767_v35  ;;  %v7659_v28 = vld [vmem:[%s10564_s3 + $0x48] sm:$0xff] }
 0x226   : > { %v3240_v48 = vrot.slane %v3238_v3, 1  ;;  %v3243_v11 = vshll.u32 %v8949_v2, 16  ;;  %3035 = vmatpush.bf16.msra.mxu3 %v7659_v28  ;;  %v3852_v35 = vrot.slane %v3850_v59, 1  ;;  %v3848_v2 = vshrl.u32 %v9279_v8, 16 }
 0x227   : > { %v9287_v63 = vpack.c.b16 %v3761_v29, %v3761_v29  ;;  %v3810_v52 = vsel %vm589_vm0, %v3805_v1, %v3809_v7  ;;  %v9299_v29 = vld [vmem:[#allocation2 + $0x54] sm:$0xff] }
 0x228   : > { %v3245_v3 = vrot.slane %v3243_v11, 1  ;;  %v3284_v11 = vshrl.u32 %v9145_v49, 16 }
 0x229   : > { %v3855_v54 = vshll.u32 %v9287_v63, 16 }
 0x22b   : > { %3319 = vrot.lane.b32.xlu2 %v3210_v4, %s7924_s19  ;;  %3329 = vrot.lane.b32.xlu0 %v3270_v15, %s7924_s19  ;;  %v3865_v4 = vor.u32 %v3864_v55, %v3860_v46  ;;  %v3869_v15 = vrot.slane %v3867_v51, 1  ;;  %v3258_v55 = vsel %vm589_vm0, %v3253_v32, %v3257_v57  ;;  %v3236_v46 = vshrl.u32 %v8933_v21, 16 }
 0x22c   : > { %3901 = vrot.lane.b32.xlu1 %v3822_v33, %s7924_s19  ;;  %v3682_v33 = vld [vmem:[#allocation2 + $0x5c] sm:$0x1]  ;;  %v3838_v32 = vshll.u32 %v9299_v29, 16  ;;  %v3853_v57 = vor.u32 %v3852_v35, %v3848_v2  ;;  %v3274_v35 = vshll.u32 %v9098_v25, 16 }
 0x22d   : > { %v3760_v26 = vunpack.c.l.b16 %v3682_v33  ;;  %v3870_v51 = vsel %vm589_vm0, %v3865_v4, %v3869_v15  ;;  %v3241_v7 = vor.u32 %v3240_v48, %v3236_v46  ;;  %v3286_v4 = vshll.u32 %v9145_v49, 16 }
 0x22e   : > { %v3840_v59 = vrot.slane %v3838_v32, 1  ;;  %v3836_v48 = vshrl.u32 %v9299_v29, 16 }
 0x22f   : > { %2993 = vmatmul.bf16.gmra.mxu3 %v2821_v18  ;;  %v9309_v1 = vpack.c.b16 %v3760_v26, %v3760_v26  ;;  %v3857_v18 = vrot.slane %v3855_v54, 1  ;;  %v3246_v15 = vsel %vm589_vm0, %v3241_v7, %v3245_v3  ;;  %v3288_v21 = vrot.slane %v3286_v4, 1 }
 0x230   : > { %v3279_v3 = vshll.u32 %v9111_v53, 16 }
 0x231   : > { %v3843_v33 = vshll.u32 %v9309_v1, 16  ;;  %v3858_v28 = vsel %vm589_vm0, %v3853_v57, %v3857_v18  ;;  %v3289_v46 = vor.u32 %v3288_v21, %v3284_v11  ;;  %v3272_v57 = vshrl.u32 %v9098_v25, 16 }
 0x232   : > { %v3281_v4 = vrot.slane %v3279_v3, 1  ;;  %v3296_v21 = vshrl.u32 %v9198_v36, 16  ;;  %v7672_v3 = vld [vmem:[%s10564_s3 + $0x60] sm:$0xff] }
 0x233   : > { %3899 = vrot.lane.b32.xlu2 %v3810_v52, %s7924_s19  ;;  %3909 = vrot.lane.b32.xlu0 %v3870_v51, %s7924_s19  ;;  %v3291_v52 = vshll.u32 %v9152_v17, 16  ;;  %v3845_v51 = vrot.slane %v3843_v33, 1  ;;  %v3276_v17 = vrot.slane %v3274_v35, 1  ;;  %v3303_v33 = vshll.u32 %v9207_v19, 16  ;;  %v7677_v19 = vld [vmem:[%s10564_s3 + $0x88] sm:$0xff]  ;;  %v7658_v35 = vld [vmem:[%s10564_s3 + $0x40] sm:$0xff] }
 0x234   : > { %3327 = vrot.lane.b32.xlu1 %v3258_v55, %s7924_s19  ;;  %v3841_v55 = vor.u32 %v3840_v59, %v3836_v48  ;;  %3036 = vmatpush.bf16.msra.mxu3 %v7658_v35 }
 0x235   : > { %v3293_v2 = vrot.slane %v3291_v52, 1  ;;  %v3277_v18 = vor.u32 %v3276_v17, %v3272_v57  ;;  %v3305_v11 = vrot.slane %v3303_v33, 1  ;;  %v7673_v17 = vld [vmem:[%s10564_s3 + $0x68] sm:$0xff] }
 0x236   : > { %v3846_v7 = vsel %vm589_vm0, %v3841_v55, %v3845_v51  ;;  %v7676_v51 = vld [vmem:[%s10564_s3 + $0x80] sm:$0xff] }
 0x237   : > { %v3294_v32 = vsel %vm589_vm0, %v3289_v46, %v3293_v2  ;;  %v3282_v59 = vsel %vm589_vm0, %v3277_v18, %v3281_v4  ;;  %v7699_v18 = vld [vmem:[%s10564_s3 + $0xe8] sm:$0xff]  ;;  %v7698_v4 = vld [vmem:[%s10564_s3 + $0xe0] sm:$0xff] }
 0x23b   : > { %3325 = vrot.lane.b32.xlu2 %v3246_v15, %s7924_s19  ;;  %v7679_v15 = vld [vmem:[%s10564_s3 + $0x98] sm:$0xff] }
 0x23c   : > { %3907 = vrot.lane.b32.xlu1 %v3858_v28, %s7924_s19  ;;  %3526 = vmatpush.bf16.msrb.mxu0 %v7679_v15  ;;  %v7678_v28 = vld [vmem:[%s10564_s3 + $0x90] sm:$0xff]  ;;  %v7697_v15 = vld [vmem:[%s10564_s3 + $0xd8] sm:$0xff] }
 0x23d   : > { %v2769_v26 = vpop.permute.xlu0 %2768 }
 0x23e   : > { %v2824_v54 = vsel %vm2810_vm13, %v8935_v50, %v2769_v26  ;;  %v3298_v50 = vshll.u32 %v9198_v36, 16 }
 0x23f   : > { %2998 = vmatmul.bf16.gmra.mxu3 %v2824_v54  ;;  %v7674_v54 = vld [vmem:[%s10564_s3 + $0x70] sm:$0xff] }
 0x240   : > { %v3300_v53 = vrot.slane %v3298_v50, 1  ;;  %3527 = vmatpush.bf16.msrb.mxu0 %v7678_v28 }
 0x242   : > { %v3301_v48 = vor.u32 %v3300_v53, %v3296_v21  ;;  %v7696_v53 = vld [vmem:[%s10564_s3 + $0xd0] sm:$0xff] }
 0x243   : > { %3905 = vrot.lane.b32.xlu2 %v3846_v7, %s7924_s19  ;;  %v7701_v7 = vld [vmem:[%s10564_s3 + $0xf8] sm:$0xff] }
 0x244   : > { %3333 = vrot.lane.b32.xlu1 %v3294_v32, %s7924_s19  ;;  %v3306_v55 = vsel %vm589_vm0, %v3301_v48, %v3305_v11  ;;  %3528 = vmatpush.bf16.msrb.mxu0 %v7677_v19  ;;  %v7695_v48 = vld [vmem:[%s10564_s3 + $0xc8] sm:$0xff] }
 0x245   : > { %v2773_v46 = vpop.permute.xlu2 %2772  ;;  %4102 = vmatpush.bf16.msra.mxu2 %v7701_v7 }
 0x246   : > { %v2830_v2 = vsel %vm2810_vm13, %v9034_v9, %v2773_v46  ;;  %v7700_v9 = vld [vmem:[%s10564_s3 + $0xf0] sm:$0xff] }
 0x248   : > { %3529 = vmatpush.bf16.msrb.mxu0 %v7676_v51 }
 0x249   : > { %4103 = vmatpush.bf16.msra.mxu2 %v7700_v9 }
 0x24b   : > { %3331 = vrot.lane.b32.xlu2 %v3282_v59, %s7924_s19  ;;  %v9385_v59 = vpop.f32.mrf.mxu3 }
 0x24d   : > { %v2771_v52 = vpop.permute.xlu1 %2770  ;;  %4104 = vmatpush.bf16.msra.mxu2 %v7699_v18  ;;  %v2781_v18 = vrot.slane %v8761_v14, 1  ;;  %v7704_v14 = vld [vmem:[%s10564_s3 + $0x110] sm:$0xff] }
 0x24e   : > { %v2827_v26 = vsel %vm2810_vm13, %v8986_v31, %v2771_v52  ;;  %v7675_v31 = vld [vmem:[%s10564_s3 + $0x78] sm:$0xff] }
 0x24f   : > { %3003 = vmatmul.bf16.gmra.mxu3 %v2827_v26  ;;  %3530 = vmatpush.bf16.msrb.mxu0 %v7675_v31  ;;  %v7705_v52 = vld [vmem:[%s10564_s3 + $0x118] sm:$0xff] }
 0x250   : > { %4165 = vmatpush.bf16.msrb.mxu3 %v7705_v52 }
 0x251   : > { %4105 = vmatpush.bf16.msra.mxu2 %v7698_v4 }
 0x253   : > { %3335 = vrot.lane.b32.xlu2 %v3306_v55, %s7924_s19  ;;  %3531 = vmatpush.bf16.msrb.mxu0 %v7674_v54  ;;  %v7694_v55 = vld [vmem:[%s10564_s3 + $0xc0] sm:$0xff] }
 0x254   : > { %4166 = vmatpush.bf16.msrb.mxu3 %v7704_v14  ;;  %v7867_v14 = vld [vmem:[#allocation2 + $0x30] sm:$0xff] }
 0x255   : > { %4106 = vmatpush.bf16.msra.mxu2 %v7697_v15 }
 0x257   : > { %3532 = vmatpush.bf16.msrb.mxu0 %v7673_v17 }
 0x259   : > { %4107 = vmatpush.bf16.msra.mxu2 %v7696_v53 }
 0x25b   : > { %3533 = vmatpush.bf16.msrb.mxu0 %v7672_v3 }
 0x25d   : > { %4108 = vmatpush.bf16.msra.mxu2 %v7695_v48 }
 0x25f   : > { %3008 = vmatmul.bf16.gmra.mxu3 %v2830_v2 }
 0x261   : > { %4109 = vmatpush.bf16.msra.mxu2 %v7694_v55 }
 0x269   : > { %v9398_v11 = vpop.f32.mrf.mxu3 }
 0x26d   : > { %v2775_v32 = vpop.permute.xlu0 %2774 }
 0x26e   : > { %v2833_v57 = vsel %vm2810_vm13, %v9093_v12, %v2775_v32 }
 0x26f   : > { %3013 = vmatmul.bf16.gmra.mxu3 %v2833_v57 }
 0x271   : > { %v9409_v46 = vpop.f32.mrf.mxu3 }
 0x275   : > { %v2779_v50 = vpop.permute.xlu2 %2778  ;;  %v1815_v26 = vpop.permute.xlu0 %1814 }
 0x276   : > { %v1899_v19 = vsel %vm819_vm6, %v9085_v39, %v1815_v26  ;;  %v2839_v39 = vsel %vm2810_vm13, %v9194_v13, %v2779_v50  ;;  %v7863_v50 = vld [vmem:[#allocation2] sm:$0xff]  ;;  %v2784_v26 = vrot.slane %v8805_v30, 1  ;;  %v2787_v30 = vrot.slane %v8848_v38, 1 }
 0x277   : > { %v2780_v15 = vrot.slane %v7863_v50, 1  ;;  %v2790_v38 = vrot.slane %v8902_v5, 1 }
 0x27d   : > { %v1817_v33 = vpop.permute.xlu2 %1816  ;;  %v2777_v28 = vpop.permute.xlu1 %2776 }
 0x27e   : > { %v2836_v21 = vsel %vm2810_vm13, %v9142_v40, %v2777_v28  ;;  %v1877_v7 = vpop.permute.xlu0 %1876  ;;  %v1901_v17 = vsel %vm819_vm6, %v9136_v43, %v1817_v33  ;;  %v2782_v43 = vsel %vm758_vm1, %v2780_v15, %v2781_v18  ;;  %v7864_v28 = vld [vmem:[#allocation2 + $0x24] sm:$0xff] }
 0x27f   : > { %3018 = vmatmul.bf16.gmra.mxu3 %v2836_v21  ;;  %v7703_v15 = vld [vmem:[%s10564_s3 + $0x108] sm:$0xff] }
 0x280   : > { %4167 = vmatpush.bf16.msrb.mxu3 %v7703_v15  ;;  %v7702_v15 = vld [vmem:[%s10564_s3 + $0x100] sm:$0xff] }
 0x284   : > { %4168 = vmatpush.bf16.msrb.mxu3 %v7702_v15 }
 0x285   : > { %v3320_v51 = vpop.permute.xlu2 %3319  ;;  %v1875_v35 = vpop.permute.xlu1 %1874 }
 0x286   : > { %v3370_v31 = vsel %vm2810_vm13, %v9238_v45, %v3320_v51  ;;  %v1923_v54 = vsel %vm844_vm7, %v1899_v19, %v1875_v35  ;;  %v1925_v45 = vsel %vm844_vm7, %v1901_v17, %v1877_v7  ;;  %v3898_v57 = vpop.permute.xlu0 %3897  ;;  %v2783_v19 = vrot.slane %v9189_v56, 1  ;;  %v7865_v35 = vld [vmem:[#allocation2 + $0x30] sm:$0xff] }
 0x287   : > { %3534 = vmatmul.bf16.vlgmr.msrb.gmra.mxu0 %v3370_v31  ;;  %6772 = vmatmul.msk.bf16.gmra.mxu2 %vm879_vm8, %v1923_v54  ;;  %v3949_v54 = vsel %vm2810_vm13, %v9149_v16, %v3898_v57  ;;  %v2786_v56 = vrot.slane %v9244_v37, 1  ;;  %v2789_v37 = vrot.slane %v9289_v0, 1 }
 0x288   : > { %v2785_v55 = vsel %vm758_vm1, %v2783_v19, %v2784_v26 }
 0x289   : > { %v2788_v7 = vsel %vm758_vm1, %v2786_v56, %v2787_v30  ;;  %v2791_v50 = vsel %vm758_vm1, %v2789_v37, %v2790_v38  ;;  %v7868_v30 = vld [vmem:[#allocation2 + $0x3c] sm:$0xff]  ;;  %v7869_v38 = vld [vmem:[#allocation2 + $0x48] sm:$0xff] }
 0x28a   : > { %v2795_v56 = vrot.slane %v7868_v30, 1  ;;  %v2798_v37 = vrot.slane %v7869_v38, 1 }
 0x28d   : > { %v3900_v52 = vpop.permute.xlu2 %3899 }
 0x28e   : > { %v3896_v2 = vpop.permute.xlu1 %3895  ;;  %v3324_v33 = vpop.permute.xlu0 %3323  ;;  %v3952_v16 = vsel %vm2810_vm13, %v9254_v23, %v3900_v52  ;;  %v2792_v52 = vrot.slane %v7867_v14, 1  ;;  %v390_v14 = vld [vmem:[#allocation2 + $0x8c] sm:$0x1] }
 0x28f   : > { %3023 = vmatmul.bf16.gmra.mxu3 %v2839_v39  ;;  %v3376_v21 = vsel %vm2810_vm13, %v7864_v28, %v3324_v33 }
 0x292   : > { %v9415_v3 = vpop.f32.mrf.mxu3 }
 0x295   : > { %v3326_v51 = vpop.permute.xlu2 %3325 }
 0x296   : > { %v3322_v9 = vpop.permute.xlu1 %3321  ;;  %v3379_v31 = vsel %vm2810_vm13, %v7865_v35, %v3326_v51  ;;  %v3904_v57 = vpop.permute.xlu0 %3903  ;;  %v349_v35 = vld [vmem:[#allocation2 + $0x78] sm:$0x1] }
 0x297   : > { %v3373_v32 = vsel %vm2810_vm13, %v9234_v20, %v3322_v9  ;;  %6773 = vmatmul.msk.bf16.gmra.mxu2 %vm879_vm8, %v1925_v45  ;;  %v3946_v20 = vsel %vm2810_vm13, %v9175_v34, %v3896_v2  ;;  %v7866_v9 = vld [vmem:[#allocation2 + $0x3c] sm:$0xff]  ;;  %v3958_v51 = vsel %vm2810_vm13, %v9202_v47, %v3904_v57 }
 0x298   : > { %3539 = vmatmul.bf16.gmra.mxu0 %v3373_v32 }
 0x29a   : > { %v9422_v4 = vpop.f32.mrf.mxu3 }
 0x29d   : > { %v3906_v0 = vpop.permute.xlu2 %3905 }
 0x29e   : > { %v3902_v2 = vpop.permute.xlu1 %3901  ;;  %v3330_v33 = vpop.permute.xlu0 %3329 }
 0x29f   : > { %6864 = vmatmul.msk.bf16.vlgmr.msra.gmra.mxu3 %vm2810_vm13, %v2782_v43  ;;  %v3955_v5 = vsel %vm2810_vm13, %v9226_v24, %v3902_v2  ;;  %v2796_v2 = vrot.slane %v9005_v58, 1  ;;  %v2799_v58 = vrot.slane %v9060_v10, 1 }
 0x2a2   : > { %v9426_v53 = vpop.f32.mrf.mxu3 }
 0x2a6   : > { %v3328_v45 = vpop.permute.xlu1 %3327  ;;  %v3910_v38 = vpop.permute.xlu0 %3909 }
 0x2a7   : > { %4110 = vmatmul.bf16.vlgmr.msra.gmra.mxu2 %v3946_v20  ;;  %v3382_v32 = vsel %vm2810_vm13, %v7866_v9, %v3328_v45  ;;  %v3385_v20 = vsel %vm2810_vm13, %v9032_v22, %v3330_v33  ;;  %v3961_v9 = vsel %vm2810_vm13, %v9299_v29, %v3906_v0  ;;  %v352_v33 = vld [vmem:[#allocation2 + $0x84] sm:$0x1] }
 0x2a8   : > { %3544 = vmatmul.bf16.gmra.mxu0 %v3376_v21  ;;  %v2793_v21 = vrot.slane %v8958_v62, 1  ;;  %v350_v62 = vsel %vm8602_vm11, 0, %v349_v35  ;;  %v353_v10 = vsel %vm8602_vm11, 0, %v352_v33  ;;  %v10627_v35 = vld [vmem:[#allocation9_spill] sm:$0xff] }
 0x2a9   : > { %351 = vst [vmem:[#allocation2 + $0x78] sm:$0x1] %v350_v62 }
 0x2aa   : > { %v9434_v48 = vpop.f32.mrf.mxu3  ;;  %v2794_v26 = vsel %vm758_vm1, %v2792_v52, %v2793_v21  ;;  %354 = vst [vmem:[#allocation2 + $0x84] sm:$0x1] %v353_v10  ;;  %v2091_v10 = vadd.s32 11, %v8660_v44 }
 0x2ac   : > { %vm2115_vm9 = vcmp.lt.s32.totalorder %v2091_v10, 16 }
 0x2af   : > { %6865 = vmatmul.msk.bf16.gmra.mxu3 %vm2810_vm13, %v2785_v55  ;;  %v3332_v55 = vpop.permute.xlu2 %3331 }
 0x2b0   : > { %v3388_v22 = vsel %vm2810_vm13, %v9098_v25, %v3332_v55  ;;  %v10626_v55 = vld [vmem:[#allocation12_spill] sm:$0xff]  ;;  %v2515_v33 = vld [vmem:[#allocation2 + $0x78] sm:$0xf] }
 0x2b2   : > { %v9440_v34 = vpop.f32.mrf.mxu3 }
 0x2b7   : > { %4115 = vmatmul.bf16.gmra.mxu2 %v3949_v54 }
 0x2b8   : > { %3549 = vmatmul.bf16.gmra.mxu0 %v3379_v31  ;;  %v3908_v31 = vpop.permute.xlu1 %3907 }
 0x2b9   : > { %v3964_v21 = vsel %vm2810_vm13, %v9279_v8, %v3908_v31  ;;  %v2801_v31 = vrot.slane %v9093_v12, 1 }
 0x2ba   : > { %v9445_v39 = vpop.f32.mrf.mxu3 }
 0x2bf   : > { %6866 = vmatmul.msk.bf16.gmra.mxu3 %vm2810_vm13, %v2788_v7  ;;  %v2797_v7 = vsel %vm758_vm1, %v2795_v56, %v2796_v2  ;;  %v7870_v56 = vld [vmem:[%s10563_s2] ss:$0 sm:$0xff] }
 0x2c0   : > { %v3334_v47 = vpop.permute.xlu1 %3333 }
 0x2c1   : > { %v3391_v45 = vsel %vm2810_vm13, %v9145_v49, %v3334_v47 }
 0x2c2   : > { %v9451_v17 = vpop.f32.mrf.mxu3 }
 0x2c7   : > { %4120 = vmatmul.bf16.gmra.mxu2 %v3952_v16 }
 0x2c8   : > { %3554 = vmatmul.bf16.gmra.mxu0 %v3382_v32  ;;  %v387_v32 = vld [vmem:[#allocation2 + $0x80] sm:$0x1] }
 0x2c9   : > { %v388_v57 = vsel %vm8623_vm12, 0, %v387_v32 }
 0x2ca   : > { %v9456_v18 = vpop.f32.mrf.mxu3  ;;  %389 = vst [vmem:[#allocation2 + $0x80] sm:$0x1] %v388_v57 }
 0x2cf   : > { %6867 = vmatmul.msk.bf16.gmra.mxu3 %vm2810_vm13, %v2791_v50  ;;  %v2800_v50 = vsel %vm758_vm1, %v2798_v37, %v2799_v58 }
 0x2d2   : > { %v9465_v43 = vpop.f32.mrf.mxu3 }
 0x2d7   : > { %4125 = vmatmul.bf16.gmra.mxu2 %v3955_v5  ;;  %v2090_v5 = vadd.s32 10, %v8660_v44  ;;  %v10633_v44 = vld [vmem:[#allocation13_spill] sm:$0xff] }
 0x2d8   : > { %3559 = vmatmul.bf16.gmra.mxu0 %v3385_v20  ;;  %v3336_v20 = vpop.permute.xlu2 %3335 }
 0x2d9   : > { %v3394_v0 = vsel %vm2810_vm13, %v9198_v36, %v3336_v20  ;;  %vm2102_vm7 = vcmp.ge.s32.totalorder %v2090_v5, 0  ;;  %vm2114_vm8 = vcmp.lt.s32.totalorder %v2090_v5, 16 }
 0x2da   : > { %v9471_v28 = vpop.f32.mrf.mxu3  ;;  %vm9520_vm15 = vmand %vm2102_vm7, %vm2114_vm8 }
 0x2df   : > { %6868 = vmatmul.msk.bf16.gmra.mxu3 %vm2810_vm13, %v2794_v26 }
 0x2e2   : > { %v9476_v19 = vpop.f32.mrf.mxu3 }
 0x2e7   : > { %4130 = vmatmul.bf16.gmra.mxu2 %v3958_v51  ;;  %v391_v51 = vsel %vm8623_vm12, 0, %v390_v14  ;;  %vm2103_vm12 = vcmp.ge.s32.totalorder %v2091_v10, 0 }
 0x2e8   : > { %3564 = vmatmul.bf16.gmra.mxu0 %v3388_v22  ;;  %v2802_v22 = vrot.slane %v10626_v55, 1  ;;  %392 = vst [vmem:[#allocation2 + $0x8c] sm:$0x1] %v391_v51  ;;  %vm9547_vm14 = vmand %vm2103_vm12, %vm2115_vm9 }
 0x2ea   : > { %v9484_v54 = vpop.f32.mrf.mxu3  ;;  %v2803_v30 = vsel %vm758_vm1, %v2801_v31, %v2802_v22  ;;  %v10634_v31 = vld [vmem:[#allocation11_spill] sm:$0xff] }
 0x2ef   : > { %6869 = vmatmul.msk.bf16.gmra.mxu3 %vm2810_vm13, %v2797_v7  ;;  %v10630_v7 = vld [vmem:[#allocation5_spill] sm:$0xff] }
 0x2f0   : > { %v973_v47 = vadd.f32 %v7870_v56, %v10630_v7  ;;  %v2804_v7 = vrot.slane %v9142_v40, 1 }
 0x2f2   : > { %v9489_v25 = vpop.f32.mrf.mxu3 }
 0x2f7   : > { %4135 = vmatmul.bf16.gmra.mxu2 %v3961_v9  ;;  %v10631_v9 = vld [vmem:[#allocation10_spill] sm:$0xff] }
 0x2f8   : > { %3569 = vmatmul.bf16.gmra.mxu0 %v3391_v45  ;;  %v1514_v32 = vadd.f32 %v10631_v9, %v973_v47  ;;  %v9555_v47 = vld [vmem:[%s10565_s4] ss:$0 sm:$0xff] }
 0x2fa   : > { %v9495_v16 = vpop.f32.mrf.mxu3 }
 0x2ff   : > { %6870 = vmatmul.msk.bf16.gmra.mxu3 %vm2810_vm13, %v2800_v50 }
 0x302   : > { %v9502_v49 = vpop.f32.mrf.mxu3 }
 0x307   : > { %4140 = vmatmul.bf16.gmra.mxu2 %v3964_v21 }
 0x308   : > { %3574 = vmatmul.bf16.gmra.mxu0 %v3394_v0  ;;  %v3967_v0 = vsel %vm2810_vm13, %v9259_v41, %v3910_v38  ;;  %v10637_v38 = vld [vmem:[#allocation6_spill] sm:$0xff] }
 0x30a   : > { %v2020_v52 = vpop.f32.mrf.mxu2  ;;  %v9514_v26 = vpop.f32.mrf.mxu3 }
 0x30b   : > { %v2050_v62 = vadd.f32 %v2020_v52, %v10627_v35 }
 0x30d   : > { %v2074_v2 = vmax.f32 %v2050_v62, 0.0  ;;  %v2805_v62 = vrot.slane %v10633_v44, 1  ;;  %v2522_v44 = vld [vmem:[#allocation2 + $0x84] sm:$0xf] }
 0x30f   : > { %v2172_v61 = vsel %vm9520_vm15, %v2074_v2, 0.0  ;;  %6871 = vmatmul.msk.bf16.gmra.mxu3 %vm2810_vm13, %v2803_v30 }
 0x310   : > { %v2196_v45 = vpack.c.bf16 %v2172_v61, %v2172_v61  ;;  %v2519_v61 = vld [vmem:[#allocation2 + $0x80] sm:$0x1] }
 0x312   : > { %v2373_v58 = vshrl.u32 %v2196_v45, 16  ;;  %v2022_v57 = vpop.f32.mrf.mxu2  ;;  %v9534_v12 = vpop.f32.mrf.mxu3  ;;  %v2376_v15 = vshll.u32 %v2196_v45, 16 }
 0x313   : > { %v2051_v37 = vadd.f32 %v2022_v57, %v1514_v32  ;;  %v2806_v57 = vsel %vm758_vm1, %v2804_v7, %v2805_v62  ;;  %v2807_v7 = vrot.slane %v9194_v13, 1  ;;  %v2526_v13 = vld [vmem:[#allocation2 + $0x8c] sm:$0x1] }
 0x314   : > { %v2375_v50 = vrot.slane %v2373_v58, 7 }
 0x315   : > { %v2075_v20 = vmax.f32 %v2051_v37, 0.0  ;;  %v978_v37 = vadd.f32 %v7870_v56, %v10637_v38 }
 0x316   : > { %v2378_v5 = vor.u32 %v2376_v15, %v2375_v50  ;;  %v2379_v9 = vrot.slane %v2375_v50, 4 }
 0x317   : > { %v2173_v21 = vsel %vm9520_vm15, %v2075_v20, 0.0  ;;  %4145 = vmatmul.bf16.gmra.mxu2 %v3967_v0  ;;  %v1516_v50 = vadd.f32 %v9385_v59, %v978_v37 }
 0x318   : > { %v2516_v52 = vsel %vm8695_vm3, %v2378_v5, %v2515_v33  ;;  %v2197_v55 = vpack.c.bf16 %v2173_v21, %v2173_v21  ;;  %v2980_v5 = vadd.f32 %v9555_v47, %v9398_v11 }
 0x319   : > { %2517 = vst [vmem:[#allocation2 + $0x78] sm:$0xf] %v2516_v52 }
 0x31a   : > { %v2381_v22 = vshrl.u32 %v2197_v55, 16  ;;  %v2025_v51 = vpop.f32.mrf.mxu2  ;;  %v9543_v35 = vpop.f32.mrf.mxu3  ;;  %v2384_v30 = vshll.u32 %v2197_v55, 16 }
 0x31b   : > { %v2052_v2 = vadd.f32 %v2025_v51, %v10634_v31 }
 0x31c   : > { %v2383_v41 = vrot.slane %v2381_v22, 7 }
 0x31d   : > { %v2076_v45 = vmax.f32 %v2052_v2, 0.0  ;;  %v10639_v2 = vld [vmem:[#allocation16_spill] sm:$0xff] }
 0x31e   : > { %v2386_v32 = vor.u32 %v2384_v30, %v2383_v41  ;;  %v2388_v58 = vrot.slane %v2383_v41, 4  ;;  %v2808_v41 = vrot.slane %v10639_v2, 1 }
 0x31f   : > { %v2174_v15 = vsel %vm9547_vm14, %v2076_v45, 0.0  ;;  %6872 = vmatmul.msk.bf16.gmra.mxu3 %vm2810_vm13, %v2806_v57 }
 0x320   : > { %v2387_v33 = vsel %vm8724_vm4, %v2379_v9, %v2386_v32  ;;  %v2520_v20 = vsel %vm8602_vm11, %v2388_v58, %v2519_v61  ;;  %v2198_v10 = vpack.c.bf16 %v2174_v15, %v2174_v15  ;;  %v2809_v38 = vsel %vm758_vm1, %v2807_v7, %v2808_v41 }
 0x321   : > { %2518 = vst.msk [vmem:[#allocation2 + $0x7c] sm:$0xf] %vm2442_vm2, %v2387_v33 }
 0x322   : > { %2521 = vst [vmem:[#allocation2 + $0x80] sm:$0x1] %v2520_v20  ;;  %v2390_v56 = vshrl.u32 %v2198_v10, 16  ;;  %v2027_v0 = vpop.f32.mrf.mxu2  ;;  %v3038_v21 = vpop.f32.mrf.mxu3  ;;  %v2393_v51 = vshll.u32 %v2198_v10, 16 }
 0x323   : > { %v2053_v52 = vadd.f32 %v2027_v0, %v1516_v50  ;;  %v9570_v55 = vadd.f32 %v3038_v21, %v2980_v5 }
 0x324   : > { %v2392_v22 = vrot.slane %v2390_v56, 7 }
 0x325   : > { %v2077_v62 = vmax.f32 %v2053_v52, 0.0 }
 0x326   : > { %v2395_v31 = vor.u32 %v2393_v51, %v2392_v22  ;;  %v2396_v37 = vrot.slane %v2392_v22, 4  ;;  %v7721_v22 = vld [vmem:[%s10566_s5 + $0x38] sm:$0xff] }
 0x327   : > { %v2175_v59 = vsel %vm9547_vm14, %v2077_v62, 0.0  ;;  %v7729_v51 = vld [vmem:[%s10566_s5 + $0x78] sm:$0xff]  ;;  %5061 = vmatpush.bf16.msra.mxu0 %v7721_v22 }
 0x328   : > { %v2523_v11 = vsel %vm8695_vm3, %v2395_v31, %v2522_v44  ;;  %v2199_v30 = vpack.c.bf16 %v2175_v59, %v2175_v59  ;;  %v9578_v61 = vld [vmem:[#allocation2 + $0x78] sm:$0xff]  ;;  %5110 = vmatpush.bf16.msra.mxu1 %v7729_v51 }
 0x329   : > { %v9580_v45 = vld [vmem:[#allocation2 + $0x78] sm:$0xff]  ;;  %2524 = vst [vmem:[#allocation2 + $0x84] sm:$0xf] %v2523_v11  ;;  %v3118_v9 = vld [vmem:[#allocation2 + $0x80] sm:$0x1]  ;;  %v3366_v50 = vrot.slane %v9578_v61, 1 }
 0x32a   : > { %v3691_v32 = vld [vmem:[#allocation2 + $0x80] sm:$0x1]  ;;  %v2398_v58 = vshrl.u32 %v2199_v30, 16  ;;  %v9582_v57 = vpop.f32.mrf.mxu3  ;;  %v3188_v36 = vunpack.c.l.b16 %v3118_v9  ;;  %v2401_v15 = vshll.u32 %v2199_v30, 16  ;;  %v3874_v33 = vshll.u32 %v9580_v45, 16 }
 0x32b   : > { %v3763_v14 = vunpack.c.l.b16 %v3691_v32  ;;  %v3310_v5 = vshll.u32 %v9578_v61, 16  ;;  %v3872_v0 = vshrl.u32 %v9580_v45, 16  ;;  %v3308_v52 = vshrl.u32 %v9578_v61, 16 }
 0x32c   : > { %v2400_v20 = vrot.slane %v2398_v58, 7  ;;  %v3198_v10 = vpack.c.b16 %v3188_v36, %v3188_v36  ;;  %v3876_v21 = vrot.slane %v3874_v33, 1  ;;  %v2985_v58 = vadd.f32 %v9555_v47, %v9415_v3 }
 0x32d   : > { %v9588_v56 = vpack.c.b16 %v3763_v14, %v3763_v14  ;;  %v3312_v2 = vrot.slane %v3310_v5, 1  ;;  %v2987_v3 = vadd.f32 %v9555_v47, %v9422_v4  ;;  %v7720_v4 = vld [vmem:[%s10566_s5 + $0x30] sm:$0xff] }
 0x32e   : > { %v2403_v44 = vor.u32 %v2401_v15, %v2400_v20  ;;  %v2405_v62 = vrot.slane %v2400_v20, 4  ;;  %v3367_v31 = vrot.slane %v3198_v10, 1  ;;  %v3877_v41 = vor.u32 %v3876_v21, %v3872_v0  ;;  %5062 = vmatpush.bf16.msra.mxu0 %v7720_v4 }
 0x32f   : > { %6873 = vmatmul.msk.bf16.gmra.mxu3 %vm2810_vm13, %v2809_v38  ;;  %v3879_v59 = vshll.u32 %v9588_v56, 16  ;;  %v3315_v11 = vshll.u32 %v3198_v10, 16  ;;  %v3313_v32 = vor.u32 %v3312_v2, %v3308_v52  ;;  %v7871_v52 = vld [vmem:[#allocation2 + $0x18] sm:$0xff] }
 0x330   : > { %v2404_v30 = vsel %vm8724_vm4, %v2396_v37, %v2403_v44  ;;  %v2527_v7 = vsel %vm8602_vm11, %v2405_v62, %v2526_v13  ;;  %v3368_v9 = vsel %vm758_vm1, %v3366_v50, %v3367_v31  ;;  %v10640_v13 = vld [vmem:[#allocation15_spill] sm:$0xff]  ;;  %v3915_v22 = vrot.slane %v7871_v52, 1 }
 0x331   : > { %2525 = vst.msk [vmem:[#allocation2 + $0x88] sm:$0xf] %vm2442_vm2, %v2404_v30  ;;  %6995 = vmatmul.msk.bf16.gmra.mxu1 %vm2810_vm13, %v3368_v9  ;;  %v3881_v38 = vrot.slane %v3879_v59, 1  ;;  %v3317_v36 = vrot.slane %v3315_v11, 1  ;;  %v3916_v10 = vrot.slane %v10640_v13, 1  ;;  %v7728_v59 = vld [vmem:[%s10566_s5 + $0x70] sm:$0xff]  ;;  %v2990_v30 = vadd.f32 %v9555_v47, %v9426_v53 }
 0x332   : > { %2528 = vst [vmem:[#allocation2 + $0x8c] sm:$0x1] %v2527_v7  ;;  %v3043_v15 = vpop.f32.mrf.mxu3  ;;  %5111 = vmatpush.bf16.msra.mxu1 %v7728_v59  ;;  %v3922_v52 = vrot.slane %v9265_v42, 1  ;;  %v7726_v42 = vld [vmem:[%s10566_s5 + $0x60] sm:$0xff]  ;;  %v3924_v59 = vrot.slane %v9226_v24, 1  ;;  %vm393_vm11 = vcmask 1040384  }
 0x333   : > { %v9609_v14 = vadd.f32 %v3043_v15, %v2985_v58  ;;  %v3882_v27 = vsel %vm589_vm0, %v3877_v41, %v3881_v38  ;;  %v3318_v37 = vsel %vm589_vm0, %v3313_v32, %v3317_v36  ;;  %v3917_v31 = vsel %vm758_vm1, %v3915_v22, %v3916_v10  ;;  %v10641_v36 = vld [vmem:[#allocation14_spill] sm:$0xff]  ;;  %vm9735_vm2 = vmand %vm393_vm11, %vm317_vm10 }
 0x334   : > { %3911 = vrot.lane.b32.xlu1 %v3882_v27, %s7924_s19  ;;  %3337 = vrot.lane.b32.xlu0 %v3318_v37, %s7924_s19  ;;  %v2992_v58 = vadd.f32 %v9555_v47, %v9434_v48  ;;  %v3919_v15 = vrot.slane %v10641_v36, 1  ;;  %v7872_v37 = vld [vmem:[#allocation2 + $0x24] sm:$0xff]  ;;  %v3921_v22 = vrot.slane %v9254_v23, 1  ;;  %v3002_v23 = vadd.f32 %v9555_v47, %v9456_v18 }
 0x335   : > { %v7719_v48 = vld [vmem:[%s10566_s5 + $0x28] sm:$0xff]  ;;  %v3007_v18 = vadd.f32 %v9555_v47, %v9471_v28  ;;  %v3010_v28 = vadd.f32 %v9555_v47, %v9476_v19  ;;  %v7724_v19 = vld [vmem:[%s10566_s5 + $0x50] sm:$0xff]  ;;  %vm10645_vm10 = vsmask.f32 7938 }
 0x336   : > { %5063 = vmatpush.bf16.msra.mxu0 %v7719_v48  ;;  %vm9772_vm3 = vmand %vm393_vm11, %vm10645_vm10 }
 0x338   : > { %v9615_v33 = vld [vmem:[#allocation2 + $0x84] sm:$0xff] }
 0x339   : > { %v3694_v20 = vld [vmem:[#allocation2 + $0x8c] sm:$0x1]  ;;  %v3886_v0 = vshll.u32 %v9615_v33, 16  ;;  %v3884_v44 = vshrl.u32 %v9615_v33, 16 }
 0x33a   : > { %v3045_v50 = vpop.f32.mrf.mxu3  ;;  %v3764_v5 = vunpack.c.l.b16 %v3694_v20  ;;  %v2995_v20 = vadd.f32 %v9555_v47, %v9440_v34 }
 0x33b   : > { %v9621_v21 = vadd.f32 %v3045_v50, %v2987_v3  ;;  %v3888_v62 = vrot.slane %v3886_v0, 1  ;;  %v3918_v3 = vrot.slane %v7872_v37, 1  ;;  %v7727_v50 = vld [vmem:[%s10566_s5 + $0x68] sm:$0xff]  ;;  %v7717_v37 = vld [vmem:[%s10566_s5 + $0x18] sm:$0xff] }
 0x33c   : > { %v9623_v51 = vpack.c.b16 %v3764_v5, %v3764_v5  ;;  %5112 = vmatpush.bf16.msra.mxu1 %v7727_v50  ;;  %v2997_v5 = vadd.f32 %v9555_v47, %v9445_v39  ;;  %v7718_v39 = vld [vmem:[%s10566_s5 + $0x20] sm:$0xff]  ;;  %v3931_v50 = vrot.slane %v9309_v1, 1  ;;  %v3015_v1 = vadd.f32 %v9555_v47, %v9489_v25 }
 0x33d   : > { %v3889_v2 = vor.u32 %v3888_v62, %v3884_v44  ;;  %v3920_v53 = vsel %vm758_vm1, %v3918_v3, %v3919_v15  ;;  %v3923_v44 = vsel %vm758_vm1, %v3921_v22, %v3922_v52  ;;  %v3000_v62 = vadd.f32 %v9555_v47, %v9451_v17  ;;  %5064 = vmatpush.bf16.msra.mxu0 %v7718_v39  ;;  %v7873_v15 = vld [vmem:[#allocation2 + $0x48] sm:$0xff]  ;;  %v7716_v22 = vld [vmem:[%s10566_s5 + $0x10] sm:$0xff] }
 0x33e   : > { %v3891_v41 = vshll.u32 %v9623_v51, 16  ;;  %v3927_v24 = vrot.slane %v7873_v15, 1 }
 0x33f   : > { %7108 = vmatmul.msk.bf16.vlgmr.msrb.gmra.mxu3 %vm2810_vm13, %v3917_v31 }
 0x340   : > { %v3893_v11 = vrot.slane %v3891_v41, 1  ;;  %5113 = vmatpush.bf16.msra.mxu1 %v7726_v42  ;;  %v3925_v41 = vrot.slane %v9241_v6, 1  ;;  %v3934_v42 = vrot.slane %v9287_v63, 1 }
 0x341   : > { %5065 = vmatpush.bf16.msra.mxu0 %v7717_v37 }
 0x342   : > { %v3048_v7 = vpop.f32.mrf.mxu3  ;;  %v3894_v9 = vsel %vm589_vm0, %v3889_v2, %v3893_v11  ;;  %v3926_v11 = vsel %vm758_vm1, %v3924_v59, %v3925_v41  ;;  %v9739_v41 = vpop.f32.mrf.mxu2 }
 0x343   : > { %v9638_v32 = vadd.f32 %v3048_v7, %v2990_v30  ;;  %3913 = vrot.lane.b32.xlu2 %v3894_v9, %s7924_s19  ;;  %v3005_v30 = vadd.f32 %v9555_v47, %v9465_v43  ;;  %v7725_v43 = vld [vmem:[%s10566_s5 + $0x58] sm:$0xff]  ;;  %s6504_s19 = sshll.u32 %s10680_s24, 5 }
 0x344   : > { %5114 = vmatpush.bf16.msra.mxu1 %v7725_v43  ;;  %v3937_v43 = vrot.slane %v9269_v60, 1  ;;  %s312_s23 = sadd.s32 %s6504_s19, %s6503_s22 }
 0x345   : > { %5066 = vmatpush.bf16.msra.mxu0 %v7716_v22  ;;  %v7723_v22 = vld [vmem:[%s10566_s5 + $0x48] sm:$0xff]  ;;  %s6505_s9 = sshll.u32 %s312_s23, 3 }
 0x346   : > { %s10496_s12 = scalar_lea.vmem %s10568_s7, %s6505_s9 }
 0x348   : > { %5115 = vmatpush.bf16.msra.mxu1 %v7724_v19 }
 0x34a   : > { %v3050_v38 = vpop.f32.mrf.mxu3 }
 0x34b   : > { %v9644_v27 = vadd.f32 %v3050_v38, %v2992_v58  ;;  %v10642_v38 = vld [vmem:[#allocation17_spill] sm:$0xff] }
 0x34c   : > { %v3928_v6 = vrot.slane %v10642_v38, 1  ;;  %5116 = vmatpush.bf16.msra.mxu1 %v7723_v22 }
 0x34e   : > { %v3929_v3 = vsel %vm758_vm1, %v3927_v24, %v3928_v6  ;;  %v9757_v24 = vpop.f32.mrf.mxu2 }
 0x34f   : > { %7109 = vmatmul.msk.bf16.gmra.mxu3 %vm2810_vm13, %v3920_v53 }
 0x352   : > { %v3053_v13 = vpop.f32.mrf.mxu3 }
 0x353   : > { %v9650_v10 = vadd.f32 %v3053_v13, %v2995_v20  ;;  %v3012_v13 = vadd.f32 %v9555_v47, %v9484_v54 }
 0x35a   : > { %v3055_v0 = vpop.f32.mrf.mxu3 }
 0x35b   : > { %v9661_v34 = vadd.f32 %v3055_v0, %v2997_v5  ;;  %v3930_v0 = vrot.slane %v9299_v29, 1  ;;  %v9723_v29 = vpop.f32.mrf.mxu0 }
 0x35d   : > { %v3932_v52 = vsel %vm758_vm1, %v3930_v0, %v3931_v50  ;;  %v9776_v50 = vpop.f32.mrf.mxu2 }
 0x35f   : > { %7110 = vmatmul.msk.bf16.gmra.mxu3 %vm2810_vm13, %v3923_v44 }
 0x362   : > { %v3058_v4 = vpop.f32.mrf.mxu3 }
 0x363   : > { %v9668_v31 = vadd.f32 %v3058_v4, %v3000_v62  ;;  %v9725_v62 = vpop.f32.mrf.mxu1  ;;  %v3017_v4 = vadd.f32 %v9555_v47, %v9495_v16  ;;  %v395_v16 = vld [vmem:[#allocation3] sm:$0x1] }
 0x364   : > { %v396_v63 = vsel %vm9735_vm2, 0, %v395_v16 }
 0x365   : > { %397 = vst [vmem:[#allocation3] sm:$0x1] %v396_v63  ;;  %v9800_v16 = vpop.f32.mrf.mxu2  ;;  %v3939_v63 = vrot.slane %v9580_v45, 1 }
 0x36a   : > { %v3060_v2 = vpop.f32.mrf.mxu3 }
 0x36b   : > { %v9679_v17 = vadd.f32 %v3060_v2, %v3002_v23  ;;  %v3933_v2 = vrot.slane %v9279_v8, 1  ;;  %v3020_v8 = vadd.f32 %v9555_v47, %v9502_v49 }
 0x36d   : > { %v3935_v59 = vsel %vm758_vm1, %v3933_v2, %v3934_v42  ;;  %v9840_v22 = vpop.f32.mrf.mxu2 }
 0x36f   : > { %7111 = vmatmul.msk.bf16.gmra.mxu3 %vm2810_vm13, %v3926_v11  ;;  %v9743_v11 = vpop.f32.mrf.mxu0 }
 0x372   : > { %v3063_v7 = vpop.f32.mrf.mxu3 }
 0x373   : > { %v9686_v9 = vadd.f32 %v3063_v7, %v3005_v30  ;;  %v9749_v30 = vpop.f32.mrf.mxu1 }
 0x377   : > { %v9759_v37 = vpop.f32.mrf.mxu0 }
 0x37a   : > { %v3065_v58 = vpop.f32.mrf.mxu3 }
 0x37b   : > { %v9691_v36 = vadd.f32 %v3065_v58, %v3007_v18 }
 0x37f   : > { %7112 = vmatmul.msk.bf16.gmra.mxu3 %vm2810_vm13, %v3929_v3  ;;  %v9764_v3 = vpop.f32.mrf.mxu1  ;;  %v9789_v19 = vpop.f32.mrf.mxu0 }
 0x382   : > { %v3068_v53 = vpop.f32.mrf.mxu3 }
 0x383   : > { %v9703_v20 = vadd.f32 %v3068_v53, %v3010_v28  ;;  %v7874_v28 = vld [vmem:[#allocation2 + $0x6c] sm:$0xff] }
 0x384   : > { %v3936_v53 = vrot.slane %v7874_v28, 1 }
 0x38a   : > { %v3070_v48 = vpop.f32.mrf.mxu3 }
 0x38b   : > { %v9708_v5 = vadd.f32 %v3070_v48, %v3012_v13  ;;  %v3938_v13 = vsel %vm758_vm1, %v3936_v53, %v3937_v43 }
 0x38f   : > { %7113 = vmatmul.msk.bf16.gmra.mxu3 %vm2810_vm13, %v3932_v52  ;;  %v7715_v52 = vld [vmem:[%s10566_s5 + $0x8] sm:$0xff] }
 0x390   : > { %5067 = vmatpush.bf16.msra.mxu0 %v7715_v52 }
 0x392   : > { %v3073_v54 = vpop.f32.mrf.mxu3 }
 0x393   : > { %v9721_v44 = vadd.f32 %v3073_v54, %v3015_v1  ;;  %v426_v54 = vld [vmem:[#allocation3 + $0x8] sm:$0x1] }
 0x39a   : > { %v3075_v39 = vpop.f32.mrf.mxu3 }
 0x39b   : > { %v9730_v23 = vadd.f32 %v3075_v39, %v3017_v4  ;;  %v427_v4 = vsel %vm9772_vm3, 0, %v426_v54  ;;  %v9793_v39 = vpop.f32.mrf.mxu1  ;;  %v3597_v54 = vadd.f32 %v9749_v30, %v9743_v11  ;;  %v7733_v11 = vld [vmem:[%s10566_s5 + $0x98] sm:$0xff]  ;;  %v401_v30 = vld [vmem:[#allocation3 + $0x18] sm:$0x1] }
 0x39c   : > { %428 = vst [vmem:[#allocation3 + $0x8] sm:$0x1] %v427_v4 }
 0x39d   : > { %v3914_v1 = vpop.permute.xlu2 %3913 }
 0x39e   : > { %v3973_v42 = vsel %vm2810_vm13, %v9615_v33, %v3914_v1 }
 0x39f   : > { %7114 = vmatmul.msk.bf16.gmra.mxu3 %vm2810_vm13, %v3935_v59  ;;  %v3940_v59 = vrot.slane %v9588_v56, 1 }
 0x3a2   : > { %v3078_v7 = vpop.f32.mrf.mxu3 }
 0x3a3   : > { %v9751_v18 = vadd.f32 %v3078_v7, %v3020_v8  ;;  %v7736_v8 = vld [vmem:[%s10566_s5 + $0xb0] sm:$0xff]  ;;  %v398_v7 = vld [vmem:[#allocation3 + $0xc] sm:$0x1]  ;;  %v9814_v56 = vpop.f32.mrf.mxu1 }
 0x3a6   : > { %v3338_v58 = vpop.permute.xlu0 %3337  ;;  %v3912_v38 = vpop.permute.xlu1 %3911 }
 0x3a7   : > { %v3397_v6 = vsel %vm2810_vm13, %v9578_v61, %v3338_v58  ;;  %v3970_v15 = vsel %vm2810_vm13, %v9580_v45, %v3912_v38  ;;  %v3025_v61 = vadd.f32 %v9555_v47, %v9534_v12  ;;  %v7737_v12 = vld [vmem:[%s10566_s5 + $0xb8] sm:$0xff]  ;;  %v399_v58 = vsel %vm9735_vm2, 0, %v398_v7  ;;  %v9810_v38 = vpop.f32.mrf.mxu0 }
 0x3a8   : > { %3579 = vmatmul.bf16.gmra.mxu0 %v3397_v6  ;;  %4150 = vmatmul.bf16.gmra.mxu2 %v3970_v15  ;;  %v3941_v6 = vsel %vm758_vm1, %v3939_v63, %v3940_v59  ;;  %400 = vst [vmem:[#allocation3 + $0xc] sm:$0x1] %v399_v58  ;;  %v9816_v45 = vstv %s7118_s16  ;;  %v3595_v15 = vadd.f32 %v9725_v62, %v9723_v29  ;;  %v7722_v29 = vld [vmem:[%s10566_s5 + $0x40] sm:$0xff] }
 0x3a9   : > { %5159 = vmatpush.bf16.msrb.mxu2 %v7737_v12  ;;  %vm4271_vm7 = vcmp.ge.s32.totalorder %v9816_v45, 0  ;;  %vm4281_vm8 = vcmp.lt.s32.totalorder %v9816_v45, 16  ;;  %v429_v62 = vld [vmem:[#allocation3 + $0x14] sm:$0x1]  ;;  %5117 = vmatpush.bf16.msra.mxu1 %v7722_v29  ;;  %v9869_v29 = vpop.f32.mrf.mxu2 }
 0x3aa   : > { %v9761_v49 = vpop.f32.mrf.mxu3  ;;  %v3644_v28 = vadd.f32 %v3595_v15, %v9570_v55  ;;  %v2982_v55 = vadd.f32 %v9555_v47, %v9409_v46  ;;  %v430_v52 = vsel %vm9772_vm3, 0, %v429_v62  ;;  %vm9842_vm15 = vmand %vm4271_vm7, %vm4281_vm8 }
 0x3ab   : > { %431 = vst [vmem:[#allocation3 + $0x14] sm:$0x1] %v430_v52 }
 0x3ac   : > { %v3041_v46 = vadd.f32 %v9582_v57, %v2982_v55  ;;  %v3600_v55 = vadd.f32 %v9764_v3, %v9759_v37  ;;  %v7731_v37 = vld [vmem:[%s10566_s5 + $0x88] sm:$0xff]  ;;  %v7785_v3 = vld [vmem:[%s10566_s5 + $0x1b8] sm:$0xff] }
 0x3ad   : > { %5160 = vmatpush.bf16.msrb.mxu2 %v7736_v8  ;;  %v3943_v8 = vrot.slane %v9623_v51, 1  ;;  %v7732_v51 = vld [vmem:[%s10566_s5 + $0x90] sm:$0xff]  ;;  %6223 = vmatpush.bf16.msra.mxu3 %v7785_v3  ;;  %v7783_v3 = vld [vmem:[%s10566_s5 + $0x1a8] sm:$0xff] }
 0x3ae   : > { %v3645_v7 = vadd.f32 %v3597_v54, %v3041_v46 }
 0x3af   : > { %7115 = vmatmul.msk.bf16.gmra.mxu3 %vm2810_vm13, %v3938_v13  ;;  %v7735_v13 = vld [vmem:[%s10566_s5 + $0xa8] sm:$0xff]  ;;  %v9847_v1 = vpop.f32.mrf.mxu0 }
 0x3b1   : > { %5161 = vmatpush.bf16.msrb.mxu2 %v7735_v13 }
 0x3b2   : > { %v3083_v60 = vpop.f32.mrf.mxu3 }
 0x3b3   : > { %v9778_v0 = vadd.f32 %v3083_v60, %v3025_v61  ;;  %v7714_v61 = vld [vmem:[%s10566_s5] sm:$0xff] }
 0x3b4   : > { %5068 = vmatpush.bf16.msra.mxu0 %v7714_v61  ;;  %v7734_v60 = vld [vmem:[%s10566_s5 + $0xa0] sm:$0xff]  ;;  %v4262_v61 = vadd.s32 1, %v9816_v45 }
 0x3b5   : > { %5162 = vmatpush.bf16.msrb.mxu2 %v7734_v60 }
 0x3b6   : > { %vm4282_vm12 = vcmp.lt.s32.totalorder %v4262_v61, 16 }
 0x3b7   : > { %v9875_v60 = vpop.f32.mrf.mxu0 }
 0x3b8   : > { %4155 = vmatmul.bf16.gmra.mxu2 %v3973_v42  ;;  %v9853_v42 = vpop.f32.mrf.mxu1 }
 0x3b9   : > { %5163 = vmatpush.bf16.msrb.mxu2 %v7733_v11  ;;  %v4567_v11 = vld [vmem:[#allocation3 + $0x8] sm:$0x1] }
 0x3ba   : > { %v9797_v2 = vpop.f32.mrf.mxu3 }
 0x3bd   : > { %5164 = vmatpush.bf16.msrb.mxu2 %v7732_v51 }
 0x3bf   : > { %7116 = vmatmul.msk.bf16.gmra.mxu3 %vm2810_vm13, %v3941_v6  ;;  %v3942_v6 = vrot.slane %v9615_v33, 1  ;;  %v4563_v33 = vld [vmem:[#allocation3] sm:$0xf] }
 0x3c0   : > { %v9887_v12 = vpop.f32.mrf.mxu1 }
 0x3c1   : > { %v3944_v13 = vsel %vm758_vm1, %v3942_v6, %v3943_v8  ;;  %v432_v8 = vld [vmem:[#allocation3 + $0x20] sm:$0x1]  ;;  %5165 = vmatpush.bf16.msrb.mxu2 %v7731_v37  ;;  %v7730_v6 = vld [vmem:[%s10566_s5 + $0x80] sm:$0xff]  ;;  %v4263_v37 = vadd.s32 2, %v9816_v45 }
 0x3c2   : > { %v4170_v43 = vpop.f32.mrf.mxu3 }
 0x3c3   : > { %v4171_v53 = vadd.f32 %v4170_v43, %v9739_v41  ;;  %v402_v43 = vsel %vm9735_vm2, 0, %v401_v30  ;;  %vm4273_vm14 = vcmp.ge.s32.totalorder %v4263_v37, 0  ;;  %vm4283_vm11 = vcmp.lt.s32.totalorder %v4263_v37, 16 }
 0x3c4   : > { %403 = vst [vmem:[#allocation3 + $0x18] sm:$0x1] %v402_v43  ;;  %vm9948_vm10 = vmand %vm4273_vm14, %vm4283_vm11 }
 0x3c5   : > { %v4220_v41 = vadd.f32 %v4171_v53, %v3644_v28  ;;  %5166 = vmatpush.bf16.msrb.mxu2 %v7730_v6 }
 0x3c7   : > { %v4240_v47 = vmax.f32 %v4220_v41, 0.0 }
 0x3c9   : > { %v4321_v4 = vsel %vm9842_vm15, %v4240_v47, 0.0 }
 0x3ca   : > { %v4341_v59 = vpack.c.bf16 %v4321_v4, %v4321_v4  ;;  %v4172_v63 = vpop.f32.mrf.mxu3  ;;  %v3646_v4 = vadd.f32 %v3600_v55, %v9609_v14  ;;  %v433_v14 = vsel %vm9772_vm3, 0, %v432_v8  ;;  %v4570_v8 = vld [vmem:[#allocation3 + $0xc] sm:$0xf] }
 0x3cb   : > { %v4173_v58 = vadd.f32 %v4172_v63, %v9757_v24  ;;  %434 = vst [vmem:[#allocation3 + $0x20] sm:$0x1] %v433_v14 }
 0x3cc   : > { %v4362_v57 = vshrl.u32 %v4341_v59, 16  ;;  %v4365_v53 = vshll.u32 %v4341_v59, 16 }
 0x3cd   : > { %v4221_v15 = vadd.f32 %v4173_v58, %v3645_v7 }
 0x3ce   : > { %v4364_v28 = vrot.slane %v4362_v57, 7 }
 0x3cf   : > { %v4241_v24 = vmax.f32 %v4221_v15, 0.0  ;;  %7117 = vmatmul.msk.bf16.gmra.mxu3 %vm2810_vm13, %v3944_v13  ;;  %vm4272_vm13 = vcmp.ge.s32.totalorder %v4262_v61, 0  ;;  %v3602_v13 = vadd.f32 %v9793_v39, %v9789_v19  ;;  %v9910_v19 = vpop.f32.mrf.mxu0 }
 0x3d0   : > { %v4367_v62 = vor.u32 %v4365_v53, %v4364_v28  ;;  %vm9891_vm9 = vmand %vm4272_vm13, %vm4282_vm12  ;;  %v4368_v15 = vrot.slane %v4364_v28, 4 }
 0x3d1   : > { %v4322_v41 = vsel %vm9842_vm15, %v4241_v24, 0.0  ;;  %v3647_v28 = vadd.f32 %v3602_v13, %v9621_v21  ;;  %v7761_v21 = vld [vmem:[%s10566_s5 + $0x138] sm:$0xff] }
 0x3d2   : > { %v4564_v46 = vsel %vm8252_vm5, %v4367_v62, %v4563_v33  ;;  %v4342_v47 = vpack.c.bf16 %v4322_v41, %v4322_v41  ;;  %v4175_v54 = vpop.f32.mrf.mxu3  ;;  %v9902_v33 = vpop.f32.mrf.mxu2  ;;  %5683 = vmatpush.bf16.msrb.mxu1 %v7761_v21  ;;  %v4574_v21 = vld [vmem:[#allocation3 + $0x14] sm:$0x1] }
 0x3d3   : > { %4565 = vst [vmem:[#allocation3] sm:$0xf] %v4564_v46  ;;  %v4176_v59 = vadd.f32 %v4175_v54, %v9776_v50  ;;  %v7753_v46 = vld [vmem:[%s10566_s5 + $0xf8] sm:$0xff] }
 0x3d4   : > { %v4370_v63 = vshrl.u32 %v4342_v47, 16  ;;  %v4373_v58 = vshll.u32 %v4342_v47, 16  ;;  %v7784_v47 = vld [vmem:[%s10566_s5 + $0x1b0] sm:$0xff]  ;;  %5634 = vmatpush.bf16.msrb.mxu0 %v7753_v46 }
 0x3d5   : > { %v4222_v7 = vadd.f32 %v4176_v59, %v3646_v4  ;;  %v9921_v4 = vpop.f32.mrf.mxu1  ;;  %6224 = vmatpush.bf16.msra.mxu3 %v7784_v47 }
 0x3d6   : > { %v4372_v50 = vrot.slane %v4370_v63, 7  ;;  %v404_v63 = vld [vmem:[#allocation3 + $0x24] sm:$0x1] }
 0x3d7   : > { %v4242_v30 = vmax.f32 %v4222_v7, 0.0  ;;  %v405_v14 = vsel %vm9735_vm2, 0, %v404_v63 }
 0x3d8   : > { %v4375_v43 = vor.u32 %v4373_v58, %v4372_v50  ;;  %v4377_v53 = vrot.slane %v4372_v50, 4  ;;  %406 = vst [vmem:[#allocation3 + $0x24] sm:$0x1] %v405_v14  ;;  %v3605_v58 = vadd.f32 %v9814_v56, %v9810_v38  ;;  %v7782_v38 = vld [vmem:[%s10566_s5 + $0x1a0] sm:$0xff] }
 0x3d9   : > { %v4323_v51 = vsel %vm9891_vm9, %v4242_v30, 0.0  ;;  %6225 = vmatpush.bf16.msra.mxu3 %v7783_v3 }
 0x3da   : > { %v4376_v24 = vsel %vm8724_vm4, %v4368_v15, %v4375_v43  ;;  %v4568_v61 = vsel %vm9735_vm2, %v4377_v53, %v4567_v11  ;;  %v4343_v62 = vpack.c.bf16 %v4323_v51, %v4323_v51  ;;  %v4177_v55 = vpop.f32.mrf.mxu3  ;;  %v3648_v53 = vadd.f32 %v3605_v58, %v9638_v32  ;;  %v9940_v56 = vpop.f32.mrf.mxu2 }
 0x3db   : > { %4566 = vst [vmem:[#allocation3 + $0x4] sm:$0xf] %v4376_v24  ;;  %v4178_v41 = vadd.f32 %v4177_v55, %v9800_v16  ;;  %v3607_v58 = vadd.f32 %v9853_v42, %v9847_v1 }
 0x3dc   : > { %4569 = vst [vmem:[#allocation3 + $0x8] sm:$0x1] %v4568_v61  ;;  %v4379_v39 = vshrl.u32 %v4343_v62, 16  ;;  %v4382_v59 = vshll.u32 %v4343_v62, 16  ;;  %v435_v61 = vld [vmem:[#allocation3 + $0x2c] sm:$0x1] }
 0x3dd   : > { %v4223_v54 = vadd.f32 %v4178_v41, %v3647_v28  ;;  %v436_v32 = vsel %vm9772_vm3, 0, %v435_v61  ;;  %v9944_v28 = vpop.f32.mrf.mxu0  ;;  %6226 = vmatpush.bf16.msra.mxu3 %v7782_v38 }
 0x3de   : > { %v4381_v16 = vrot.slane %v4379_v39, 7  ;;  %437 = vst [vmem:[#allocation3 + $0x2c] sm:$0x1] %v436_v32 }
 0x3df   : > { %v4243_v7 = vmax.f32 %v4223_v54, 0.0  ;;  %v7781_v54 = vld [vmem:[%s10566_s5 + $0x198] sm:$0xff] }
 0x3e0   : > { %v4384_v50 = vor.u32 %v4382_v59, %v4381_v16 }
 0x3e1   : > { %v4324_v6 = vsel %vm9891_vm9, %v4243_v7, 0.0  ;;  %6227 = vmatpush.bf16.msra.mxu3 %v7781_v54  ;;  %v7779_v54 = vld [vmem:[%s10566_s5 + $0x188] sm:$0xff] }
 0x3e2   : > { %v4571_v11 = vsel %vm8252_vm5, %v4384_v50, %v4570_v8  ;;  %v4344_v30 = vpack.c.bf16 %v4324_v6, %v4324_v6  ;;  %v4180_v15 = vpop.f32.mrf.mxu3  ;;  %v7706_v43 = vld [vmem:[#allocation3] sm:$0xff]  ;;  %v9955_v8 = vpop.f32.mrf.mxu1 }
 0x3e3   : > { %4572 = vst [vmem:[#allocation3 + $0xc] sm:$0xf] %v4571_v11  ;;  %v4181_v13 = vadd.f32 %v4180_v15, %v9840_v22  ;;  %v4636_v51 = vld [vmem:[#allocation3 + $0x8] sm:$0x1]  ;;  %5069 = vmatmul.bf16.vlgmr.msra.gmra.mxu0 %v7706_v43  ;;  %v4733_v55 = vshll.u32 %v7706_v43, 16  ;;  %v4385_v22 = vrot.slane %v4381_v16, 4 }
 0x3e4   : > { %v4387_v57 = vshrl.u32 %v4344_v30, 16  ;;  %v4714_v24 = vunpack.c.l.b16 %v4636_v51  ;;  %v4390_v39 = vshll.u32 %v4344_v30, 16  ;;  %v4834_v3 = vrot.slane %v7706_v43, 1 }
 0x3e5   : > { %v4224_v62 = vadd.f32 %v4181_v13, %v3648_v53  ;;  %v4731_v63 = vshrl.u32 %v7706_v43, 16  ;;  %v4735_v16 = vrot.slane %v4733_v55, 1  ;;  %v3649_v51 = vadd.f32 %v3607_v58, %v9644_v27  ;;  %v7760_v27 = vld [vmem:[%s10566_s5 + $0x130] sm:$0xff] }
 0x3e6   : > { %v4389_v41 = vrot.slane %v4387_v57, 7  ;;  %v4722_v47 = vpack.c.b16 %v4714_v24, %v4714_v24  ;;  %v7752_v57 = vld [vmem:[%s10566_s5 + $0xf0] sm:$0xff]  ;;  %5684 = vmatpush.bf16.msrb.mxu1 %v7760_v27 }
 0x3e7   : > { %v4244_v59 = vmax.f32 %v4224_v62, 0.0  ;;  %v4736_v11 = vor.u32 %v4735_v16, %v4731_v63  ;;  %v7780_v24 = vld [vmem:[%s10566_s5 + $0x190] sm:$0xff]  ;;  %5635 = vmatpush.bf16.msrb.mxu0 %v7752_v57  ;;  %v3610_v63 = vadd.f32 %v9887_v12, %v9875_v60  ;;  %v7778_v60 = vld [vmem:[%s10566_s5 + $0x180] sm:$0xff] }
 0x3e8   : > { %v4392_v7 = vor.u32 %v4390_v39, %v4389_v41  ;;  %v4394_v37 = vrot.slane %v4389_v41, 4  ;;  %v4835_v14 = vrot.slane %v4722_v47, 1  ;;  %v4738_v50 = vshll.u32 %v4722_v47, 16  ;;  %v407_v41 = vld [vmem:[#allocation3 + $0x30] sm:$0x1]  ;;  %6228 = vmatpush.bf16.msra.mxu3 %v7780_v24 }
 0x3e9   : > { %v4325_v6 = vsel %vm9948_vm10, %v4244_v59, 0.0  ;;  %v4577_v39 = vld [vmem:[#allocation3 + $0x18] sm:$0xf]  ;;  %v9986_v59 = vpop.f32.mrf.mxu0 }
 0x3ea   : > { %v4393_v30 = vsel %vm8724_vm4, %v4385_v22, %v4392_v7  ;;  %v4575_v15 = vsel %vm9735_vm2, %v4394_v37, %v4574_v21  ;;  %v4345_v43 = vpack.c.bf16 %v4325_v6, %v4325_v6  ;;  %v4182_v53 = vpop.f32.mrf.mxu3  ;;  %v4836_v13 = vsel %vm758_vm1, %v4834_v3, %v4835_v14  ;;  %v9992_v7 = vpop.f32.mrf.mxu1 }
 0x3eb   : > { %4573 = vst [vmem:[#allocation3 + $0x10] sm:$0xf] %v4393_v30  ;;  %v4183_v1 = vadd.f32 %v4182_v53, %v9869_v29  ;;  %5167 = vmatmul.bf16.vlgmr.msrb.gmra.mxu2 %v4836_v13  ;;  %v4740_v42 = vrot.slane %v4738_v50, 1  ;;  %v9978_v29 = vpop.f32.mrf.mxu2  ;;  %v4264_v22 = vadd.s32 3, %v9816_v45  ;;  %v408_v21 = vsel %vm9735_vm2, 0, %v407_v41 }
 0x3ec   : > { %4576 = vst [vmem:[#allocation3 + $0x14] sm:$0x1] %v4575_v15  ;;  %v4396_v38 = vshrl.u32 %v4345_v43, 16  ;;  %v4399_v32 = vshll.u32 %v4345_v43, 16  ;;  %v3650_v6 = vadd.f32 %v3610_v63, %v9650_v10  ;;  %6229 = vmatpush.bf16.msra.mxu3 %v7779_v54  ;;  %v438_v15 = vld [vmem:[#allocation3 + $0x38] sm:$0x1] }
 0x3ed   : > { %v4225_v61 = vadd.f32 %v4183_v1, %v3649_v51  ;;  %v4741_v62 = vsel %vm589_vm0, %v4736_v11, %v4740_v42  ;;  %409 = vst [vmem:[#allocation3 + $0x30] sm:$0x1] %v408_v21  ;;  %vm4274_vm7 = vcmp.ge.s32.totalorder %v4264_v22, 0  ;;  %vm4284_vm8 = vcmp.lt.s32.totalorder %v4264_v22, 16 }
 0x3ee   : > { %v4398_v55 = vrot.slane %v4396_v38, 7  ;;  %5118 = vmatmul.bf16.vlgmr.msra.gmra.mxu1 %v4741_v62  ;;  %v439_v13 = vsel %vm9772_vm3, 0, %v438_v15  ;;  %vm10004_vm15 = vmand %vm4274_vm7, %vm4284_vm8  ;;  %v4581_v38 = vld [vmem:[#allocation3 + $0x20] sm:$0x1]  ;;  %v3612_v22 = vadd.f32 %v9921_v4, %v9910_v19  ;;  %v4265_v15 = vadd.s32 4, %v9816_v45 }
 0x3ef   : > { %v4245_v47 = vmax.f32 %v4225_v61, 0.0  ;;  %440 = vst [vmem:[#allocation3 + $0x38] sm:$0x1] %v439_v13 }
 0x3f0   : > { %v4401_v3 = vor.u32 %v4399_v32, %v4398_v55  ;;  %v4402_v10 = vrot.slane %v4398_v55, 4  ;;  %6230 = vmatpush.bf16.msra.mxu3 %v7778_v60  ;;  %vm4275_vm13 = vcmp.ge.s32.totalorder %v4265_v15, 0  ;;  %vm4285_vm12 = vcmp.lt.s32.totalorder %v4265_v15, 16 }
 0x3f1   : > { %v4326_v16 = vsel %vm9948_vm10, %v4245_v47, 0.0  ;;  %v10014_v21 = vpop.f32.mrf.mxu0  ;;  %vm10053_vm9 = vmand %vm4275_vm13, %vm4285_vm12 }
 0x3f2   : > { %v4578_v37 = vsel %vm8252_vm5, %v4401_v3, %v4577_v39  ;;  %v4346_v14 = vpack.c.bf16 %v4326_v16, %v4326_v16  ;;  %v4185_v50 = vpop.f32.mrf.mxu3  ;;  %v7707_v58 = vld [vmem:[#allocation3 + $0xc] sm:$0xff] }
 0x3f3   : > { %4579 = vst [vmem:[#allocation3 + $0x18] sm:$0xf] %v4578_v37  ;;  %v4186_v11 = vadd.f32 %v4185_v50, %v9902_v33  ;;  %v4639_v30 = vld [vmem:[#allocation3 + $0x14] sm:$0x1]  ;;  %5074 = vmatmul.bf16.gmra.mxu0 %v7707_v58  ;;  %v4745_v53 = vshll.u32 %v7707_v58, 16  ;;  %v4837_v24 = vrot.slane %v7707_v58, 1  ;;  %v10008_v27 = vpop.f32.mrf.mxu2  ;;  %v3651_v50 = vadd.f32 %v3612_v22, %v9661_v34 }
 0x3f4   : > { %v4404_v12 = vshrl.u32 %v4346_v14, 16  ;;  %v4715_v46 = vunpack.c.l.b16 %v4639_v30  ;;  %v4407_v1 = vshll.u32 %v4346_v14, 16  ;;  %v4743_v61 = vshrl.u32 %v7707_v58, 16  ;;  %v10023_v58 = vpop.f32.mrf.mxu1  ;;  %v7759_v30 = vld [vmem:[%s10566_s5 + $0x128] sm:$0xff] }
 0x3f5   : > { %v4226_v43 = vadd.f32 %v4186_v11, %v3650_v6  ;;  %v4747_v62 = vrot.slane %v4745_v53, 1  ;;  %v7751_v11 = vld [vmem:[%s10566_s5 + $0xe8] sm:$0xff]  ;;  %v4584_v53 = vld [vmem:[#allocation3 + $0x24] sm:$0xf]  ;;  %5685 = vmatpush.bf16.msrb.mxu1 %v7759_v30 }
 0x3f6   : > { %v4406_v51 = vrot.slane %v4404_v12, 7  ;;  %v4723_v42 = vpack.c.b16 %v4715_v46, %v4715_v46  ;;  %v410_v12 = vld [vmem:[#allocation3 + $0x3c] sm:$0x1]  ;;  %5636 = vmatpush.bf16.msrb.mxu0 %v7751_v11 }
 0x3f7   : > { %v4246_v57 = vmax.f32 %v4226_v43, 0.0  ;;  %v4748_v54 = vor.u32 %v4747_v62, %v4743_v61  ;;  %v411_v43 = vsel %vm9735_vm2, 0, %v410_v12  ;;  %v3617_v12 = vadd.f32 %v9992_v7, %v9986_v59 }
 0x3f8   : > { %v4409_v32 = vor.u32 %v4407_v1, %v4406_v51  ;;  %v4411_v41 = vrot.slane %v4406_v51, 4  ;;  %v4838_v55 = vrot.slane %v4723_v42, 1  ;;  %v4750_v39 = vshll.u32 %v4723_v42, 16  ;;  %412 = vst [vmem:[#allocation3 + $0x3c] sm:$0x1] %v411_v43 }
 0x3f9   : > { %v4327_v47 = vsel %vm10004_vm15, %v4246_v57, 0.0  ;;  %v3615_v51 = vadd.f32 %v9955_v8, %v9944_v28  ;;  %v441_v8 = vld [vmem:[#allocation3 + $0x44] sm:$0x1]  ;;  %v10045_v33 = vpop.f32.mrf.mxu0 }
 0x3fa   : > { %v4410_v3 = vsel %vm8724_vm4, %v4402_v10, %v4409_v32  ;;  %v4582_v63 = vsel %vm9735_vm2, %v4411_v41, %v4581_v38  ;;  %v4347_v16 = vpack.c.bf16 %v4327_v47, %v4327_v47  ;;  %v4187_v37 = vpop.f32.mrf.mxu3  ;;  %v4839_v14 = vsel %vm758_vm1, %v4837_v24, %v4838_v55 }
 0x3fb   : > { %4580 = vst [vmem:[#allocation3 + $0x1c] sm:$0xf] %v4410_v3  ;;  %v4188_v19 = vadd.f32 %v4187_v37, %v9940_v56  ;;  %5172 = vmatmul.bf16.gmra.mxu2 %v4839_v14  ;;  %v4752_v4 = vrot.slane %v4750_v39, 1  ;;  %v10039_v42 = vpop.f32.mrf.mxu2  ;;  %v3652_v32 = vadd.f32 %v3615_v51, %v9668_v31  ;;  %v4588_v14 = vld [vmem:[#allocation3 + $0x2c] sm:$0x1]  ;;  %v3653_v51 = vadd.f32 %v3617_v12, %v9679_v17 }
 0x3fc   : > { %4583 = vst [vmem:[#allocation3 + $0x20] sm:$0x1] %v4582_v63  ;;  %v4413_v6 = vshrl.u32 %v4347_v16, 16  ;;  %v4416_v56 = vshll.u32 %v4347_v16, 16  ;;  %v10049_v3 = vpop.f32.mrf.mxu1 }
 0x3fd   : > { %v4227_v60 = vadd.f32 %v4188_v19, %v3651_v50  ;;  %v4753_v34 = vsel %vm589_vm0, %v4748_v54, %v4752_v4  ;;  %v442_v54 = vsel %vm9772_vm3, 0, %v441_v8 }
 0x3fe   : > { %v4415_v46 = vrot.slane %v4413_v6, 7  ;;  %5123 = vmatmul.bf16.gmra.mxu1 %v4753_v34  ;;  %443 = vst [vmem:[#allocation3 + $0x44] sm:$0x1] %v442_v54  ;;  %v3620_v54 = vadd.f32 %v10023_v58, %v10014_v21 }
 0x3ff   : > { %v4247_v13 = vmax.f32 %v4227_v60, 0.0 }
 0x400   : > { %v4418_v10 = vor.u32 %v4416_v56, %v4415_v46  ;;  %v4419_v63 = vrot.slane %v4415_v46, 4 }
 0x401   : > { %v4328_v1 = vsel %vm10004_vm15, %v4247_v13, 0.0 }
 0x402   : > { %v4585_v38 = vsel %vm8252_vm5, %v4418_v10, %v4584_v53  ;;  %v4348_v57 = vpack.c.bf16 %v4328_v1, %v4328_v1  ;;  %v4190_v24 = vpop.f32.mrf.mxu3  ;;  %v7708_v61 = vld [vmem:[#allocation3 + $0x18] sm:$0xff] }
 0x403   : > { %v7770_v62 = vld [vmem:[#allocation3 + $0x18] sm:$0xff]  ;;  %4586 = vst [vmem:[#allocation3 + $0x24] sm:$0xf] %v4585_v38  ;;  %v4191_v41 = vadd.f32 %v4190_v24, %v9978_v29  ;;  %v4642_v28 = vld [vmem:[#allocation3 + $0x20] sm:$0x1]  ;;  %5079 = vmatmul.bf16.gmra.mxu0 %v7708_v61  ;;  %v4757_v47 = vshll.u32 %v7708_v61, 16  ;;  %v10068_v7 = vpop.f32.mrf.mxu2 }
 0x404   : > { %v4421_v55 = vshrl.u32 %v4348_v57, 16  ;;  %6231 = vmatmul.bf16.vlgmr.msra.gmra.mxu3 %v7770_v62  ;;  %v4716_v39 = vunpack.c.l.b16 %v4642_v28  ;;  %v4424_v16 = vshll.u32 %v4348_v57, 16  ;;  %v4840_v19 = vrot.slane %v7708_v61, 1  ;;  %v7750_v57 = vld [vmem:[%s10566_s5 + $0xe0] sm:$0xff]  ;;  %v413_v62 = vld [vmem:[#allocation3 + $0x48] sm:$0x1] }
 0x405   : > { %v4228_v22 = vadd.f32 %v4191_v41, %v3652_v32  ;;  %v4755_v4 = vshrl.u32 %v7708_v61, 16  ;;  %v4759_v6 = vrot.slane %v4757_v47, 1  ;;  %v7758_v24 = vld [vmem:[%s10566_s5 + $0x120] sm:$0xff]  ;;  %v10077_v32 = vpop.f32.mrf.mxu0  ;;  %v4266_v28 = vadd.s32 5, %v9816_v45  ;;  %5637 = vmatpush.bf16.msrb.mxu0 %v7750_v57 }
 0x406   : > { %v4423_v31 = vrot.slane %v4421_v55, 7  ;;  %v4724_v37 = vpack.c.b16 %v4716_v39, %v4716_v39  ;;  %v414_v8 = vsel %vm9735_vm2, 0, %v413_v62  ;;  %v4591_v55 = vld [vmem:[#allocation3 + $0x30] sm:$0xf]  ;;  %5686 = vmatpush.bf16.msrb.mxu1 %v7758_v24  ;;  %v3622_v24 = vadd.f32 %v10049_v3, %v10045_v33 }
 0x407   : > { %v4248_v50 = vmax.f32 %v4228_v22, 0.0  ;;  %v4760_v56 = vor.u32 %v4759_v6, %v4755_v4  ;;  %415 = vst [vmem:[#allocation3 + $0x48] sm:$0x1] %v414_v8  ;;  %v10082_v22 = vpop.f32.mrf.mxu1  ;;  %vm4276_vm14 = vcmp.ge.s32.totalorder %v4266_v28, 0  ;;  %vm4286_vm11 = vcmp.lt.s32.totalorder %v4266_v28, 16 }
 0x408   : > { %v4426_v11 = vor.u32 %v4424_v16, %v4423_v31  ;;  %v4428_v30 = vrot.slane %v4423_v31, 4  ;;  %v4841_v60 = vrot.slane %v4724_v37, 1  ;;  %v4762_v34 = vshll.u32 %v4724_v37, 16  ;;  %vm10096_vm10 = vmand %vm4276_vm14, %vm4286_vm11 }
 0x409   : > { %v4329_v46 = vsel %vm10053_vm9, %v4248_v50, 0.0 }
 0x40a   : > { %v4427_v15 = vsel %vm8724_vm4, %v4419_v63, %v4426_v11  ;;  %v4589_v43 = vsel %vm9735_vm2, %v4428_v30, %v4588_v14  ;;  %v4349_v53 = vpack.c.bf16 %v4329_v46, %v4329_v46  ;;  %v4192_v13 = vpop.f32.mrf.mxu3  ;;  %v4842_v10 = vsel %vm758_vm1, %v4840_v19, %v4841_v60  ;;  %v444_v11 = vld [vmem:[#allocation3 + $0x50] sm:$0x1] }
 0x40b   : > { %4587 = vst [vmem:[#allocation3 + $0x28] sm:$0xf] %v4427_v15  ;;  %v4193_v1 = vadd.f32 %v4192_v13, %v10008_v27  ;;  %5177 = vmatmul.bf16.gmra.mxu2 %v4842_v10  ;;  %v4764_v59 = vrot.slane %v4762_v34, 1  ;;  %v3654_v19 = vadd.f32 %v3620_v54, %v9686_v9  ;;  %v445_v60 = vsel %vm9772_vm3, 0, %v444_v11  ;;  %v4141_v34 = vpop.f32.mrf.mxu2  ;;  %v4595_v15 = vld [vmem:[#allocation3 + $0x38] sm:$0x1] }
 0x40c   : > { %4590 = vst [vmem:[#allocation3 + $0x2c] sm:$0x1] %v4589_v43  ;;  %v4430_v38 = vshrl.u32 %v4349_v53, 16  ;;  %v4433_v41 = vshll.u32 %v4349_v53, 16  ;;  %v7749_v54 = vld [vmem:[%s10566_s5 + $0xd8] sm:$0xff] }
 0x40d   : > { %v4229_v61 = vadd.f32 %v4193_v1, %v3653_v51  ;;  %v4765_v17 = vsel %vm589_vm0, %v4760_v56, %v4764_v59  ;;  %446 = vst [vmem:[#allocation3 + $0x50] sm:$0x1] %v445_v60  ;;  %v10100_v51 = vpop.f32.mrf.mxu0  ;;  %5638 = vmatpush.bf16.msrb.mxu0 %v7749_v54 }
 0x40e   : > { %v4432_v27 = vrot.slane %v4430_v38, 7  ;;  %5128 = vmatmul.bf16.gmra.mxu1 %v4765_v17 }
 0x40f   : > { %v4249_v39 = vmax.f32 %v4229_v61, 0.0  ;;  %v10106_v62 = vpop.f32.mrf.mxu1 }
 0x410   : > { %v4435_v47 = vor.u32 %v4433_v41, %v4432_v27  ;;  %v4436_v12 = vrot.slane %v4432_v27, 4 }
 0x411   : > { %v4330_v63 = vsel %vm10053_vm9, %v4249_v39, 0.0  ;;  %v3655_v39 = vadd.f32 %v3622_v24, %v9691_v36  ;;  %v4602_v24 = vld [vmem:[#allocation3 + $0x44] sm:$0x1] }
 0x412   : > { %v4592_v31 = vsel %vm8252_vm5, %v4435_v47, %v4591_v55  ;;  %v4350_v16 = vpack.c.bf16 %v4330_v63, %v4330_v63  ;;  %v4195_v37 = vpop.f32.mrf.mxu3  ;;  %v7709_v14 = vld [vmem:[#allocation3 + $0x24] sm:$0xff] }
 0x413   : > { %v7771_v50 = vld [vmem:[#allocation3 + $0x24] sm:$0xff]  ;;  %4593 = vst [vmem:[#allocation3 + $0x30] sm:$0xf] %v4592_v31  ;;  %v4196_v4 = vadd.f32 %v4195_v37, %v10039_v42  ;;  %v4645_v6 = vld [vmem:[#allocation3 + $0x2c] sm:$0x1]  ;;  %5084 = vmatmul.bf16.gmra.mxu0 %v7709_v14  ;;  %v4769_v30 = vshll.u32 %v7709_v14, 16 }
 0x414   : > { %v4438_v21 = vshrl.u32 %v4350_v16, 16  ;;  %6236 = vmatmul.bf16.gmra.mxu3 %v7771_v50  ;;  %v4717_v58 = vunpack.c.l.b16 %v4645_v6  ;;  %v4441_v56 = vshll.u32 %v4350_v16, 16  ;;  %v4843_v53 = vrot.slane %v7709_v14, 1  ;;  %v7757_v63 = vld [vmem:[%s10566_s5 + $0x118] sm:$0xff]  ;;  %v416_v37 = vld [vmem:[#allocation3 + $0x54] sm:$0x1]  ;;  %v4143_v6 = vpop.f32.mrf.mxu2 }
 0x415   : > { %v4230_v29 = vadd.f32 %v4196_v4, %v3654_v19  ;;  %v4767_v13 = vshrl.u32 %v7709_v14, 16  ;;  %v4771_v10 = vrot.slane %v4769_v30, 1  ;;  %v417_v50 = vsel %vm9735_vm2, 0, %v416_v37  ;;  %v4598_v19 = vld [vmem:[#allocation3 + $0x3c] sm:$0xf]  ;;  %5687 = vmatpush.bf16.msrb.mxu1 %v7757_v63 }
 0x416   : > { %v4440_v46 = vrot.slane %v4438_v21, 7  ;;  %v4725_v42 = vpack.c.b16 %v4717_v58, %v4717_v58  ;;  %418 = vst [vmem:[#allocation3 + $0x54] sm:$0x1] %v417_v50  ;;  %v3625_v21 = vadd.f32 %v10082_v22, %v10077_v32  ;;  %v447_v32 = vld [vmem:[#allocation3 + $0x5c] sm:$0x1] }
 0x417   : > { %v4250_v43 = vmax.f32 %v4230_v29, 0.0  ;;  %v4772_v17 = vor.u32 %v4771_v10, %v4767_v13  ;;  %v10129_v29 = vpop.f32.mrf.mxu0  ;;  %v3629_v22 = vpop.f32.mrf.mxu1 }
 0x418   : > { %v4443_v1 = vor.u32 %v4441_v56, %v4440_v46  ;;  %v4445_v59 = vrot.slane %v4440_v46, 4  ;;  %v4844_v38 = vrot.slane %v4725_v42, 1  ;;  %v4774_v57 = vshll.u32 %v4725_v42, 16 }
 0x419   : > { %v4331_v61 = vsel %vm10096_vm10, %v4250_v43, 0.0  ;;  %v3656_v42 = vadd.f32 %v3625_v21, %v9703_v20 }
 0x41a   : > { %v4444_v27 = vsel %vm8724_vm4, %v4436_v12, %v4443_v1  ;;  %v4596_v41 = vsel %vm9735_vm2, %v4445_v59, %v4595_v15  ;;  %v4351_v28 = vpack.c.bf16 %v4331_v61, %v4331_v61  ;;  %v4197_v8 = vpop.f32.mrf.mxu3  ;;  %v4845_v55 = vsel %vm758_vm1, %v4843_v53, %v4844_v38 }
 0x41b   : > { %4594 = vst [vmem:[#allocation3 + $0x34] sm:$0xf] %v4444_v27  ;;  %v4198_v33 = vadd.f32 %v4197_v8, %v10068_v7  ;;  %5182 = vmatmul.bf16.gmra.mxu2 %v4845_v55  ;;  %v4776_v3 = vrot.slane %v4774_v57, 1  ;;  %v4267_v7 = vadd.s32 6, %v9816_v45  ;;  %v448_v1 = vsel %vm9772_vm3, 0, %v447_v32 }
 0x41c   : > { %4597 = vst [vmem:[#allocation3 + $0x38] sm:$0x1] %v4596_v41  ;;  %v4447_v47 = vshrl.u32 %v4351_v28, 16  ;;  %v4450_v14 = vshll.u32 %v4351_v28, 16  ;;  %v4146_v54 = vpop.f32.mrf.mxu2 }
 0x41d   : > { %v4231_v31 = vadd.f32 %v4198_v33, %v3655_v39  ;;  %v4777_v16 = vsel %vm589_vm0, %v4772_v17, %v4776_v3  ;;  %vm4277_vm7 = vcmp.ge.s32.totalorder %v4267_v7, 0  ;;  %vm4287_vm8 = vcmp.lt.s32.totalorder %v4267_v7, 16  ;;  %449 = vst [vmem:[#allocation3 + $0x5c] sm:$0x1] %v448_v1 }
 0x41e   : > { %v4449_v36 = vrot.slane %v4447_v47, 7  ;;  %5133 = vmatmul.bf16.gmra.mxu1 %v4777_v16  ;;  %vm10138_vm15 = vmand %vm4277_vm7, %vm4287_vm8  ;;  %v3627_v39 = vadd.f32 %v10106_v62, %v10100_v51 }
 0x41f   : > { %v4251_v4 = vmax.f32 %v4231_v31, 0.0  ;;  %v3572_v7 = vpop.f32.mrf.mxu0 }
 0x420   : > { %v4452_v11 = vor.u32 %v4450_v14, %v4449_v36  ;;  %v4453_v57 = vrot.slane %v4449_v36, 4  ;;  %v3657_v14 = vadd.f32 %v3627_v39, %v9708_v5  ;;  %v3631_v5 = vpop.f32.mrf.mxu1 }
 0x421   : > { %v4332_v58 = vsel %vm10096_vm10, %v4251_v4, 0.0  ;;  %v7756_v4 = vld [vmem:[%s10566_s5 + $0x110] sm:$0xff] }
 0x422   : > { %v4599_v30 = vsel %vm8252_vm5, %v4452_v11, %v4598_v19  ;;  %v4352_v60 = vpack.c.bf16 %v4332_v58, %v4332_v58  ;;  %v4200_v12 = vpop.f32.mrf.mxu3  ;;  %v7710_v46 = vld [vmem:[#allocation3 + $0x30] sm:$0xff]  ;;  %v7748_v19 = vld [vmem:[%s10566_s5 + $0xd0] sm:$0xff]  ;;  %5688 = vmatpush.bf16.msrb.mxu1 %v7756_v4 }
 0x423   : > { %v7772_v56 = vld [vmem:[#allocation3 + $0x30] sm:$0xff]  ;;  %4600 = vst [vmem:[#allocation3 + $0x3c] sm:$0xf] %v4599_v30  ;;  %v4201_v15 = vadd.f32 %v4200_v12, %v4141_v34  ;;  %v4648_v43 = vld [vmem:[#allocation3 + $0x38] sm:$0x1]  ;;  %5089 = vmatmul.bf16.gmra.mxu0 %v7710_v46  ;;  %v4781_v10 = vshll.u32 %v7710_v46, 16 }
 0x424   : > { %v4455_v9 = vshrl.u32 %v4352_v60, 16  ;;  %6241 = vmatmul.bf16.gmra.mxu3 %v7772_v56  ;;  %v4718_v53 = vunpack.c.l.b16 %v4648_v43  ;;  %v4458_v38 = vshll.u32 %v4352_v60, 16  ;;  %v4779_v17 = vshrl.u32 %v7710_v46, 16  ;;  %v419_v58 = vld [vmem:[#allocation3 + $0x60] sm:$0x1]  ;;  %5639 = vmatpush.bf16.msrb.mxu0 %v7748_v19 }
 0x425   : > { %v4232_v13 = vadd.f32 %v4201_v15, %v3656_v42  ;;  %v4783_v27 = vrot.slane %v4781_v10, 1  ;;  %v4846_v8 = vrot.slane %v7710_v46, 1  ;;  %v4268_v60 = vadd.s32 7, %v9816_v45  ;;  %v4605_v46 = vld [vmem:[#allocation3 + $0x48] sm:$0xf] }
 0x426   : > { %v4457_v59 = vrot.slane %v4455_v9, 7  ;;  %v4726_v34 = vpack.c.b16 %v4718_v53, %v4718_v53  ;;  %v420_v12 = vsel %vm9735_vm2, 0, %v419_v58  ;;  %v3630_v15 = vadd.f32 %v3629_v22, %v10129_v29 }
 0x427   : > { %v4252_v61 = vmax.f32 %v4232_v13, 0.0  ;;  %v4784_v3 = vor.u32 %v4783_v27, %v4779_v17  ;;  %421 = vst [vmem:[#allocation3 + $0x60] sm:$0x1] %v420_v12  ;;  %vm4278_vm13 = vcmp.ge.s32.totalorder %v4268_v60, 0  ;;  %vm4288_vm12 = vcmp.lt.s32.totalorder %v4268_v60, 16  ;;  %v3575_v17 = vpop.f32.mrf.mxu0  ;;  %v7769_v60 = vld [vmem:[%s10566_s5 + $0x178] sm:$0xff] }
 0x428   : > { %v4460_v41 = vor.u32 %v4458_v38, %v4457_v59  ;;  %v4462_v28 = vrot.slane %v4457_v59, 4  ;;  %v4847_v55 = vrot.slane %v4726_v34, 1  ;;  %v4786_v47 = vshll.u32 %v4726_v34, 16  ;;  %v450_v34 = vld [vmem:[#allocation3 + $0x68] sm:$0x1]  ;;  %vm10172_vm9 = vmand %vm4278_vm13, %vm4288_vm12  ;;  %5732 = vmatpush.bf16.msra.mxu2 %v7769_v60 }
 0x429   : > { %v4333_v33 = vsel %vm10138_vm15, %v4252_v61, 0.0  ;;  %v3658_v1 = vadd.f32 %v3630_v15, %v9721_v44  ;;  %v451_v61 = vsel %vm9772_vm3, 0, %v450_v34  ;;  %v4269_v15 = vadd.s32 8, %v9816_v45  ;;  %v7767_v44 = vld [vmem:[%s10566_s5 + $0x168] sm:$0xff] }
 0x42a   : > { %v4461_v63 = vsel %vm8724_vm4, %v4453_v57, %v4460_v41  ;;  %v4603_v31 = vsel %vm9735_vm2, %v4462_v28, %v4602_v24  ;;  %v4353_v16 = vpack.c.bf16 %v4333_v33, %v4333_v33  ;;  %v4202_v37 = vpop.f32.mrf.mxu3  ;;  %v4848_v36 = vsel %vm758_vm1, %v4846_v8, %v4847_v55  ;;  %v4148_v57 = vpop.f32.mrf.mxu2  ;;  %452 = vst [vmem:[#allocation3 + $0x68] sm:$0x1] %v451_v61  ;;  %v4609_v55 = vld [vmem:[#allocation3 + $0x50] sm:$0x1] }
 0x42b   : > { %4601 = vst [vmem:[#allocation3 + $0x40] sm:$0xf] %v4461_v63  ;;  %v4203_v51 = vadd.f32 %v4202_v37, %v4143_v6  ;;  %5187 = vmatmul.bf16.gmra.mxu2 %v4848_v36  ;;  %v4788_v62 = vrot.slane %v4786_v47, 1  ;;  %v3632_v36 = vadd.f32 %v3631_v5, %v3572_v7  ;;  %vm4279_vm14 = vcmp.ge.s32.totalorder %v4269_v15, 0  ;;  %v10210_v61 = vld [vmem:[%s10565_s4] ss:$0 sm:$0xff] }
 0x42c   : > { %4604 = vst [vmem:[#allocation3 + $0x44] sm:$0x1] %v4603_v31  ;;  %v4464_v50 = vshrl.u32 %v4353_v16, 16  ;;  %v4467_v6 = vshll.u32 %v4353_v16, 16  ;;  %vm4289_vm11 = vcmp.lt.s32.totalorder %v4269_v15, 16 }
 0x42d   : > { %v4233_v11 = vadd.f32 %v4203_v51, %v3657_v14  ;;  %v4789_v21 = vsel %vm589_vm0, %v4784_v3, %v4788_v62  ;;  %vm10224_vm10 = vmand %vm4279_vm14, %vm4289_vm11 }
 0x42e   : > { %v4466_v30 = vrot.slane %v4464_v50, 7  ;;  %5138 = vmatmul.bf16.gmra.mxu1 %v4789_v21  ;;  %v3659_v21 = vadd.f32 %v3632_v36, %v9730_v23  ;;  %v7755_v23 = vld [vmem:[%s10566_s5 + $0x108] sm:$0xff] }
 0x42f   : > { %v4253_v56 = vmax.f32 %v4233_v11, 0.0  ;;  %5689 = vmatpush.bf16.msrb.mxu1 %v7755_v23  ;;  %v4616_v36 = vld [vmem:[#allocation3 + $0x5c] sm:$0x1] }
 0x430   : > { %v4469_v42 = vor.u32 %v4467_v6, %v4466_v30  ;;  %v4470_v27 = vrot.slane %v4466_v30, 4  ;;  %v7747_v6 = vld [vmem:[%s10566_s5 + $0xc8] sm:$0xff] }
 0x431   : > { %v4334_v43 = vsel %vm10138_vm15, %v4253_v56, 0.0  ;;  %5640 = vmatpush.bf16.msrb.mxu0 %v7747_v6 }
 0x432   : > { %v4606_v32 = vsel %vm8252_vm5, %v4469_v42, %v4605_v46  ;;  %v4354_v9 = vpack.c.bf16 %v4334_v43, %v4334_v43  ;;  %v4205_v53 = vpop.f32.mrf.mxu3  ;;  %v7711_v13 = vld [vmem:[#allocation3 + $0x3c] sm:$0xff]  ;;  %v4151_v5 = vpop.f32.mrf.mxu2  ;;  %v422_v43 = vld [vmem:[#allocation3 + $0x6c] sm:$0x1] }
 0x433   : > { %v7773_v10 = vld [vmem:[#allocation3 + $0x3c] sm:$0xff]  ;;  %4607 = vst [vmem:[#allocation3 + $0x48] sm:$0xf] %v4606_v32  ;;  %v4206_v59 = vadd.f32 %v4205_v53, %v4146_v54  ;;  %v4651_v38 = vld [vmem:[#allocation3 + $0x44] sm:$0x1]  ;;  %5094 = vmatmul.bf16.gmra.mxu0 %v7711_v13  ;;  %v4793_v24 = vshll.u32 %v7711_v13, 16  ;;  %v3634_v54 = vpop.f32.mrf.mxu1 }
 0x434   : > { %v4472_v29 = vshrl.u32 %v4354_v9, 16  ;;  %6246 = vmatmul.bf16.gmra.mxu3 %v7773_v10  ;;  %v4719_v22 = vunpack.c.l.b16 %v4651_v38  ;;  %v4475_v28 = vshll.u32 %v4354_v9, 16  ;;  %v4849_v33 = vrot.slane %v7711_v13, 1  ;;  %v4612_v32 = vld [vmem:[#allocation3 + $0x54] sm:$0xf]  ;;  %v7768_v53 = vld [vmem:[%s10566_s5 + $0x170] sm:$0xff]  ;;  %v3577_v10 = vpop.f32.mrf.mxu0 }
 0x435   : > { %v4234_v20 = vadd.f32 %v4206_v59, %v3658_v1  ;;  %v4791_v3 = vshrl.u32 %v7711_v13, 16  ;;  %v4795_v47 = vrot.slane %v4793_v24, 1  ;;  %v423_v13 = vsel %vm9735_vm2, 0, %v422_v43  ;;  %5733 = vmatpush.bf16.msra.mxu2 %v7768_v53 }
 0x436   : > { %v4474_v41 = vrot.slane %v4472_v29, 7  ;;  %v4727_v8 = vpack.c.b16 %v4719_v22, %v4719_v22  ;;  %424 = vst [vmem:[#allocation3 + $0x6c] sm:$0x1] %v423_v13  ;;  %v3635_v59 = vadd.f32 %v3634_v54, %v3575_v17  ;;  %v3022_v17 = vadd.f32 %v10210_v61, %v9514_v26 }
 0x437   : > { %v4254_v39 = vmax.f32 %v4234_v20, 0.0  ;;  %v4796_v51 = vor.u32 %v4795_v47, %v4791_v3 }
 0x438   : > { %v4477_v63 = vor.u32 %v4475_v28, %v4474_v41  ;;  %v4479_v31 = vrot.slane %v4474_v41, 4  ;;  %v4850_v16 = vrot.slane %v4727_v8, 1  ;;  %v4798_v37 = vshll.u32 %v4727_v8, 16 }
 0x439   : > { %v4335_v14 = vsel %vm10172_vm9, %v4254_v39, 0.0  ;;  %v453_v39 = vld [vmem:[#allocation3 + $0x74] sm:$0x1]  ;;  %5734 = vmatpush.bf16.msra.mxu2 %v7767_v44 }
 0x43a   : > { %v4478_v62 = vsel %vm8724_vm4, %v4470_v27, %v4477_v63  ;;  %v4610_v50 = vsel %vm9735_vm2, %v4479_v31, %v4609_v55  ;;  %v4355_v19 = vpack.c.bf16 %v4335_v14, %v4335_v14  ;;  %v4207_v4 = vpop.f32.mrf.mxu3  ;;  %v4851_v11 = vsel %vm758_vm1, %v4849_v33, %v4850_v16  ;;  %v4153_v47 = vpop.f32.mrf.mxu2 }
 0x43b   : > { %4608 = vst [vmem:[#allocation3 + $0x4c] sm:$0xf] %v4478_v62  ;;  %v4208_v58 = vadd.f32 %v4207_v4, %v4148_v57  ;;  %5192 = vmatmul.bf16.gmra.mxu2 %v4851_v11  ;;  %v4800_v7 = vrot.slane %v4798_v37, 1  ;;  %v3636_v34 = vpop.f32.mrf.mxu1  ;;  %v3660_v27 = vadd.f32 %v3635_v59, %v9751_v18  ;;  %v3081_v33 = vadd.f32 %v9761_v49, %v3022_v17 }
 0x43c   : > { %4611 = vst [vmem:[#allocation3 + $0x50] sm:$0x1] %v4610_v50  ;;  %v4481_v30 = vshrl.u32 %v4355_v19, 16  ;;  %v4484_v42 = vshll.u32 %v4355_v19, 16  ;;  %v454_v18 = vsel %vm9772_vm3, 0, %v453_v39  ;;  %v3580_v48 = vpop.f32.mrf.mxu0 }
 0x43d   : > { %v4235_v12 = vadd.f32 %v4208_v58, %v3659_v21  ;;  %v4801_v46 = vsel %vm589_vm0, %v4796_v51, %v4800_v7  ;;  %455 = vst [vmem:[#allocation3 + $0x74] sm:$0x1] %v454_v18  ;;  %v7766_v21 = vld [vmem:[%s10566_s5 + $0x160] sm:$0xff]  ;;  %v3637_v58 = vadd.f32 %v3636_v34, %v3577_v10  ;;  %v4619_v34 = vld [vmem:[#allocation3 + $0x60] sm:$0xf] }
 0x43e   : > { %v10194_v56 = vrot.slane %v4481_v30, 7  ;;  %5143 = vmatmul.bf16.gmra.mxu1 %v4801_v46  ;;  %5735 = vmatpush.bf16.msra.mxu2 %v7766_v21  ;;  %v7754_v10 = vld [vmem:[%s10566_s5 + $0x100] sm:$0xff] }
 0x43f   : > { %v4255_v9 = vmax.f32 %v4235_v12, 0.0  ;;  %5690 = vmatpush.bf16.msrb.mxu1 %v7754_v10 }
 0x440   : > { %v4486_v1 = vor.u32 %v4484_v42, %v10194_v56  ;;  %v4487_v54 = vrot.slane %v10194_v56, 4  ;;  %v3661_v56 = vadd.f32 %v3637_v58, %v3081_v33 }
 0x441   : > { %v4336_v38 = vsel %vm10172_vm9, %v4255_v9, 0.0  ;;  %v7765_v9 = vld [vmem:[%s10566_s5 + $0x158] sm:$0xff] }
 0x442   : > { %v4613_v57 = vsel %vm8252_vm5, %v4486_v1, %v4612_v32  ;;  %v4356_v29 = vpack.c.bf16 %v4336_v38, %v4336_v38  ;;  %v4210_v22 = vpop.f32.mrf.mxu3  ;;  %v7712_v20 = vld [vmem:[#allocation3 + $0x48] sm:$0xff]  ;;  %v7746_v32 = vld [vmem:[%s10566_s5 + $0xc0] sm:$0xff]  ;;  %5736 = vmatpush.bf16.msra.mxu2 %v7765_v9 }
 0x443   : > { %v7774_v24 = vld [vmem:[#allocation3 + $0x48] sm:$0xff]  ;;  %4614 = vst [vmem:[#allocation3 + $0x54] sm:$0xf] %v4613_v57  ;;  %v4211_v41 = vadd.f32 %v4210_v22, %v4151_v5  ;;  %v4654_v28 = vld [vmem:[#allocation3 + $0x50] sm:$0x1]  ;;  %5099 = vmatmul.bf16.gmra.mxu0 %v7712_v20  ;;  %v4805_v26 = vshll.u32 %v7712_v20, 16  ;;  %v3639_v30 = vpop.f32.mrf.mxu1 }
 0x444   : > { %v4489_v8 = vshrl.u32 %v4356_v29, 16  ;;  %6251 = vmatmul.bf16.gmra.mxu3 %v7774_v24  ;;  %v4720_v55 = vunpack.c.l.b16 %v4654_v28  ;;  %v4492_v31 = vshll.u32 %v4356_v29, 16  ;;  %v4852_v14 = vrot.slane %v7712_v20, 1  ;;  %5641 = vmatpush.bf16.msrb.mxu0 %v7746_v32  ;;  %v7793_v22 = vld [vmem:[%s10566_s5 + $0x1f8] sm:$0xff]  ;;  %v4156_v24 = vpop.f32.mrf.mxu2  ;;  %v4630_v52 = vld [vmem:[#allocation3 + $0x74] sm:$0x1] }
 0x445   : > { %v4236_v3 = vadd.f32 %v4211_v41, %v3660_v27  ;;  %v4803_v51 = vshrl.u32 %v7712_v20, 16  ;;  %v4807_v62 = vrot.slane %v4805_v26, 1  ;;  %v3640_v38 = vadd.f32 %v3639_v30, %v3580_v48  ;;  %v7801_v20 = vld [vmem:[%s10566_s5 + $0x238] sm:$0xff]  ;;  %v3582_v41 = vpop.f32.mrf.mxu0 }
 0x446   : > { %v4491_v63 = vrot.slane %v4489_v8, 7  ;;  %v4728_v37 = vpack.c.b16 %v4720_v55, %v4720_v55  ;;  %v4270_v29 = vadd.s32 9, %v9816_v45  ;;  %v7764_v45 = vld [vmem:[%s10566_s5 + $0x150] sm:$0xff]  ;;  %6321 = vmatpush.bf16.msra.mxu1 %v7801_v20 }
 0x447   : > { %v4256_v49 = vmax.f32 %v4236_v3, 0.0  ;;  %v4808_v5 = vor.u32 %v4807_v62, %v4803_v51  ;;  %v3662_v33 = vadd.f32 %v3640_v38, %v9778_v0  ;;  %5737 = vmatpush.bf16.msra.mxu2 %v7764_v45  ;;  %v7763_v0 = vld [vmem:[%s10566_s5 + $0x148] sm:$0xff] }
 0x448   : > { %v4494_v50 = vor.u32 %v4492_v31, %v4491_v63  ;;  %v4496_v19 = vrot.slane %v4491_v63, 4  ;;  %v4853_v4 = vrot.slane %v4728_v37, 1  ;;  %v4810_v11 = vshll.u32 %v4728_v37, 16  ;;  %6272 = vmatpush.bf16.msra.mxu0 %v7793_v22 }
 0x449   : > { %v4337_v7 = vsel %vm10224_vm10, %v4256_v49, 0.0  ;;  %vm4280_vm3 = vcmp.ge.s32.totalorder %v4270_v29, 0  ;;  %vm4290_vm7 = vcmp.lt.s32.totalorder %v4270_v29, 16  ;;  %v3027_v63 = vadd.f32 %v10210_v61, %v9543_v35  ;;  %v4623_v35 = vld [vmem:[#allocation3 + $0x68] sm:$0x1] }
 0x44a   : > { %v4495_v6 = vsel %vm8724_vm4, %v4487_v54, %v4494_v50  ;;  %v4617_v60 = vsel %vm9735_vm2, %v4496_v19, %v4616_v36  ;;  %v4357_v12 = vpack.c.bf16 %v4337_v7, %v4337_v7  ;;  %v4212_v46 = vpop.f32.mrf.mxu3  ;;  %v4854_v23 = vsel %vm758_vm1, %v4852_v14, %v4853_v4  ;;  %vm10277_vm8 = vmand %vm4280_vm3, %vm4290_vm7  ;;  %v4626_v29 = vld [vmem:[#allocation3 + $0x6c] sm:$0xf] }
 0x44b   : > { %4615 = vst [vmem:[#allocation3 + $0x58] sm:$0xf] %v4495_v6  ;;  %v4213_v42 = vadd.f32 %v4212_v46, %v4153_v47  ;;  %5197 = vmatmul.bf16.gmra.mxu2 %v4854_v23  ;;  %v4812_v15 = vrot.slane %v4810_v11, 1  ;;  %v3641_v18 = vpop.f32.mrf.mxu1  ;;  %v3086_v7 = vadd.f32 %v9797_v2, %v3027_v63  ;;  %v7762_v6 = vld [vmem:[%s10566_s5 + $0x140] sm:$0xff] }
 0x44c   : > { %4618 = vst [vmem:[#allocation3 + $0x5c] sm:$0x1] %v4617_v60  ;;  %v4498_v43 = vshrl.u32 %v4357_v12, 16  ;;  %v4501_v59 = vshll.u32 %v4357_v12, 16  ;;  %v3642_v31 = vadd.f32 %v3641_v18, %v3582_v41  ;;  %5738 = vmatpush.bf16.msra.mxu2 %v7763_v0  ;;  %v4158_v60 = vpop.f32.mrf.mxu2  ;;  %v10309_v18 = vld [vmem:[%s10567_s6] ss:$0 sm:$0xff] }
 0x44d   : > { %v4237_v53 = vadd.f32 %v4213_v42, %v3661_v56  ;;  %v4813_v13 = vsel %vm589_vm0, %v4808_v5, %v4812_v15  ;;  %v5211_v42 = vld [vmem:[#allocation3 + $0x14] sm:$0x1] }
 0x44e   : > { %v10248_v1 = vrot.slane %v4498_v43, 7  ;;  %5148 = vmatmul.bf16.gmra.mxu1 %v4813_v13  ;;  %v3663_v15 = vadd.f32 %v3642_v31, %v3086_v7 }
 0x44f   : > { %v4257_v57 = vmax.f32 %v4237_v53, 0.0  ;;  %v7792_v53 = vld [vmem:[%s10566_s5 + $0x1f0] sm:$0xff] }
 0x450   : > { %v4503_v17 = vor.u32 %v4501_v59, %v10248_v1  ;;  %v4504_v36 = vrot.slane %v10248_v1, 4  ;;  %v7738_v1 = vld [vmem:[#allocation3 + $0xc] sm:$0xff]  ;;  %5739 = vmatpush.bf16.msra.mxu2 %v7762_v6  ;;  %v5289_v59 = vunpack.c.l.b16 %v5211_v42  ;;  %6273 = vmatpush.bf16.msra.mxu0 %v7792_v53 }
 0x451   : > { %v4338_v27 = vsel %vm10224_vm10, %v4257_v57, 0.0  ;;  %v7800_v57 = vld [vmem:[%s10566_s5 + $0x230] sm:$0xff]  ;;  %v5308_v45 = vshll.u32 %v7738_v1, 16 }
 0x452   : > { %v4620_v28 = vsel %vm8252_vm5, %v4503_v17, %v4619_v34  ;;  %v4358_v44 = vpack.c.bf16 %v4338_v27, %v4338_v27  ;;  %v4215_v8 = vpop.f32.mrf.mxu3  ;;  %v7713_v55 = vld [vmem:[#allocation3 + $0x54] sm:$0xff]  ;;  %6322 = vmatpush.bf16.msra.mxu1 %v7800_v57  ;;  %v5297_v27 = vpack.c.b16 %v5289_v59, %v5289_v59  ;;  %v5217_v59 = vld [vmem:[#allocation3 + $0x2c] sm:$0x1] }
 0x453   : > { %v10265_v39 = vld [vmem:[#allocation3 + $0x54] sm:$0xff]  ;;  %4621 = vst [vmem:[#allocation3 + $0x60] sm:$0xf] %v4620_v28  ;;  %v4216_v3 = vadd.f32 %v4215_v8, %v4156_v24  ;;  %v4657_v26 = vld [vmem:[#allocation3 + $0x5c] sm:$0x1]  ;;  %5104 = vmatmul.bf16.gmra.mxu0 %v7713_v55  ;;  %v4817_v37 = vshll.u32 %v7713_v55, 16 }
 0x454   : > { %v4506_v47 = vshrl.u32 %v4358_v44, 16  ;;  %6256 = vmatmul.bf16.gmra.mxu3 %v10265_v39  ;;  %v4721_v54 = vunpack.c.l.b16 %v4657_v26  ;;  %v4509_v14 = vshll.u32 %v4358_v44, 16  ;;  %v4855_v48 = vrot.slane %v7713_v55, 1  ;;  %v7790_v57 = vld [vmem:[%s10566_s5 + $0x1e0] sm:$0xff] }
 0x455   : > { %v4238_v16 = vadd.f32 %v4216_v3, %v3662_v33  ;;  %v4815_v50 = vshrl.u32 %v7713_v55, 16  ;;  %v4819_v19 = vrot.slane %v4817_v37, 1  ;;  %v5310_v55 = vrot.slane %v5308_v45, 1 }
 0x456   : > { %v4508_v49 = vrot.slane %v4506_v47, 7  ;;  %v4729_v62 = vpack.c.b16 %v4721_v54, %v4721_v54  ;;  %v5313_v33 = vshll.u32 %v5297_v27, 16  ;;  %v5410_v47 = vrot.slane %v5297_v27, 1 }
 0x457   : > { %v4258_v61 = vmax.f32 %v4238_v16, 0.0  ;;  %v4820_v30 = vor.u32 %v4819_v19, %v4815_v50  ;;  %v5306_v54 = vshrl.u32 %v7738_v1, 16  ;;  %v5409_v37 = vrot.slane %v7738_v1, 1  ;;  %v7791_v19 = vld [vmem:[%s10566_s5 + $0x1e8] sm:$0xff] }
 0x458   : > { %v4511_v4 = vor.u32 %v4509_v14, %v4508_v49  ;;  %v4513_v11 = vrot.slane %v4508_v49, 4  ;;  %v4856_v21 = vrot.slane %v4729_v62, 1  ;;  %v4822_v58 = vshll.u32 %v4729_v62, 16  ;;  %6274 = vmatpush.bf16.msra.mxu0 %v7791_v19 }
 0x459   : > { %v4339_v5 = vsel %vm10277_vm8, %v4258_v61, 0.0  ;;  %v5315_v49 = vrot.slane %v5313_v33, 1  ;;  %v5214_v61 = vld [vmem:[#allocation3 + $0x20] sm:$0x1] }
 0x45a   : > { %v4512_v12 = vsel %vm8724_vm4, %v4504_v36, %v4511_v4  ;;  %v4624_v46 = vsel %vm9735_vm2, %v4513_v11, %v4623_v35  ;;  %v4359_v23 = vpack.c.bf16 %v4339_v5, %v4339_v5  ;;  %v4217_v56 = vpop.f32.mrf.mxu3  ;;  %v4857_v2 = vsel %vm758_vm1, %v4855_v48, %v4856_v21  ;;  %v7739_v4 = vld [vmem:[#allocation3 + $0x18] sm:$0xff] }
 0x45b   : > { %4622 = vst [vmem:[#allocation3 + $0x64] sm:$0xf] %v4512_v12  ;;  %v4218_v43 = vadd.f32 %v4217_v56, %v4158_v60  ;;  %5202 = vmatmul.bf16.gmra.mxu2 %v4857_v2  ;;  %v4824_v32 = vrot.slane %v4822_v58, 1  ;;  %v5311_v36 = vor.u32 %v5310_v55, %v5306_v54  ;;  %v5411_v35 = vsel %vm758_vm1, %v5409_v37, %v5410_v47  ;;  %v7799_v21 = vld [vmem:[%s10566_s5 + $0x228] sm:$0xff] }
 0x45c   : > { %4625 = vst [vmem:[#allocation3 + $0x68] sm:$0x1] %v4624_v46  ;;  %v4515_v9 = vshrl.u32 %v4359_v23, 16  ;;  %v4518_v34 = vshll.u32 %v4359_v23, 16  ;;  %v5290_v11 = vunpack.c.l.b16 %v5214_v61  ;;  %6323 = vmatpush.bf16.msra.mxu1 %v7799_v21  ;;  %6275 = vmatpush.bf16.msra.mxu0 %v7790_v57  ;;  %v7742_v57 = vld [vmem:[#allocation3 + $0x3c] sm:$0xff] }
 0x45d   : > { %v4239_v13 = vadd.f32 %v4218_v43, %v3663_v15  ;;  %v4825_v10 = vsel %vm589_vm0, %v4820_v30, %v4824_v32  ;;  %v5316_v40 = vsel %vm589_vm0, %v5311_v36, %v5315_v49  ;;  %v5320_v30 = vshll.u32 %v7739_v4, 16 }
 0x45e   : > { %v4517_v38 = vrot.slane %v4515_v9, 7  ;;  %5153 = vmatmul.bf16.gmra.mxu1 %v4825_v10  ;;  %v5298_v5 = vpack.c.b16 %v5290_v11, %v5290_v11  ;;  %v5318_v43 = vshrl.u32 %v7739_v4, 16  ;;  %v5412_v32 = vrot.slane %v7739_v4, 1 }
 0x45f   : > { %v4259_v22 = vmax.f32 %v4239_v13, 0.0  ;;  %v5322_v23 = vrot.slane %v5320_v30, 1 }
 0x460   : > { %v4520_v20 = vor.u32 %v4518_v34, %v4517_v38  ;;  %v5070_v17 = vpop.f32.mrf.mxu0  ;;  %v4521_v63 = vrot.slane %v4517_v38, 4  ;;  %v5325_v56 = vshll.u32 %v5298_v5, 16  ;;  %v5413_v42 = vrot.slane %v5298_v5, 1 }
 0x461   : > { %v4340_v24 = vsel %vm10277_vm8, %v4259_v22, 0.0  ;;  %v5071_v62 = vadd.f32 %v10309_v18, %v5070_v17  ;;  %v5323_v53 = vor.u32 %v5322_v23, %v5318_v43  ;;  %v7740_v22 = vld [vmem:[#allocation3 + $0x24] sm:$0xff]  ;;  %v7798_v17 = vld [vmem:[%s10566_s5 + $0x220] sm:$0xff] }
 0x462   : > { %v4627_v41 = vsel %vm8252_vm5, %v4520_v20, %v4626_v29  ;;  %v4360_v28 = vpack.c.bf16 %v4340_v24, %v4340_v24  ;;  %v10303_v44 = vld [vmem:[#allocation3 + $0x60] sm:$0xff]  ;;  %v5327_v13 = vrot.slane %v5325_v56, 1  ;;  %v5291_v20 = vunpack.c.l.b16 %v5217_v59  ;;  %6324 = vmatpush.bf16.msra.mxu1 %v7798_v17 }
 0x463   : > { %4628 = vst [vmem:[#allocation3 + $0x6c] sm:$0xf] %v4627_v41  ;;  %5642 = vmatmul.bf16.vlgmr.msrb.gmra.mxu0 %v7738_v1  ;;  %v5414_v1 = vsel %vm758_vm1, %v5412_v32, %v5413_v42 }
 0x464   : > { %v4523_v8 = vshrl.u32 %v4360_v28, 16  ;;  %6261 = vmatmul.bf16.gmra.mxu3 %v10303_v44  ;;  %v4526_v26 = vshll.u32 %v4360_v28, 16  ;;  %v5328_v29 = vsel %vm589_vm0, %v5323_v53, %v5327_v13  ;;  %v5299_v41 = vpack.c.b16 %v5291_v20, %v5291_v20  ;;  %v7796_v20 = vld [vmem:[%s10566_s5 + $0x210] sm:$0xff] }
 0x465   : > { %v5332_v28 = vshll.u32 %v7740_v22, 16 }
 0x466   : > { %v4525_v3 = vrot.slane %v4523_v8, 7 }
 0x468   : > { %v4528_v31 = vor.u32 %v4526_v26, %v4525_v3  ;;  %v4530_v16 = vrot.slane %v4525_v3, 4  ;;  %v5072_v0 = vpop.f32.mrf.mxu0  ;;  %v5334_v3 = vrot.slane %v5332_v28, 1  ;;  %v5337_v26 = vshll.u32 %v5299_v41, 16 }
 0x469   : > { %v5073_v6 = vadd.f32 %v10309_v18, %v5072_v0 }
 0x46a   : > { %v4529_v14 = vsel %vm8724_vm4, %v4521_v63, %v4528_v31  ;;  %v4631_v51 = vsel %vm9735_vm2, %v4530_v16, %v4630_v52  ;;  %v5416_v52 = vrot.slane %v5299_v41, 1  ;;  %v5330_v63 = vshrl.u32 %v7740_v22, 16 }
 0x46b   : > { %4629 = vst [vmem:[#allocation3 + $0x70] sm:$0xf] %v4529_v14  ;;  %v5119_v48 = vpop.f32.mrf.mxu1  ;;  %5740 = vmatmul.bf16.vlgmr.msra.gmra.mxu2 %v5411_v35  ;;  %v5415_v31 = vrot.slane %v7740_v22, 1  ;;  %v5339_v0 = vrot.slane %v5337_v26, 1  ;;  %v5220_v14 = vld [vmem:[#allocation3 + $0x38] sm:$0x1] }
 0x46c   : > { %4632 = vst [vmem:[#allocation3 + $0x74] sm:$0x1] %v4631_v51  ;;  %v5120_v50 = vadd.f32 %v5119_v48, %v5071_v62  ;;  %v5335_v37 = vor.u32 %v5334_v3, %v5330_v63  ;;  %v7789_v35 = vld [vmem:[%s10566_s5 + $0x1d8] sm:$0xff]  ;;  %v7741_v48 = vld [vmem:[#allocation3 + $0x30] sm:$0xff]  ;;  %v5356_v41 = vshll.u32 %v7742_v57, 16  ;;  %v5354_v63 = vshrl.u32 %v7742_v57, 16 }
 0x46d   : > { %v5417_v49 = vsel %vm758_vm1, %v5415_v31, %v5416_v52  ;;  %6276 = vmatpush.bf16.msra.mxu0 %v7789_v35  ;;  %v5344_v21 = vshll.u32 %v7741_v48, 16  ;;  %v5418_v42 = vrot.slane %v7741_v48, 1  ;;  %v5421_v31 = vrot.slane %v7742_v57, 1  ;;  %v7787_v35 = vld [vmem:[%s10566_s5 + $0x1c8] sm:$0xff] }
 0x46e   : > { %5691 = vmatmul.bf16.vlgmr.msrb.gmra.mxu1 %v5316_v40  ;;  %v5168_v25 = vpop.f32.mrf.mxu2  ;;  %v5340_v61 = vsel %vm589_vm0, %v5335_v37, %v5339_v0  ;;  %v7797_v40 = vld [vmem:[%s10566_s5 + $0x218] sm:$0xff] }
 0x46f   : > { %v10324_v58 = vadd.f32 %v5168_v25, %v5120_v50  ;;  %v5292_v50 = vunpack.c.l.b16 %v5220_v14  ;;  %6325 = vmatpush.bf16.msra.mxu1 %v7797_v40  ;;  %v5226_v14 = vld [vmem:[#allocation3 + $0x50] sm:$0x1]  ;;  %v7795_v40 = vld [vmem:[%s10566_s5 + $0x208] sm:$0xff] }
 0x470   : > { %v5075_v7 = vpop.f32.mrf.mxu0 }
 0x471   : > { %v5076_v10 = vadd.f32 %v10309_v18, %v5075_v7  ;;  %v5300_v25 = vpack.c.b16 %v5292_v50, %v5292_v50  ;;  %v5294_v50 = vunpack.c.l.b16 %v5226_v14 }
 0x472   : > { %v10327_v60 = vld [vmem:[#allocation3 + $0x6c] sm:$0xff] }
 0x473   : > { %v5121_v12 = vpop.f32.mrf.mxu1  ;;  %5647 = vmatmul.bf16.gmra.mxu0 %v7739_v4  ;;  %v5419_v23 = vrot.slane %v5300_v25, 1  ;;  %6326 = vmatpush.bf16.msra.mxu1 %v7796_v20 }
 0x474   : > { %v5122_v46 = vadd.f32 %v5121_v12, %v5073_v6  ;;  %6266 = vmatmul.bf16.gmra.mxu3 %v10327_v60  ;;  %v5346_v6 = vrot.slane %v5344_v21, 1  ;;  %v5349_v12 = vshll.u32 %v5300_v25, 16  ;;  %v5302_v21 = vpack.c.b16 %v5294_v50, %v5294_v50 }
 0x475   : > { %v5420_v13 = vsel %vm758_vm1, %v5418_v42, %v5419_v23 }
 0x476   : > { %v5170_v2 = vpop.f32.mrf.mxu2 }
 0x477   : > { %v10330_v15 = vadd.f32 %v5170_v2, %v5122_v46  ;;  %v5342_v2 = vshrl.u32 %v7741_v48, 16  ;;  %6327 = vmatpush.bf16.msra.mxu1 %v7795_v40  ;;  %v7745_v40 = vld [vmem:[#allocation3 + $0x60] sm:$0xff] }
 0x478   : > { %v5077_v9 = vpop.f32.mrf.mxu0 }
 0x479   : > { %v5078_v8 = vadd.f32 %v10309_v18, %v5077_v9  ;;  %v5347_v32 = vor.u32 %v5346_v6, %v5342_v2  ;;  %v5351_v9 = vrot.slane %v5349_v12, 1  ;;  %v5425_v2 = vrot.slane %v5302_v21, 1 }
 0x47b   : > { %v5124_v38 = vpop.f32.mrf.mxu1  ;;  %5745 = vmatmul.bf16.gmra.mxu2 %v5414_v1 }
 0x47c   : > { %v5125_v34 = vadd.f32 %v5124_v38, %v5076_v10  ;;  %v5223_v10 = vld [vmem:[#allocation3 + $0x44] sm:$0x1] }
 0x47d   : > { %v7788_v38 = vld [vmem:[%s10566_s5 + $0x1d0] sm:$0xff] }
 0x47e   : > { %5696 = vmatmul.bf16.gmra.mxu1 %v5328_v29  ;;  %v5173_v24 = vpop.f32.mrf.mxu2  ;;  %v5293_v29 = vunpack.c.l.b16 %v5223_v10  ;;  %6277 = vmatpush.bf16.msra.mxu0 %v7788_v38 }
 0x47f   : > { %v10341_v27 = vadd.f32 %v5173_v24, %v5125_v34  ;;  %v5352_v34 = vsel %vm589_vm0, %v5347_v32, %v5351_v9 }
 0x480   : > { %v5080_v45 = vpop.f32.mrf.mxu0 }
 0x481   : > { %v5081_v36 = vadd.f32 %v10309_v18, %v5080_v45  ;;  %v5301_v45 = vpack.c.b16 %v5293_v29, %v5293_v29 }
 0x482   : > { %6278 = vmatpush.bf16.msra.mxu0 %v7787_v35 }
 0x483   : > { %v5126_v55 = vpop.f32.mrf.mxu1  ;;  %5652 = vmatmul.bf16.gmra.mxu0 %v7740_v22  ;;  %v5361_v3 = vshll.u32 %v5301_v45, 16 }
 0x484   : > { %v5127_v33 = vadd.f32 %v5126_v55, %v5078_v8 }
 0x485   : > { %v5363_v0 = vrot.slane %v5361_v3, 1 }
 0x486   : > { %v5175_v47 = vpop.f32.mrf.mxu2 }
 0x487   : > { %v10344_v54 = vadd.f32 %v5175_v47, %v5127_v33  ;;  %v5358_v33 = vrot.slane %v5356_v41, 1  ;;  %v5422_v47 = vrot.slane %v5301_v45, 1  ;;  %v7794_v45 = vld [vmem:[%s10566_s5 + $0x200] sm:$0xff] }
 0x488   : > { %v5082_v16 = vpop.f32.mrf.mxu0  ;;  %6328 = vmatpush.bf16.msra.mxu1 %v7794_v45 }
 0x489   : > { %v5083_v7 = vadd.f32 %v10309_v18, %v5082_v16  ;;  %v5359_v37 = vor.u32 %v5358_v33, %v5354_v63 }
 0x48b   : > { %v5129_v51 = vpop.f32.mrf.mxu1  ;;  %5750 = vmatmul.bf16.gmra.mxu2 %v5417_v49  ;;  %v5423_v49 = vsel %vm758_vm1, %v5421_v31, %v5422_v47 }
 0x48c   : > { %v5130_v62 = vadd.f32 %v5129_v51, %v5081_v36 }
 0x48e   : > { %5701 = vmatmul.bf16.gmra.mxu1 %v5340_v61  ;;  %v5178_v19 = vpop.f32.mrf.mxu2  ;;  %v5364_v61 = vsel %vm589_vm0, %v5359_v37, %v5363_v0 }
 0x48f   : > { %v10355_v4 = vadd.f32 %v5178_v19, %v5130_v62 }
 0x490   : > { %v5085_v11 = vpop.f32.mrf.mxu0 }
 0x491   : > { %v5086_v53 = vadd.f32 %v10309_v18, %v5085_v11 }
 0x493   : > { %v5131_v5 = vpop.f32.mrf.mxu1  ;;  %5657 = vmatmul.bf16.gmra.mxu0 %v7741_v48  ;;  %v7743_v48 = vld [vmem:[#allocation3 + $0x48] sm:$0xff] }
 0x494   : > { %v5132_v30 = vadd.f32 %v5131_v5, %v5083_v7  ;;  %v5368_v7 = vshll.u32 %v7743_v48, 16  ;;  %v5424_v32 = vrot.slane %v7743_v48, 1 }
 0x496   : > { %v5180_v46 = vpop.f32.mrf.mxu2  ;;  %v5370_v12 = vrot.slane %v5368_v7, 1 }
 0x497   : > { %v10358_v56 = vadd.f32 %v5180_v46, %v5132_v30  ;;  %v5373_v46 = vshll.u32 %v5302_v21, 16 }
 0x498   : > { %v5087_v43 = vpop.f32.mrf.mxu0 }
 0x499   : > { %v5088_v28 = vadd.f32 %v10309_v18, %v5087_v43  ;;  %v5366_v43 = vshrl.u32 %v7743_v48, 16 }
 0x49b   : > { %v5134_v1 = vpop.f32.mrf.mxu1  ;;  %5755 = vmatmul.bf16.gmra.mxu2 %v5420_v13  ;;  %v5375_v13 = vrot.slane %v5373_v46, 1 }
 0x49c   : > { %v5135_v59 = vadd.f32 %v5134_v1, %v5086_v53  ;;  %v5371_v53 = vor.u32 %v5370_v12, %v5366_v43  ;;  %v5426_v1 = vsel %vm758_vm1, %v5424_v32, %v5425_v2  ;;  %v5392_v12 = vshll.u32 %v7745_v40, 16 }
 0x49e   : > { %5706 = vmatmul.bf16.gmra.mxu1 %v5352_v34  ;;  %v5183_v22 = vpop.f32.mrf.mxu2  ;;  %v5376_v29 = vsel %vm589_vm0, %v5371_v53, %v5375_v13  ;;  %v5394_v32 = vrot.slane %v5392_v12, 1 }
 0x49f   : > { %v10369_v24 = vadd.f32 %v5183_v22, %v5135_v59  ;;  %v5229_v59 = vld [vmem:[#allocation3 + $0x5c] sm:$0x1]  ;;  %v7744_v22 = vld [vmem:[#allocation3 + $0x54] sm:$0xff] }
 0x4a0   : > { %v5090_v17 = vpop.f32.mrf.mxu0  ;;  %v5295_v20 = vunpack.c.l.b16 %v5229_v59  ;;  %v5378_v0 = vshrl.u32 %v7744_v22, 16 }
 0x4a1   : > { %v5091_v36 = vadd.f32 %v10309_v18, %v5090_v17 }
 0x4a3   : > { %v5136_v8 = vpop.f32.mrf.mxu1  ;;  %5662 = vmatmul.bf16.gmra.mxu0 %v7742_v57  ;;  %v7786_v57 = vld [vmem:[%s10566_s5 + $0x1c0] sm:$0xff] }
 0x4a4   : > { %v5137_v55 = vadd.f32 %v5136_v8, %v5088_v28  ;;  %6279 = vmatpush.bf16.msra.mxu0 %v7786_v57  ;;  %v5303_v8 = vpack.c.b16 %v5295_v20, %v5295_v20  ;;  %v5430_v57 = vrot.slane %v7745_v40, 1 }
 0x4a6   : > { %v5185_v26 = vpop.f32.mrf.mxu2  ;;  %v5385_v63 = vshll.u32 %v5303_v8, 16 }
 0x4a7   : > { %v10372_v52 = vadd.f32 %v5185_v26, %v5137_v55  ;;  %v5380_v55 = vshll.u32 %v7744_v22, 16 }
 0x4a8   : > { %v5092_v16 = vpop.f32.mrf.mxu0 }
 0x4a9   : > { %v5093_v5 = vadd.f32 %v10309_v18, %v5092_v16  ;;  %v5382_v47 = vrot.slane %v5380_v55, 1  ;;  %v5428_v16 = vrot.slane %v5303_v8, 1 }
 0x4ab   : > { %v5139_v51 = vpop.f32.mrf.mxu1  ;;  %5760 = vmatmul.bf16.gmra.mxu2 %v5423_v49  ;;  %v5383_v14 = vor.u32 %v5382_v47, %v5378_v0  ;;  %v5803_v0 = vld [vmem:[#allocation3 + $0x2c] sm:$0x1] }
 0x4ac   : > { %v5140_v62 = vadd.f32 %v5139_v51, %v5091_v36  ;;  %v5427_v36 = vrot.slane %v7744_v22, 1  ;;  %v5387_v51 = vrot.slane %v5385_v63, 1 }
 0x4ae   : > { %5711 = vmatmul.bf16.gmra.mxu1 %v5364_v61  ;;  %v5188_v19 = vpop.f32.mrf.mxu2  ;;  %v5429_v35 = vsel %vm758_vm1, %v5427_v36, %v5428_v16  ;;  %v5232_v61 = vld [vmem:[#allocation3 + $0x68] sm:$0x1] }
 0x4af   : > { %v10383_v11 = vadd.f32 %v5188_v19, %v5140_v62  ;;  %v5388_v19 = vsel %vm589_vm0, %v5383_v14, %v5387_v51 }
 0x4b0   : > { %v5095_v25 = vpop.f32.mrf.mxu0 }
 0x4b1   : > { %v5096_v10 = vadd.f32 %v10309_v18, %v5095_v25  ;;  %v5296_v25 = vunpack.c.l.b16 %v5232_v61 }
 0x4b3   : > { %v5141_v30 = vpop.f32.mrf.mxu1  ;;  %5667 = vmatmul.bf16.gmra.mxu0 %v7743_v48 }
 0x4b4   : > { %v5142_v6 = vadd.f32 %v5141_v30, %v5093_v5  ;;  %v5800_v5 = vld [vmem:[#allocation3 + $0x20] sm:$0x1] }
 0x4b5   : > { %v5878_v2 = vunpack.c.l.b16 %v5800_v5 }
 0x4b6   : > { %v5190_v23 = vpop.f32.mrf.mxu2 }
 0x4b7   : > { %v10386_v42 = vadd.f32 %v5190_v23, %v5142_v6  ;;  %v5304_v6 = vpack.c.b16 %v5296_v25, %v5296_v25  ;;  %v5886_v59 = vpack.c.b16 %v5878_v2, %v5878_v2 }
 0x4b8   : > { %v5097_v9 = vpop.f32.mrf.mxu0 }
 0x4b9   : > { %v5098_v33 = vadd.f32 %v10309_v18, %v5097_v9  ;;  %v5397_v9 = vshll.u32 %v5304_v6, 16  ;;  %v5431_v13 = vrot.slane %v5304_v6, 1  ;;  %v5902_v55 = vshll.u32 %v5886_v59, 16 }
 0x4bb   : > { %v5144_v38 = vpop.f32.mrf.mxu1  ;;  %5765 = vmatmul.bf16.gmra.mxu2 %v5426_v1  ;;  %v5390_v1 = vshrl.u32 %v7745_v40, 16  ;;  %v5399_v20 = vrot.slane %v5397_v9, 1  ;;  %v5432_v45 = vsel %vm758_vm1, %v5430_v57, %v5431_v13  ;;  %v5904_v16 = vrot.slane %v5902_v55, 1 }
 0x4bc   : > { %v5145_v34 = vadd.f32 %v5144_v38, %v5096_v10  ;;  %v7876_v38 = vld [vmem:[#allocation3 + $0x18] sm:$0xff] }
 0x4be   : > { %5716 = vmatmul.bf16.gmra.mxu1 %v5376_v29  ;;  %v5193_v17 = vpop.f32.mrf.mxu2 }
 0x4bf   : > { %v10397_v41 = vadd.f32 %v5193_v17, %v5145_v34  ;;  %v5897_v34 = vshll.u32 %v7876_v38, 16 }
 0x4c0   : > { %v5100_v28 = vpop.f32.mrf.mxu0 }
 0x4c1   : > { %v5101_v62 = vadd.f32 %v10309_v18, %v5100_v28  ;;  %v5899_v8 = vrot.slane %v5897_v34, 1 }
 0x4c3   : > { %v5146_v3 = vpop.f32.mrf.mxu1  ;;  %5672 = vmatmul.bf16.gmra.mxu0 %v7744_v22  ;;  %v5395_v22 = vor.u32 %v5394_v32, %v5390_v1 }
 0x4c4   : > { %v5147_v26 = vadd.f32 %v5146_v3, %v5098_v33 }
 0x4c5   : > { %v5400_v3 = vsel %vm589_vm0, %v5395_v22, %v5399_v20 }
 0x4c6   : > { %v5195_v31 = vpop.f32.mrf.mxu2 }
 0x4c7   : > { %v10400_v37 = vadd.f32 %v5195_v31, %v5147_v26  ;;  %v5895_v26 = vshrl.u32 %v7876_v38, 16 }
 0x4c8   : > { %v5102_v49 = vpop.f32.mrf.mxu0 }
 0x4c9   : > { %v5103_v46 = vadd.f32 %v10309_v18, %v5102_v49  ;;  %v5900_v31 = vor.u32 %v5899_v8, %v5895_v26 }
 0x4cb   : > { %v5149_v48 = vpop.f32.mrf.mxu1  ;;  %5770 = vmatmul.bf16.gmra.mxu2 %v5429_v35  ;;  %v5905_v51 = vsel %vm589_vm0, %v5900_v31, %v5904_v16 }
 0x4cc   : > { %v5150_v50 = vadd.f32 %v5149_v48, %v5101_v62  ;;  %v5879_v62 = vunpack.c.l.b16 %v5803_v0 }
 0x4ce   : > { %5721 = vmatmul.bf16.gmra.mxu1 %v5388_v19  ;;  %v5198_v21 = vpop.f32.mrf.mxu2  ;;  %v7877_v19 = vld [vmem:[#allocation3 + $0x24] sm:$0xff] }
 0x4cf   : > { %v10405_v7 = vadd.f32 %v5198_v21, %v5150_v50  ;;  %v5887_v50 = vpack.c.b16 %v5879_v62, %v5879_v62  ;;  %v5999_v21 = vrot.slane %v5886_v59, 1 }
 0x4d0   : > { %v5105_v30 = vpop.f32.mrf.mxu0 }
 0x4d1   : > { %v5106_v17 = vadd.f32 %v10309_v18, %v5105_v30  ;;  %v5998_v30 = vrot.slane %v7876_v38, 1  ;;  %v5914_v12 = vshll.u32 %v5887_v50, 16  ;;  %v6002_v55 = vrot.slane %v5887_v50, 1 }
 0x4d3   : > { %v5151_v23 = vpop.f32.mrf.mxu1  ;;  %5677 = vmatmul.bf16.gmra.mxu0 %v7745_v40  ;;  %v5909_v40 = vshll.u32 %v7877_v19, 16  ;;  %v5916_v9 = vrot.slane %v5914_v12, 1 }
 0x4d4   : > { %v5152_v43 = vadd.f32 %v5151_v23, %v5103_v46  ;;  %v5907_v23 = vshrl.u32 %v7877_v19, 16 }
 0x4d5   : > { %v5911_v6 = vrot.slane %v5909_v40, 1 }
 0x4d6   : > { %v5200_v53 = vpop.f32.mrf.mxu2 }
 0x4d7   : > { %v10408_v10 = vadd.f32 %v5200_v53, %v5152_v43  ;;  %v5912_v32 = vor.u32 %v5911_v6, %v5907_v23  ;;  %v5806_v53 = vld [vmem:[#allocation3 + $0x38] sm:$0x1] }
 0x4d8   : > { %v5107_v29 = vpop.f32.mrf.mxu0  ;;  %v5880_v38 = vunpack.c.l.b16 %v5806_v53 }
 0x4d9   : > { %v5108_v49 = vadd.f32 %v10309_v18, %v5107_v29  ;;  %v6000_v18 = vsel %vm758_vm1, %v5998_v30, %v5999_v21  ;;  %v5917_v59 = vsel %vm589_vm0, %v5912_v32, %v5916_v9 }
 0x4da   : > { %v5888_v20 = vpack.c.b16 %v5880_v38, %v5880_v38  ;;  %v5812_v38 = vld [vmem:[#allocation3 + $0x50] sm:$0x1] }
 0x4db   : > { %v5154_v28 = vpop.f32.mrf.mxu1  ;;  %5775 = vmatmul.bf16.gmra.mxu2 %v5432_v45 }
 0x4dc   : > { %v5155_v33 = vadd.f32 %v5154_v28, %v5106_v17  ;;  %v7878_v17 = vld [vmem:[#allocation3 + $0x30] sm:$0xff]  ;;  %v5926_v26 = vshll.u32 %v5888_v20, 16 }
 0x4dd   : > { %v5921_v45 = vshll.u32 %v7878_v17, 16  ;;  %v5919_v16 = vshrl.u32 %v7878_v17, 16 }
 0x4de   : > { %5726 = vmatmul.bf16.gmra.mxu1 %v5400_v3  ;;  %v5203_v47 = vpop.f32.mrf.mxu2 }
 0x4df   : > { %v10413_v63 = vadd.f32 %v5203_v47, %v5155_v33  ;;  %v5923_v3 = vrot.slane %v5921_v45, 1 }
 0x4e0   : > { %v5643_v36 = vpop.f32.mrf.mxu0 }
 0x4e3   : > { %v5156_v14 = vpop.f32.mrf.mxu1  ;;  %6280 = vmatmul.bf16.vlgmr.msra.gmra.mxu0 %v5905_v51  ;;  %v5809_v51 = vld [vmem:[#allocation3 + $0x44] sm:$0x1] }
 0x4e4   : > { %v5157_v35 = vadd.f32 %v5156_v14, %v5108_v49  ;;  %v5924_v49 = vor.u32 %v5923_v3, %v5919_v16  ;;  %v5928_v14 = vrot.slane %v5926_v26, 1  ;;  %v5881_v50 = vunpack.c.l.b16 %v5809_v51 }
 0x4e6   : > { %v5205_v61 = vpop.f32.mrf.mxu2  ;;  %v5889_v21 = vpack.c.b16 %v5881_v50, %v5881_v50  ;;  %v5815_v50 = vld [vmem:[#allocation3 + $0x5c] sm:$0x1] }
 0x4e7   : > { %v10417_v48 = vadd.f32 %v5205_v61, %v5157_v35  ;;  %v5929_v61 = vsel %vm589_vm0, %v5924_v49, %v5928_v14 }
 0x4e8   : > { %v5645_v25 = vpop.f32.mrf.mxu0 }
 0x4eb   : > { %v5692_v5 = vpop.f32.mrf.mxu1 }
 0x4ec   : > { %v5693_v46 = vadd.f32 %v5692_v5, %v5643_v36  ;;  %v7879_v5 = vld [vmem:[#allocation3 + $0x3c] sm:$0xff] }
 0x4ed   : > { %v5933_v30 = vshll.u32 %v7879_v5, 16  ;;  %v5931_v9 = vshrl.u32 %v7879_v5, 16 }
 0x4ee   : > { %6329 = vmatmul.bf16.vlgmr.msra.gmra.mxu1 %v6000_v18  ;;  %v5741_v2 = vpop.f32.mrf.mxu2 }
 0x4ef   : > { %v5742_v43 = vadd.f32 %v5741_v2, %v5693_v46  ;;  %v6005_v46 = vrot.slane %v5888_v20, 1  ;;  %v5935_v23 = vrot.slane %v5933_v30, 1  ;;  %v5938_v2 = vshll.u32 %v5889_v21, 16 }
 0x4f0   : > { %v5648_v1 = vpop.f32.mrf.mxu0  ;;  %v5882_v20 = vunpack.c.l.b16 %v5812_v38 }
 0x4f1   : > { %v10421_v13 = vadd.f32 %v5742_v43, %v10324_v58  ;;  %v6001_v58 = vrot.slane %v7877_v19, 1 }
 0x4f3   : > { %v5694_v34 = vpop.f32.mrf.mxu1  ;;  %6285 = vmatmul.bf16.gmra.mxu0 %v5917_v59  ;;  %v6003_v31 = vsel %vm758_vm1, %v6001_v58, %v6002_v55  ;;  %v5940_v59 = vrot.slane %v5938_v2, 1  ;;  %v5890_v55 = vpack.c.b16 %v5882_v20, %v5882_v20 }
 0x4f4   : > { %v5695_v57 = vadd.f32 %v5694_v34, %v5645_v25  ;;  %v5936_v34 = vor.u32 %v5935_v23, %v5931_v9 }
 0x4f5   : > { %v6011_v2 = vrot.slane %v5890_v55, 1 }
 0x4f6   : > { %v5743_v29 = vpop.f32.mrf.mxu2 }
 0x4f7   : > { %v5744_v22 = vadd.f32 %v5743_v29, %v5695_v57 }
 0x4f8   : > { %v5650_v8 = vpop.f32.mrf.mxu0 }
 0x4f9   : > { %v10425_v28 = vadd.f32 %v5744_v22, %v10330_v15  ;;  %v5941_v22 = vsel %vm589_vm0, %v5936_v34, %v5940_v59  ;;  %v5955_v34 = vshrl.u32 %v10265_v39, 16 }
 0x4fb   : > { %v5697_v33 = vpop.f32.mrf.mxu1 }
 0x4fc   : > { %v5698_v47 = vadd.f32 %v5697_v33, %v5648_v1  ;;  %v7880_v33 = vld [vmem:[#allocation3 + $0x48] sm:$0xff] }
 0x4fd   : > { %v5945_v58 = vshll.u32 %v7880_v33, 16  ;;  %v5943_v14 = vshrl.u32 %v7880_v33, 16 }
 0x4fe   : > { %6334 = vmatmul.bf16.gmra.mxu1 %v6003_v31  ;;  %v5746_v0 = vpop.f32.mrf.mxu2 }
 0x4ff   : > { %v5747_v36 = vadd.f32 %v5746_v0, %v5698_v47  ;;  %v6008_v47 = vrot.slane %v5889_v21, 1  ;;  %v5947_v16 = vrot.slane %v5945_v58, 1  ;;  %v5950_v0 = vshll.u32 %v5890_v55, 16 }
 0x500   : > { %v5653_v15 = vpop.f32.mrf.mxu0  ;;  %v5883_v21 = vunpack.c.l.b16 %v5815_v50 }
 0x501   : > { %v10429_v62 = vadd.f32 %v5747_v36, %v10341_v27  ;;  %v6004_v27 = vrot.slane %v7878_v17, 1 }
 0x503   : > { %v5699_v35 = vpop.f32.mrf.mxu1  ;;  %6290 = vmatmul.bf16.gmra.mxu0 %v5929_v61  ;;  %v6006_v32 = vsel %vm758_vm1, %v6004_v27, %v6005_v46  ;;  %v5952_v61 = vrot.slane %v5950_v0, 1  ;;  %v5891_v46 = vpack.c.b16 %v5883_v21, %v5883_v21 }
 0x504   : > { %v5700_v19 = vadd.f32 %v5699_v35, %v5650_v8  ;;  %v5948_v35 = vor.u32 %v5947_v16, %v5943_v14 }
 0x505   : > { %v5962_v9 = vshll.u32 %v5891_v46, 16  ;;  %v6014_v16 = vrot.slane %v5891_v46, 1 }
 0x506   : > { %v5748_v40 = vpop.f32.mrf.mxu2 }
 0x507   : > { %v5749_v25 = vadd.f32 %v5748_v40, %v5700_v19 }
 0x508   : > { %v5655_v12 = vpop.f32.mrf.mxu0 }
 0x509   : > { %v10433_v6 = vadd.f32 %v5749_v25, %v10344_v54  ;;  %v5953_v25 = vsel %vm589_vm0, %v5948_v35, %v5952_v61 }
 0x50b   : > { %v5702_v18 = vpop.f32.mrf.mxu1 }
 0x50c   : > { %v5703_v43 = vadd.f32 %v5702_v18, %v5653_v15  ;;  %v5957_v18 = vshll.u32 %v10265_v39, 16 }
 0x50e   : > { %6339 = vmatmul.bf16.gmra.mxu1 %v6006_v32  ;;  %v5751_v53 = vpop.f32.mrf.mxu2  ;;  %v5959_v32 = vrot.slane %v5957_v18, 1 }
 0x50f   : > { %v5752_v1 = vadd.f32 %v5751_v53, %v5703_v43 }
 0x510   : > { %v5658_v54 = vpop.f32.mrf.mxu0 }
 0x511   : > { %v10437_v57 = vadd.f32 %v5752_v1, %v10355_v4  ;;  %v6007_v4 = vrot.slane %v7879_v5, 1 }
 0x513   : > { %v5704_v29 = vpop.f32.mrf.mxu1  ;;  %6295 = vmatmul.bf16.gmra.mxu0 %v5941_v22  ;;  %v6009_v49 = vsel %vm758_vm1, %v6007_v4, %v6008_v47  ;;  %v5818_v22 = vld [vmem:[#allocation3 + $0x68] sm:$0x1]  ;;  %v5969_v47 = vshll.u32 %v10303_v44, 16 }
 0x514   : > { %v5705_v17 = vadd.f32 %v5704_v29, %v5655_v12  ;;  %v5964_v29 = vrot.slane %v5962_v9, 1  ;;  %v6016_v9 = vrot.slane %v10303_v44, 1 }
 0x516   : > { %v5753_v45 = vpop.f32.mrf.mxu2 }
 0x517   : > { %v5754_v8 = vadd.f32 %v5753_v45, %v5705_v17 }
 0x518   : > { %v5660_v26 = vpop.f32.mrf.mxu0 }
 0x519   : > { %v10441_v3 = vadd.f32 %v5754_v8, %v10358_v56  ;;  %v5884_v8 = vunpack.c.l.b16 %v5818_v22 }
 0x51b   : > { %v5707_v31 = vpop.f32.mrf.mxu1 }
 0x51c   : > { %v5708_v36 = vadd.f32 %v5707_v31, %v5658_v54  ;;  %v5960_v54 = vor.u32 %v5959_v32, %v5955_v34  ;;  %v6232_v32 = vpop.f32.mrf.mxu3 }
 0x51e   : > { %6344 = vmatmul.bf16.gmra.mxu1 %v6009_v49  ;;  %v5756_v51 = vpop.f32.mrf.mxu2  ;;  %v5965_v45 = vsel %vm589_vm0, %v5960_v54, %v5964_v29 }
 0x51f   : > { %v5757_v15 = vadd.f32 %v5756_v51, %v5708_v36  ;;  %v5971_v36 = vrot.slane %v5969_v47, 1 }
 0x520   : > { %v5663_v56 = vpop.f32.mrf.mxu0 }
 0x521   : > { %v10445_v19 = vadd.f32 %v5757_v15, %v10369_v24  ;;  %v6010_v24 = vrot.slane %v7880_v33, 1  ;;  %v5967_v15 = vshrl.u32 %v10303_v44, 16 }
 0x523   : > { %v5709_v40 = vpop.f32.mrf.mxu1  ;;  %6300 = vmatmul.bf16.gmra.mxu0 %v5953_v25  ;;  %v6012_v1 = vsel %vm758_vm1, %v6010_v24, %v6011_v2  ;;  %v5972_v50 = vor.u32 %v5971_v36, %v5967_v15 }
 0x524   : > { %v5710_v5 = vadd.f32 %v5709_v40, %v5660_v26  ;;  %v5892_v26 = vpack.c.b16 %v5884_v8, %v5884_v8  ;;  %v5821_v40 = vld [vmem:[#allocation3 + $0x74] sm:$0x1] }
 0x526   : > { %v5758_v30 = vpop.f32.mrf.mxu2  ;;  %v5974_v49 = vshll.u32 %v5892_v26, 16  ;;  %v6017_v24 = vrot.slane %v5892_v26, 1 }
 0x527   : > { %v5759_v12 = vadd.f32 %v5758_v30, %v5710_v5  ;;  %v5885_v5 = vunpack.c.l.b16 %v5821_v40 }
 0x528   : > { %v5665_v23 = vpop.f32.mrf.mxu0 }
 0x529   : > { %v10450_v27 = vadd.f32 %v5759_v12, %v10372_v52  ;;  %v5893_v18 = vpack.c.b16 %v5885_v5, %v5885_v5 }
 0x52b   : > { %v5712_v43 = vpop.f32.mrf.mxu1 }
 0x52c   : > { %v5713_v53 = vadd.f32 %v5712_v43, %v5663_v56  ;;  %v5976_v56 = vrot.slane %v5974_v49, 1 }
 0x52e   : > { %6349 = vmatmul.bf16.gmra.mxu1 %v6012_v1  ;;  %v5761_v59 = vpop.f32.mrf.mxu2  ;;  %v5986_v1 = vshll.u32 %v5893_v18, 16 }
 0x52f   : > { %v5762_v38 = vadd.f32 %v5761_v59, %v5713_v53  ;;  %v6018_v59 = vsel %vm758_vm1, %v6016_v9, %v6017_v24 }
 0x530   : > { %v5668_v20 = vpop.f32.mrf.mxu0 }
 0x531   : > { %v10455_v52 = vadd.f32 %v5762_v38, %v10383_v11  ;;  %v6013_v11 = vrot.slane %v10265_v39, 1  ;;  %v5977_v39 = vsel %vm589_vm0, %v5972_v50, %v5976_v56  ;;  %v5979_v38 = vshrl.u32 %v10327_v60, 16 }
 0x533   : > { %v5714_v17 = vpop.f32.mrf.mxu1  ;;  %6305 = vmatmul.bf16.gmra.mxu0 %v5965_v45  ;;  %v6015_v51 = vsel %vm758_vm1, %v6013_v11, %v6014_v16 }
 0x534   : > { %v5715_v55 = vadd.f32 %v5714_v17, %v5665_v23  ;;  %v5981_v23 = vshll.u32 %v10327_v60, 16 }
 0x536   : > { %v5763_v33 = vpop.f32.mrf.mxu2  ;;  %v5983_v53 = vrot.slane %v5981_v23, 1 }
 0x537   : > { %v5764_v58 = vadd.f32 %v5763_v33, %v5715_v55  ;;  %v6234_v55 = vpop.f32.mrf.mxu3 }
 0x538   : > { %v5670_v4 = vpop.f32.mrf.mxu0  ;;  %v5984_v22 = vor.u32 %v5983_v53, %v5979_v38 }
 0x539   : > { %v10460_v31 = vadd.f32 %v5764_v58, %v10386_v42 }
 0x53b   : > { %v5717_v0 = vpop.f32.mrf.mxu1 }
 0x53c   : > { %v5718_v14 = vadd.f32 %v5717_v0, %v5668_v20  ;;  %v5988_v20 = vrot.slane %v5986_v1, 1 }
 0x53e   : > { %6354 = vmatmul.bf16.gmra.mxu1 %v6015_v51  ;;  %v5766_v35 = vpop.f32.mrf.mxu2  ;;  %v5989_v8 = vsel %vm589_vm0, %v5984_v22, %v5988_v20 }
 0x53f   : > { %v5767_v61 = vadd.f32 %v5766_v35, %v5718_v14  ;;  %v6237_v49 = vpop.f32.mrf.mxu3 }
 0x540   : > { %v5673_v25 = vpop.f32.mrf.mxu0 }
 0x541   : > { %v10466_v42 = vadd.f32 %v5767_v61, %v10397_v41 }
 0x543   : > { %v5719_v21 = vpop.f32.mrf.mxu1  ;;  %6310 = vmatmul.bf16.gmra.mxu0 %v5977_v39 }
 0x544   : > { %v5720_v30 = vadd.f32 %v5719_v21, %v5670_v4  ;;  %v6020_v4 = vrot.slane %v5893_v18, 1 }
 0x546   : > { %v5768_v12 = vpop.f32.mrf.mxu2 }
 0x547   : > { %v5769_v46 = vadd.f32 %v5768_v12, %v5720_v30  ;;  %v6239_v56 = vpop.f32.mrf.mxu3 }
 0x548   : > { %v5675_v43 = vpop.f32.mrf.mxu0 }
 0x549   : > { %v10471_v2 = vadd.f32 %v5769_v46, %v10400_v37 }
 0x54b   : > { %v5722_v41 = vpop.f32.mrf.mxu1 }
 0x54c   : > { %v5723_v34 = vadd.f32 %v5722_v41, %v5673_v25 }
 0x54e   : > { %6359 = vmatmul.bf16.gmra.mxu1 %v6018_v59  ;;  %v5771_v54 = vpop.f32.mrf.mxu2 }
 0x54f   : > { %v5772_v29 = vadd.f32 %v5771_v54, %v5723_v34  ;;  %v6242_v30 = vpop.f32.mrf.mxu3 }
 0x550   : > { %v5678_v17 = vpop.f32.mrf.mxu0 }
 0x551   : > { %v10477_v37 = vadd.f32 %v5772_v29, %v10405_v7  ;;  %v6019_v7 = vrot.slane %v10327_v60, 1 }
 0x553   : > { %v5724_v45 = vpop.f32.mrf.mxu1  ;;  %6315 = vmatmul.bf16.gmra.mxu0 %v5989_v8  ;;  %v6021_v11 = vsel %vm758_vm1, %v6019_v7, %v6020_v4 }
 0x554   : > { %v5725_v44 = vadd.f32 %v5724_v45, %v5675_v43 }
 0x556   : > { %v5773_v33 = vpop.f32.mrf.mxu2 }
 0x557   : > { %v5774_v58 = vadd.f32 %v5773_v33, %v5725_v44  ;;  %v6244_v41 = vpop.f32.mrf.mxu3 }
 0x558   : > { %v5680_v47 = vpop.f32.mrf.mxu0 }
 0x559   : > { %v10481_v26 = vadd.f32 %v5774_v58, %v10408_v10 }
 0x55b   : > { %v5727_v16 = vpop.f32.mrf.mxu1 }
 0x55c   : > { %v5728_v0 = vadd.f32 %v5727_v16, %v5678_v17 }
 0x55e   : > { %6364 = vmatmul.bf16.gmra.mxu1 %v6021_v11  ;;  %v5776_v36 = vpop.f32.mrf.mxu2 }
 0x55f   : > { %v5777_v14 = vadd.f32 %v5776_v36, %v5728_v0 }
 0x560   : > { %v6281_v15 = vpop.f32.mrf.mxu0 }
 0x561   : > { %v10486_v51 = vadd.f32 %v5777_v14, %v10413_v63  ;;  %v6282_v25 = vadd.f32 %v6281_v15, %v6232_v32 }
 0x563   : > { %v5729_v35 = vpop.f32.mrf.mxu1 }
 0x564   : > { %v5730_v10 = vadd.f32 %v5729_v35, %v5680_v47 }
 0x566   : > { %v5778_v61 = vpop.f32.mrf.mxu2 }
 0x567   : > { %v5779_v50 = vadd.f32 %v5778_v61, %v5730_v10 }
 0x568   : > { %v6283_v40 = vpop.f32.mrf.mxu0 }
 0x569   : > { %v10491_v60 = vadd.f32 %v5779_v50, %v10417_v48  ;;  %v6284_v48 = vadd.f32 %v6283_v40, %v6234_v55 }
 0x56b   : > { %v6330_v21 = vpop.f32.mrf.mxu1 }
 0x56c   : > { %v6331_v39 = vadd.f32 %v6330_v21, %v6282_v25 }
 0x56e   : > { %v6370_v63 = vadd.f32 %v6331_v39, %v10421_v13 }
 0x570   : > { %6386 = vst.msk [vmem:[%s10496_s12] sm:$0xff] %vm819_vm6, %v6370_v63  ;;  %v6286_v5 = vpop.f32.mrf.mxu0 }
 0x571   : > { %v6287_v43 = vadd.f32 %v6286_v5, %v6237_v49 }
 0x573   : > { %v6332_v12 = vpop.f32.mrf.mxu1 }
 0x574   : > { %v6333_v46 = vadd.f32 %v6332_v12, %v6284_v48 }
 0x576   : > { %v6371_v18 = vadd.f32 %v6333_v46, %v10425_v28  ;;  %v6247_v28 = vpop.f32.mrf.mxu3 }
 0x578   : > { %6387 = vst.msk [vmem:[%s10496_s12 + $0x8] sm:$0xff] %vm819_vm6, %v6371_v18  ;;  %v6288_v23 = vpop.f32.mrf.mxu0 }
 0x579   : > { %v6289_v53 = vadd.f32 %v6288_v23, %v6239_v56 }
 0x57b   : > { %v6335_v24 = vpop.f32.mrf.mxu1 }
 0x57c   : > { %v6336_v32 = vadd.f32 %v6335_v24, %v6287_v43 }
 0x57e   : > { %v6372_v13 = vadd.f32 %v6336_v32, %v10429_v62  ;;  %v6249_v62 = vpop.f32.mrf.mxu3 }
 0x580   : > { %6388 = vst.msk [vmem:[%s10496_s12 + $0x10] sm:$0xff] %vm819_vm6, %v6372_v13  ;;  %v6291_v9 = vpop.f32.mrf.mxu0 }
 0x581   : > { %v6292_v54 = vadd.f32 %v6291_v9, %v6242_v30 }
 0x583   : > { %v6337_v1 = vpop.f32.mrf.mxu1 }
 0x584   : > { %v6338_v34 = vadd.f32 %v6337_v1, %v6289_v53 }
 0x586   : > { %v6373_v59 = vadd.f32 %v6338_v34, %v10433_v6  ;;  %v6252_v58 = vpop.f32.mrf.mxu3 }
 0x588   : > { %6389 = vst.msk [vmem:[%s10496_s12 + $0x18] sm:$0xff] %vm819_vm6, %v6373_v59  ;;  %v6293_v38 = vpop.f32.mrf.mxu0 }
 0x589   : > { %v6294_v45 = vadd.f32 %v6293_v38, %v6244_v41 }
 0x58b   : > { %v6340_v29 = vpop.f32.mrf.mxu1 }
 0x58c   : > { %v6341_v22 = vadd.f32 %v6340_v29, %v6292_v54 }
 0x58e   : > { %v6374_v20 = vadd.f32 %v6341_v22, %v10437_v57  ;;  %v6254_v36 = vpop.f32.mrf.mxu3 }
 0x590   : > { %6390 = vst.msk [vmem:[%s10496_s12 + $0x20] sm:$0xff] %vm819_vm6, %v6374_v20  ;;  %v6296_v17 = vpop.f32.mrf.mxu0 }
 0x591   : > { %v6297_v33 = vadd.f32 %v6296_v17, %v6247_v28 }
 0x593   : > { %v6342_v8 = vpop.f32.mrf.mxu1 }
 0x594   : > { %v6343_v44 = vadd.f32 %v6342_v8, %v6294_v45 }
 0x596   : > { %v6375_v6 = vadd.f32 %v6343_v44, %v10441_v3 }
 0x598   : > { %6391 = vst.msk [vmem:[%s10496_s12 + $0x28] sm:$0xff] %vm819_vm6, %v6375_v6  ;;  %v6298_v55 = vpop.f32.mrf.mxu0 }
 0x599   : > { %v6299_v7 = vadd.f32 %v6298_v55, %v6249_v62 }
 0x59b   : > { %v6345_v47 = vpop.f32.mrf.mxu1 }
 0x59c   : > { %v6346_v4 = vadd.f32 %v6345_v47, %v6297_v33 }
 0x59e   : > { %v6376_v57 = vadd.f32 %v6346_v4, %v10445_v19  ;;  %v6257_v19 = vpop.f32.mrf.mxu3 }
 0x5a0   : > { %6392 = vst.msk [vmem:[%s10496_s12 + $0x30] sm:$0xff] %vm819_vm6, %v6376_v57  ;;  %v6301_v16 = vpop.f32.mrf.mxu0 }
 0x5a1   : > { %v6302_v14 = vadd.f32 %v6301_v16, %v6252_v58 }
 0x5a3   : > { %v6347_v0 = vpop.f32.mrf.mxu1 }
 0x5a4   : > { %v6348_v11 = vadd.f32 %v6347_v0, %v6299_v7 }
 0x5a6   : > { %v6377_v3 = vadd.f32 %v6348_v11, %v10450_v27  ;;  %v6259_v27 = vpop.f32.mrf.mxu3 }
 0x5a8   : > { %6393 = vst.msk [vmem:[%s10496_s12 + $0x38] sm:$0xff] %vm819_vm6, %v6377_v3  ;;  %v6303_v49 = vpop.f32.mrf.mxu0 }
 0x5a9   : > { %v6304_v50 = vadd.f32 %v6303_v49, %v6254_v36 }
 0x5ab   : > { %v6350_v15 = vpop.f32.mrf.mxu1 }
 0x5ac   : > { %v6351_v35 = vadd.f32 %v6350_v15, %v6302_v14 }
 0x5ae   : > { %v6378_v10 = vadd.f32 %v6351_v35, %v10455_v52  ;;  %v6262_v12 = vpop.f32.mrf.mxu3 }
 0x5b0   : > { %6394 = vst.msk [vmem:[%s10496_s12 + $0x40] sm:$0xff] %vm819_vm6, %v6378_v10  ;;  %v6306_v61 = vpop.f32.mrf.mxu0 }
 0x5b1   : > { %v6307_v39 = vadd.f32 %v6306_v61, %v6257_v19 }
 0x5b3   : > { %v6352_v56 = vpop.f32.mrf.mxu1 }
 0x5b4   : > { %v6353_v40 = vadd.f32 %v6352_v56, %v6304_v50 }
 0x5b6   : > { %v6379_v25 = vadd.f32 %v6353_v40, %v10460_v31  ;;  %v6264_v41 = vpop.f32.mrf.mxu3 }
 0x5b8   : > { %6395 = vst.msk [vmem:[%s10496_s12 + $0x48] sm:$0xff] %vm819_vm6, %v6379_v25  ;;  %v6308_v21 = vpop.f32.mrf.mxu0 }
 0x5b9   : > { %v6309_v30 = vadd.f32 %v6308_v21, %v6259_v27 }
 0x5bb   : > { %v6355_v63 = vpop.f32.mrf.mxu1 }
 0x5bc   : > { %v6356_v5 = vadd.f32 %v6355_v63, %v6307_v39 }
 0x5be   : > { %v6380_v52 = vadd.f32 %v6356_v5, %v10466_v42 }
 0x5c0   : > { %6396 = vst.msk [vmem:[%s10496_s12 + $0x50] sm:$0xff] %vm819_vm6, %v6380_v52  ;;  %v6311_v48 = vpop.f32.mrf.mxu0 }
 0x5c1   : > { %v6312_v23 = vadd.f32 %v6311_v48, %v6262_v12 }
 0x5c3   : > { %v6357_v46 = vpop.f32.mrf.mxu1 }
 0x5c4   : > { %v6358_v18 = vadd.f32 %v6357_v46, %v6309_v30 }
 0x5c6   : > { %v6381_v31 = vadd.f32 %v6358_v18, %v10471_v2  ;;  %v6267_v2 = vpop.f32.mrf.mxu3 }
 0x5c8   : > { %6397 = vst.msk [vmem:[%s10496_s12 + $0x58] sm:$0xff] %vm819_vm6, %v6381_v31  ;;  %v6313_v24 = vpop.f32.mrf.mxu0 }
 0x5c9   : > { %v6314_v13 = vadd.f32 %v6313_v24, %v6264_v41 }
 0x5cb   : > { %v6360_v43 = vpop.f32.mrf.mxu1 }
 0x5cc   : > { %v6361_v32 = vadd.f32 %v6360_v43, %v6312_v23 }
 0x5ce   : > { %v6382_v42 = vadd.f32 %v6361_v32, %v10477_v37  ;;  %v6269_v37 = vpop.f32.mrf.mxu3 }
 0x5d0   : > { %6398 = vst.msk [vmem:[%s10496_s12 + $0x60] sm:$0xff] %vm819_vm6, %v6382_v42  ;;  %v6316_v1 = vpop.f32.mrf.mxu0 }
 0x5d1   : > { %v6317_v59 = vadd.f32 %v6316_v1, %v6267_v2 }
 0x5d3   : > { %v6362_v9 = vpop.f32.mrf.mxu1 }
 0x5d4   : > { %v6363_v53 = vadd.f32 %v6362_v9, %v6314_v13 }
 0x5d6   : > { %v6383_v34 = vadd.f32 %v6363_v53, %v10481_v26 }
 0x5d8   : > { %6399 = vst.msk [vmem:[%s10496_s12 + $0x68] sm:$0xff] %vm819_vm6, %v6383_v34  ;;  %v6318_v29 = vpop.f32.mrf.mxu0 }
 0x5d9   : > { %v6319_v22 = vadd.f32 %v6318_v29, %v6269_v37 }
 0x5db   : > { %v6365_v28 = vpop.f32.mrf.mxu1 }
 0x5dc   : > { %v6366_v38 = vadd.f32 %v6365_v28, %v6317_v59 }
 0x5de   : > { %v6384_v54 = vadd.f32 %v6366_v38, %v10486_v51 }
 0x5e0   : > { %6400 = vst.msk [vmem:[%s10496_s12 + $0x70] sm:$0xff] %vm819_vm6, %v6384_v54 }
 0x5e3   : > { %v6367_v20 = vpop.f32.mrf.mxu1 }
 0x5e4   : > { %v6368_v62 = vadd.f32 %v6367_v20, %v6319_v22 }
 0x5e6   : > { %v6385_v17 = vadd.f32 %v6368_v62, %v10491_v60 }
 0x5e8   : > { %6401 = vst.msk [vmem:[%s10496_s12 + $0x78] sm:$0xff] %vm819_vm6, %v6385_v17 }
 0x5e9 PF: > { %s17_s28 = sadd.s32 1, %s7919_s28   ;;  %s10669_s24 = smov %s7911_s26 }
 0x5ea   : > { %p14_p7 = scmp.ge.s32.totalorder %s17_s28, 6   ;;  %s10670_s25 = smov %s7915_s27 }
 0x5eb   : > { %s10671_s26 = smov %s10674_s29  ;;  %s10672_s27 = smov %s10678_s30 }
 0x5ec   :  { %16 = sbr.rel (!%p14_p7) target bundleno = 3 (0x3), region = 90 }

</bundles_post_ra>
